<compile_context>
chip_gen: v7x
topology: tpu7x:2x2x1
jax: 0.10.0
libtpu: 0.0.40
codegen_flags: <defaults>
</compile_context>

<pallas_src>
import functools

import jax
import jax.numpy as jnp
from jax import lax
from jax.experimental import pallas as pl
from jax.experimental.pallas import tpu as pltpu


# --------------------------------------------------------------------------- #
# tiling helpers
# --------------------------------------------------------------------------- #

def _divisor_leq(n, cap):
    """Largest divisor of n that is <= cap."""
    d = max(1, min(n, cap))
    while n % d:
        d -= 1
    return d


def _batch_tile(B, cap=8):
    """Batch tile for the time-major conv: must divide B and be a multiple of 8
    (sublane alignment of the (tile_b, C) block) or equal B."""
    for c in range(min(B, cap), 0, -1):
        if B % c == 0 and (c % 8 == 0 or c == B):
            return c
    return B


def _lstm_time_tile(T, cap=64):
    """LSTM time tile: the batch-first output block puts tile_t on the sublane
    axis, so it must be a multiple of 8 (or the full T)."""
    for c in range(min(T, cap), 0, -1):
        if T % c == 0 and c % 8 == 0:
            return c
    # TODO(synk): pad T to a multiple of 8 for awkward sequence lengths instead.
    return T


# --------------------------------------------------------------------------- #
# Conv1d(k=5, pad=2) + single-pass BN statistics  (time-major, chunked)
# --------------------------------------------------------------------------- #

def _conv_kernel(x_ref, scale_ref, shift_ref, w_ref, y_ref, stats_ref, *,
                 apply_act, chunk_t):
    # x_ref:     (T, tile_b, Cin)  bf16 raw (pre-BN) activation of the producer
    # scale/shift: (1, Cin) f32    producer's folded BN scale/shift
    # w_ref:     (5, Cin, Cout)    bf16 conv weights
    # y_ref:     (T, tile_b, Cout) bf16 raw (pre-BN) conv output of this layer
    # stats_ref: (1, 2, Cout) f32  per-tile [sum, sum_of_squares] over (T*tile_b)
    T, tile_b, Cin = x_ref.shape
    Cout = y_ref.shape[-1]
    nc = T // chunk_t

    if apply_act:
        scale = scale_ref[...]
        shift = shift_ref[...]

    def norm(v):                         # producer BN+ReLU fused; f32 math,
        if apply_act:                    # bf16 only at the MXU boundary
            return jnp.maximum(v.astype(jnp.float32) * scale + shift,
                               0.0).astype(jnp.bfloat16)
        return v                         # layer 0: raw bf16 embedding

    def taps(xw):                        # xw: (chunk_t + 4, tile_b, Cin) bf16
        # 5 taps == 5 leading-dim slices; chunk accumulator stays in vregs.
        acc = jnp.zeros((chunk_t * tile_b, Cout), jnp.float32)
        for k in range(5):
            acc += jnp.dot(xw[k:k + chunk_t].reshape(chunk_t * tile_b, Cin),
                           w_ref[k], preferred_element_type=jnp.float32)
        # NOTE: the Conv1d bias is omitted on purpose -- training-mode BatchNorm's
        # mean subtraction cancels it exactly, so it is dead compute.
        return acc

    def stats_of(acc):                   # f32 partials before the bf16 store
        return (jnp.sum(acc, axis=0, keepdims=True),
                jnp.sum(acc * acc, axis=0, keepdims=True))

    zrows = jnp.zeros((2, tile_b, Cin), jnp.bfloat16)
    s1 = jnp.zeros((1, Cout), jnp.float32)
    s2 = jnp.zeros((1, Cout), jnp.float32)

    if nc == 1:
        acc = taps(jnp.concatenate([zrows, norm(x_ref[...]), zrows], axis=0))
        y_ref[...] = acc.reshape(chunk_t, tile_b, Cout).astype(jnp.bfloat16)
        a, b = stats_of(acc)
        s1 += a
        s2 += b
    else:
        # ---- first chunk: left zero-halo built in-vreg (2 tiny rows only) ----
        acc = taps(jnp.concatenate([zrows, norm(x_ref[0:chunk_t + 2])], axis=0))
        y_ref[0:chunk_t] = acc.reshape(chunk_t, tile_b, Cout).astype(jnp.bfloat16)
        a, b = stats_of(acc)
        s1 += a
        s2 += b

        # ---- interior chunks: halo rows are in range, no padding copy at all ----
        def body(c, carry):
            s1c, s2c = carry
            base = c * chunk_t
            acc = taps(norm(x_ref[pl.ds(base - 2, chunk_t + 4)]))
            y_ref[pl.ds(base, chunk_t)] = (
                acc.reshape(chunk_t, tile_b, Cout).astype(jnp.bfloat16))
            a, b = stats_of(acc)
            return (s1c + a, s2c + b)

        s1, s2 = lax.fori_loop(1, nc - 1, body, (s1, s2))

        # ---- last chunk: right zero-halo ----
        base = T - chunk_t
        acc = taps(jnp.concatenate([norm(x_ref[base - 2:T]), zrows], axis=0))
        y_ref[base:T] = acc.reshape(chunk_t, tile_b, Cout).astype(jnp.bfloat16)
        a, b = stats_of(acc)
        s1 += a
        s2 += b

    # single-pass BN statistics; var = E[x^2] - E[x]^2 is formed outside.
    stats_ref[...] = jnp.concatenate([s1, s2], axis=0)[None]


def conv_bn_stats(x, scale, shift, w, *, apply_act):
    """x: (T, B, Cin) bf16 raw producer output, w: (5, Cin, Cout).
    Returns (raw bf16 conv output (T, B, Cout), per-tile stats (nb, 2, Cout) f32)."""
    T, B, Cin = x.shape
    K, _, Cout = w.shape
    tile_b = _batch_tile(B)              # real Tacotron2 (B=32): tile_b=8
    nb = B // tile_b
    chunk_t = _divisor_leq(T, 8)         # 8 rows x tile_b=8 -> 64-row MXU chunks
    if chunk_t < 4:                      # awkward T: fall back to one padded chunk
        chunk_t = T
    wb = w.astype(jnp.bfloat16)

    return pl.pallas_call(
        functools.partial(_conv_kernel, apply_act=apply_act, chunk_t=chunk_t),
        out_shape=(jax.ShapeDtypeStruct((T, B, Cout), jnp.bfloat16),
                   jax.ShapeDtypeStruct((nb, 2, Cout), jnp.float32)),
        grid=(nb,),
        in_specs=[
            pl.BlockSpec((T, tile_b, Cin), lambda b: (0, b, 0)),
            pl.BlockSpec((1, Cin), lambda b: (0, 0)),
            pl.BlockSpec((1, Cin), lambda b: (0, 0)),
            pl.BlockSpec((K, Cin, Cout), lambda b: (0, 0, 0)),
        ],
        out_specs=(pl.BlockSpec((T, tile_b, Cout), lambda b: (0, b, 0)),
                   pl.BlockSpec((1, 2, Cout), lambda b: (b, 0, 0))),
        compiler_params=pltpu.CompilerParams(
            dimension_semantics=("parallel",),      # batch tiles are independent
            vmem_limit_bytes=32 * 1024 * 1024),
    )(x, scale, shift, wb)


# --------------------------------------------------------------------------- #
# Bidirectional LSTM with packed-sequence semantics
#   grid = (direction, time-tile); direction "parallel" (2 TCs on v7x),
#   time-tiles "arbitrary" with persistent h/c scratch.  Output is written
#   batch-first (B, T, 2H) straight from the kernel.
# --------------------------------------------------------------------------- #

def _bilstm_kernel(len_ref, x_ref, scale_ref, shift_ref, wih_ref, b_ref, whh_ref,
                   o_ref, h_scr, c_scr, g_scr, ot_scr):
    # len_ref: (B, 1) int32           x_ref: (tile_t, B, C) bf16 raw conv3 output
    # scale/shift: (1, C) f32         wih_ref: (1, C, 4H) bf16
    # b_ref: (1, 1, 4H) f32           whh_ref: (1, 4, H, H) bf16 (per-gate)
    # o_ref: (B, tile_t, H)           scratch: h/c (B,H), g (tile_t,B,4H), ot (tile_t,B,H)
    tile_t, B, C = x_ref.shape
    H = h_scr.shape[-1]

    d = pl.program_id(0)                 # 0 = forward, 1 = backward
    tb = pl.program_id(1)                # time-tile counter (per direction)
    nt = pl.num_programs(1)

    @pl.when(tb == 0)                    # fresh state at the start of each direction
    def _():
        h_scr[...] = jnp.zeros_like(h_scr)
        c_scr[...] = jnp.zeros_like(c_scr)

    # ---- hoisted input projection: ONE MXU matmul per (direction, time tile) ----
    # fused BN + ReLU of the last conv layer, f32 math, bf16 at the MXU boundary.
    x = jnp.maximum(x_ref[...].astype(jnp.float32) * scale_ref[...] + shift_ref[...],
                    0.0)
    xb = x.astype(jnp.bfloat16).reshape(tile_t * B, C)
    gin = jnp.dot(xb, wih_ref[0], preferred_element_type=jnp.float32) + b_ref[0]
    g_scr[...] = gin.reshape(tile_t, B, 4 * H)

    lens = len_ref[...]                  # (B, 1) -- hoisted out of the step loop
    blk = tb + d * (nt - 1 - 2 * tb)     # time-block actually loaded (reversed for bwd)

    def step(s, carry):
        tt = s + d * (tile_t - 1 - 2 * s)          # fwd: ascending, bwd: descending
        t_abs = blk * tile_t + tt
        hb = h_scr[...].astype(jnp.bfloat16)

        # per-gate (H x H) dots keep the live values small; gate pre-activations
        # are read as H-wide lane slices of the scratch (PyTorch order: i,f,g,o).
        def gate(k):
            return (g_scr[tt, :, k * H:(k + 1) * H] +
                    jnp.dot(hb, whh_ref[0, k], preferred_element_type=jnp.float32))

        i = jax.nn.sigmoid(gate(0))
        f = jax.nn.sigmoid(gate(1))
        g = jnp.tanh(gate(2))
        o = jax.nn.sigmoid(gate(3))
        c_new = f * c_scr[...] + i * g
        h_new = o * jnp.tanh(c_new)

        live = t_abs < lens                        # packed-sequence mask (B, 1)
        c_scr[...] = jnp.where(live, c_new, c_scr[...])
        h_scr[...] = jnp.where(live, h_new, h_scr[...])
        ot_scr[tt] = jnp.where(live, h_new, 0.0)   # pad_packed_sequence zero-pads
        return carry

    lax.fori_loop(0, tile_t, step, 0)

    # (tile_t, B, H) -> (B, tile_t, H) swap on the XLU so the HBM store is
    # batch-first and lane-dense; kills the former full-HBM XLA transpose.
    o_ref[...] = pltpu.einshape("tbh->bth", ot_scr[...])


def bilstm(x, scale, shift, wih, bias, whh, lengths, H, *, tile_t=None):
    """x: raw conv3 output (T, B, C) bf16; wih (2,C,4H) bf16; whh (2,4,H,H) bf16;
    bias (2,1,4H) f32 (b_ih + b_hh).  Returns batch-first (B, T, 2H) f32 with
    [forward | backward] concatenated on the feature axis.
    NOTE: the fused batch-first output layout assumes H % 128 == 0 (true for
    Tacotron2's H=256)."""
    T, B, C = x.shape
    if tile_t is None:
        tile_t = _lstm_time_tile(T)      # real shapes: 40-64 -> M=tile_t*B matmuls
    nt = T // tile_t
    lens2d = lengths.reshape(B, 1).astype(jnp.int32)

    return pl.pallas_call(
        _bilstm_kernel,
        out_shape=jax.ShapeDtypeStruct((B, T, 2 * H), jnp.float32),
        grid=(2, nt),
        in_specs=[
            pl.BlockSpec((B, 1), lambda d, t: (0, 0)),
            pl.BlockSpec((tile_t, B, C),
                         lambda d, t: (t + d * (nt - 1 - 2 * t), 0, 0)),
            pl.BlockSpec((1, C), lambda d, t: (0, 0)),
            pl.BlockSpec((1, C), lambda d, t: (0, 0)),
            pl.BlockSpec((1, C, 4 * H), lambda d, t: (d, 0, 0)),
            pl.BlockSpec((1, 1, 4 * H), lambda d, t: (d, 0, 0)),
            pl.BlockSpec((1, 4, H, H), lambda d, t: (d, 0, 0, 0)),
        ],
        out_specs=pl.BlockSpec((B, tile_t, H),
                               lambda d, t: (0, t + d * (nt - 1 - 2 * t), d)),
        scratch_shapes=[
            pltpu.VMEM((B, H), jnp.float32),              # h (persists across tiles)
            pltpu.VMEM((B, H), jnp.float32),              # c
            pltpu.VMEM((tile_t, B, 4 * H), jnp.float32),  # precomputed input gates
            pltpu.VMEM((tile_t, B, H), jnp.float32),      # per-tile output staging
        ],
        compiler_params=pltpu.CompilerParams(
            dimension_semantics=("parallel", "arbitrary"),  # directions on 2 TCs (v7x)
            vmem_limit_bytes=32 * 1024 * 1024),
    )(lens2d, x, scale, shift, wih, bias, whh)


# --------------------------------------------------------------------------- #
# Encoder forward
# --------------------------------------------------------------------------- #

def encoder_forward(params, tokens, input_lengths, *, lstm_tile_t=None):
    B, T = tokens.shape
    # Embedding gathered directly into time-major bf16 (T, B, E): no transpose,
    # half the gather bandwidth.
    x = jnp.take(params["embedding"].astype(jnp.bfloat16), tokens.T, axis=0)
    n = T * B

    # conv stack: each kernel consumes the previous layer's RAW bf16 output plus
    # its folded BN scale/shift; the normalized activation never touches HBM.
    scale = jnp.ones((1, x.shape[-1]), jnp.float32)
    shift = jnp.zeros((1, x.shape[-1]), jnp.float32)
    for li, layer in enumerate(params["conv_layers"]):
        y, stats = conv_bn_stats(x, scale, shift, layer["w"], apply_act=(li > 0))
        sums = jnp.sum(stats, axis=0)                            # (2, Cout) tiny XLA reduce
        mean = sums[0] / n
        var = sums[1] / n - mean * mean                          # training-mode batch stats
        s = layer["gamma"] * lax.rsqrt(var + 1e-5)
        scale = s.reshape(1, -1)
        shift = (layer["beta"] - mean * s).reshape(1, -1)
        x = y

    lstm = params["lstm"]
    H = lstm["whh_f"].shape[0]
    wih = jnp.stack([lstm["wih_f"], lstm["wih_b"]], 0).astype(jnp.bfloat16)   # (2, C, 4H)
    whh = (jnp.stack([lstm["whh_f"], lstm["whh_b"]], 0)                        # (2, H, 4H)
           .reshape(2, H, 4, H).transpose(0, 2, 1, 3)                          # per-gate
           .astype(jnp.bfloat16))                                              # (2, 4, H, H)
    bias = jnp.stack([lstm["b_f"], lstm["b_b"]], 0).reshape(2, 1, 4 * H)       # (2, 1, 4H)

    # Output is already the module's batch-first (B, T, 2H) layout.
    return bilstm(x, scale, shift, wih, bias, whh, input_lengths, H,
                  tile_t=lstm_tile_t)


# --------------------------------------------------------------------------- #
# params / demo
# --------------------------------------------------------------------------- #

def init_params(key, vocab_size, embed_dim, conv_channels, hidden):
    keys = jax.random.split(key, 16)
    p = {"embedding": 0.1 * jax.random.normal(keys[0], (vocab_size, embed_dim), jnp.float32)}
    conv_layers = []
    cin = embed_dim
    for li in range(3):
        conv_layers.append({
            "w": 0.05 * jax.random.normal(keys[1 + li], (5, cin, conv_channels), jnp.float32),
            # conv bias kept for parameter parity but unused: training-mode BatchNorm
            # cancels it exactly (mean subtraction), so the kernels skip the add.
            "b": jnp.zeros((conv_channels,), jnp.float32),
            "gamma": jnp.ones((conv_channels,), jnp.float32),
            "beta": jnp.zeros((conv_channels,), jnp.float32),
        })
        cin = conv_channels
    p["conv_layers"] = conv_layers
    p["lstm"] = {
        "wih_f": 0.05 * jax.random.normal(keys[5], (conv_channels, 4 * hidden), jnp.float32),
        "whh_f": 0.05 * jax.random.normal(keys[6], (hidden, 4 * hidden), jnp.float32),
        "b_f": jnp.zeros((4 * hidden,), jnp.float32),   # b_ih + b_hh folded
        "wih_b": 0.05 * jax.random.normal(keys[7], (conv_channels, 4 * hidden), jnp.float32),
        "whh_b": 0.05 * jax.random.normal(keys[8], (hidden, 4 * hidden), jnp.float32),
        "b_b": jnp.zeros((4 * hidden,), jnp.float32),
    }
    return p


if __name__ == "__main__":
    # Small shapes consistent with the module (scaled-down channels/hidden), but
    # lane/sublane aligned (H multiple of 128, B multiple of 8) so the fused
    # batch-first LSTM output path -- the one real Tacotron2 shapes hit -- is the
    # one exercised here.
    VOCAB, EMBED, CONV_CH, HIDDEN = 40, 64, 128, 128
    B, T = 16, 24

    key = jax.random.PRNGKey(0)
    k_tok, k_par = jax.random.split(key)
    tokens = jax.random.randint(k_tok, (B, T), 0, VOCAB, dtype=jnp.int32)
    input_lengths = jnp.array([24, 20, 24, 17, 9, 24, 5, 13,
                               24, 22, 3, 24, 16, 7, 24, 11], dtype=jnp.int32)
    params = init_params(k_par, VOCAB, EMBED, CONV_CH, HIDDEN)

    # lstm_tile_t=8 -> three time tiles per direction, exercising the persistent
    # state carry and the reversed block order of the backward direction; the
    # conv uses chunk_t=8 -> first/interior/last chunk paths are all exercised.
    fwd = jax.jit(functools.partial(encoder_forward, lstm_tile_t=8))
    out = fwd(params, tokens, input_lengths)
    jax.block_until_ready(out)

    max_len = int(jnp.max(input_lengths))
    out = out[:, :max_len]                        # pad_packed_sequence pads to max length
    assert out.shape == (B, max_len, 2 * HIDDEN), out.shape
    assert bool(jnp.all(jnp.isfinite(out)))
    print("KERNEL_OK")
</pallas_src>

<mosaic_0001>
module attributes {stable_mosaic.version = 11 : i64} {
  func.func @_conv_kernel(%arg0: i32, %arg1: memref<24x8x64xbf16, #tpu.memory_space<vmem>>, %arg2: memref<1x64xf32, #tpu.memory_space<vmem>>, %arg3: memref<1x64xf32, #tpu.memory_space<vmem>>, %arg4: memref<5x64x128xbf16, #tpu.memory_space<vmem>>, %arg5: memref<24x8x128xbf16, #tpu.memory_space<vmem>>, %arg6: memref<1x2x128xf32, #tpu.memory_space<vmem>>) attributes {dimension_semantics = [#tpu.dimension_semantics<parallel>], iteration_bounds = array<i64: 2>, scalar_prefetch = 0 : i64, scratch_operands = 0 : i64, tpu.core_type = #tpu.core_type<tc>, window_params = [{transform_indices = @transform_0, window_bounds = array<i64: 24, 8, 64>}, {pipeline_mode = #tpu.pipeline_mode<synchronous>, transform_indices = @transform_1, window_bounds = array<i64: 1, 64>}, {pipeline_mode = #tpu.pipeline_mode<synchronous>, transform_indices = @transform_2, window_bounds = array<i64: 1, 64>}, {pipeline_mode = #tpu.pipeline_mode<synchronous>, transform_indices = @transform_3, window_bounds = array<i64: 5, 64, 128>}, {transform_indices = @transform_4, window_bounds = array<i64: 24, 8, 128>}, {transform_indices = @transform_5, window_bounds = array<i64: 1, 2, 128>}]} {
    %cst = arith.constant 0.000000e+00 : bf16
    %0 = vector.broadcast %cst : bf16 to vector<2x8x64xbf16>
    %cst_0 = arith.constant 0.000000e+00 : f32
    %1 = vector.broadcast %cst_0 : f32 to vector<1x128xf32>
    %cst_1 = arith.constant 0.000000e+00 : f32
    %2 = vector.broadcast %cst_1 : f32 to vector<1x128xf32>
    %c0 = arith.constant 0 : index
    %c0_2 = arith.constant 0 : index
    %c0_3 = arith.constant 0 : index
    %3 = vector.load %arg1[%c0, %c0_2, %c0_3] : memref<24x8x64xbf16, #tpu.memory_space<vmem>>, vector<10x8x64xbf16>
    %4 = tpu.concatenate %0, %3 in 0 : vector<2x8x64xbf16>, vector<10x8x64xbf16> -> vector<12x8x64xbf16>
    %cst_4 = arith.constant 0.000000e+00 : f32
    %5 = vector.broadcast %cst_4 : f32 to vector<64x128xf32>
    %6 = vector.extract_strided_slice %4 {offsets = [0, 0, 0], sizes = [8, 8, 64], strides = [1, 1, 1]} : vector<12x8x64xbf16> to vector<8x8x64xbf16>
    %7 = vector.shape_cast %6 : vector<8x8x64xbf16> to vector<64x64xbf16>
    %c0_5 = arith.constant 0 : index
    %c0_6 = arith.constant 0 : index
    %c0_7 = arith.constant 0 : index
    %8 = vector.load %arg4[%c0_5, %c0_6, %c0_7] : memref<5x64x128xbf16, #tpu.memory_space<vmem>>, vector<1x64x128xbf16>
    %9 = vector.shape_cast %8 : vector<1x64x128xbf16> to vector<64x128xbf16>
    %cst_8 = arith.constant dense<0.000000e+00> : vector<64x128xf32>
    %10 = tpu.matmul %7, %9, %cst_8 {dimension_numbers = #tpu.dot_dimension_numbers<[1], [0], [0], [1], [0, 0, 1, 1], [], []>} : vector<64x64xbf16>, vector<64x128xbf16>, vector<64x128xf32> -> vector<64x128xf32>
    %11 = arith.addf %5, %10 : vector<64x128xf32>
    %12 = vector.extract_strided_slice %4 {offsets = [1, 0, 0], sizes = [8, 8, 64], strides = [1, 1, 1]} : vector<12x8x64xbf16> to vector<8x8x64xbf16>
    %13 = vector.shape_cast %12 : vector<8x8x64xbf16> to vector<64x64xbf16>
    %c1 = arith.constant 1 : index
    %c0_9 = arith.constant 0 : index
    %c0_10 = arith.constant 0 : index
    %14 = vector.load %arg4[%c1, %c0_9, %c0_10] : memref<5x64x128xbf16, #tpu.memory_space<vmem>>, vector<1x64x128xbf16>
    %15 = vector.shape_cast %14 : vector<1x64x128xbf16> to vector<64x128xbf16>
    %cst_11 = arith.constant dense<0.000000e+00> : vector<64x128xf32>
    %16 = tpu.matmul %13, %15, %cst_11 {dimension_numbers = #tpu.dot_dimension_numbers<[1], [0], [0], [1], [0, 0, 1, 1], [], []>} : vector<64x64xbf16>, vector<64x128xbf16>, vector<64x128xf32> -> vector<64x128xf32>
    %17 = arith.addf %11, %16 : vector<64x128xf32>
    %18 = vector.extract_strided_slice %4 {offsets = [2, 0, 0], sizes = [8, 8, 64], strides = [1, 1, 1]} : vector<12x8x64xbf16> to vector<8x8x64xbf16>
    %19 = vector.shape_cast %18 : vector<8x8x64xbf16> to vector<64x64xbf16>
    %c2 = arith.constant 2 : index
    %c0_12 = arith.constant 0 : index
    %c0_13 = arith.constant 0 : index
    %20 = vector.load %arg4[%c2, %c0_12, %c0_13] : memref<5x64x128xbf16, #tpu.memory_space<vmem>>, vector<1x64x128xbf16>
    %21 = vector.shape_cast %20 : vector<1x64x128xbf16> to vector<64x128xbf16>
    %cst_14 = arith.constant dense<0.000000e+00> : vector<64x128xf32>
    %22 = tpu.matmul %19, %21, %cst_14 {dimension_numbers = #tpu.dot_dimension_numbers<[1], [0], [0], [1], [0, 0, 1, 1], [], []>} : vector<64x64xbf16>, vector<64x128xbf16>, vector<64x128xf32> -> vector<64x128xf32>
    %23 = arith.addf %17, %22 : vector<64x128xf32>
    %24 = vector.extract_strided_slice %4 {offsets = [3, 0, 0], sizes = [8, 8, 64], strides = [1, 1, 1]} : vector<12x8x64xbf16> to vector<8x8x64xbf16>
    %25 = vector.shape_cast %24 : vector<8x8x64xbf16> to vector<64x64xbf16>
    %c3 = arith.constant 3 : index
    %c0_15 = arith.constant 0 : index
    %c0_16 = arith.constant 0 : index
    %26 = vector.load %arg4[%c3, %c0_15, %c0_16] : memref<5x64x128xbf16, #tpu.memory_space<vmem>>, vector<1x64x128xbf16>
    %27 = vector.shape_cast %26 : vector<1x64x128xbf16> to vector<64x128xbf16>
    %cst_17 = arith.constant dense<0.000000e+00> : vector<64x128xf32>
    %28 = tpu.matmul %25, %27, %cst_17 {dimension_numbers = #tpu.dot_dimension_numbers<[1], [0], [0], [1], [0, 0, 1, 1], [], []>} : vector<64x64xbf16>, vector<64x128xbf16>, vector<64x128xf32> -> vector<64x128xf32>
    %29 = arith.addf %23, %28 : vector<64x128xf32>
    %30 = vector.extract_strided_slice %4 {offsets = [4, 0, 0], sizes = [8, 8, 64], strides = [1, 1, 1]} : vector<12x8x64xbf16> to vector<8x8x64xbf16>
    %31 = vector.shape_cast %30 : vector<8x8x64xbf16> to vector<64x64xbf16>
    %c4 = arith.constant 4 : index
    %c0_18 = arith.constant 0 : index
    %c0_19 = arith.constant 0 : index
    %32 = vector.load %arg4[%c4, %c0_18, %c0_19] : memref<5x64x128xbf16, #tpu.memory_space<vmem>>, vector<1x64x128xbf16>
    %33 = vector.shape_cast %32 : vector<1x64x128xbf16> to vector<64x128xbf16>
    %cst_20 = arith.constant dense<0.000000e+00> : vector<64x128xf32>
    %34 = tpu.matmul %31, %33, %cst_20 {dimension_numbers = #tpu.dot_dimension_numbers<[1], [0], [0], [1], [0, 0, 1, 1], [], []>} : vector<64x64xbf16>, vector<64x128xbf16>, vector<64x128xf32> -> vector<64x128xf32>
    %35 = arith.addf %29, %34 : vector<64x128xf32>
    %36 = vector.shape_cast %35 : vector<64x128xf32> to vector<8x8x128xf32>
    %37 = arith.truncf %36 : vector<8x8x128xf32> to vector<8x8x128xbf16>
    %c0_21 = arith.constant 0 : index
    %c0_22 = arith.constant 0 : index
    %c0_23 = arith.constant 0 : index
    %38 = vector.load %arg5[%c0_21, %c0_22, %c0_23] : memref<24x8x128xbf16, #tpu.memory_space<vmem>>, vector<8x8x128xbf16>
    tpu.vector_store %arg5[%c0_21, %c0_22, %c0_23], %37 {strides = array<i32>} : memref<24x8x128xbf16, #tpu.memory_space<vmem>>, vector<8x8x128xbf16>,
    %cst_24 = arith.constant dense<0.000000e+00> : vector<128xf32>
    %39 = vector.multi_reduction <add>, %35, %cst_24 [0] : vector<64x128xf32> to vector<128xf32>
    %40 = vector.shape_cast %39 : vector<128xf32> to vector<1x128xf32>
    %41 = arith.mulf %35, %35 : vector<64x128xf32>
    %cst_25 = arith.constant dense<0.000000e+00> : vector<128xf32>
    %42 = vector.multi_reduction <add>, %41, %cst_25 [0] : vector<64x128xf32> to vector<128xf32>
    %43 = vector.shape_cast %42 : vector<128xf32> to vector<1x128xf32>
    %44 = arith.addf %1, %40 : vector<1x128xf32>
    %45 = arith.addf %2, %43 : vector<1x128xf32>
    %c1_i32 = arith.constant 1 : i32
    %c8_i32 = arith.constant 8 : i32
    %46 = arith.muli %c1_i32, %c8_i32 : i32
    %c2_i32 = arith.constant 2 : i32
    %47 = arith.subi %46, %c2_i32 : i32
    %48 = arith.index_cast %47 : i32 to index
    %c0_26 = arith.constant 0 : index
    %c0_27 = arith.constant 0 : index
    %49 = vector.load %arg1[%48, %c0_26, %c0_27] : memref<24x8x64xbf16, #tpu.memory_space<vmem>>, vector<12x8x64xbf16>
    %cst_28 = arith.constant 0.000000e+00 : f32
    %50 = vector.broadcast %cst_28 : f32 to vector<64x128xf32>
    %51 = vector.extract_strided_slice %49 {offsets = [0, 0, 0], sizes = [8, 8, 64], strides = [1, 1, 1]} : vector<12x8x64xbf16> to vector<8x8x64xbf16>
    %52 = vector.shape_cast %51 : vector<8x8x64xbf16> to vector<64x64xbf16>
    %c0_29 = arith.constant 0 : index
    %c0_30 = arith.constant 0 : index
    %c0_31 = arith.constant 0 : index
    %53 = vector.load %arg4[%c0_29, %c0_30, %c0_31] : memref<5x64x128xbf16, #tpu.memory_space<vmem>>, vector<1x64x128xbf16>
    %54 = vector.shape_cast %53 : vector<1x64x128xbf16> to vector<64x128xbf16>
    %cst_32 = arith.constant dense<0.000000e+00> : vector<64x128xf32>
    %55 = tpu.matmul %52, %54, %cst_32 {dimension_numbers = #tpu.dot_dimension_numbers<[1], [0], [0], [1], [0, 0, 1, 1], [], []>} : vector<64x64xbf16>, vector<64x128xbf16>, vector<64x128xf32> -> vector<64x128xf32>
    %56 = arith.addf %50, %55 : vector<64x128xf32>
    %57 = vector.extract_strided_slice %49 {offsets = [1, 0, 0], sizes = [8, 8, 64], strides = [1, 1, 1]} : vector<12x8x64xbf16> to vector<8x8x64xbf16>
    %58 = vector.shape_cast %57 : vector<8x8x64xbf16> to vector<64x64xbf16>
    %c1_33 = arith.constant 1 : index
    %c0_34 = arith.constant 0 : index
    %c0_35 = arith.constant 0 : index
    %59 = vector.load %arg4[%c1_33, %c0_34, %c0_35] : memref<5x64x128xbf16, #tpu.memory_space<vmem>>, vector<1x64x128xbf16>
    %60 = vector.shape_cast %59 : vector<1x64x128xbf16> to vector<64x128xbf16>
    %cst_36 = arith.constant dense<0.000000e+00> : vector<64x128xf32>
    %61 = tpu.matmul %58, %60, %cst_36 {dimension_numbers = #tpu.dot_dimension_numbers<[1], [0], [0], [1], [0, 0, 1, 1], [], []>} : vector<64x64xbf16>, vector<64x128xbf16>, vector<64x128xf32> -> vector<64x128xf32>
    %62 = arith.addf %56, %61 : vector<64x128xf32>
    %63 = vector.extract_strided_slice %49 {offsets = [2, 0, 0], sizes = [8, 8, 64], strides = [1, 1, 1]} : vector<12x8x64xbf16> to vector<8x8x64xbf16>
    %64 = vector.shape_cast %63 : vector<8x8x64xbf16> to vector<64x64xbf16>
    %c2_37 = arith.constant 2 : index
    %c0_38 = arith.constant 0 : index
    %c0_39 = arith.constant 0 : index
    %65 = vector.load %arg4[%c2_37, %c0_38, %c0_39] : memref<5x64x128xbf16, #tpu.memory_space<vmem>>, vector<1x64x128xbf16>
    %66 = vector.shape_cast %65 : vector<1x64x128xbf16> to vector<64x128xbf16>
    %cst_40 = arith.constant dense<0.000000e+00> : vector<64x128xf32>
    %67 = tpu.matmul %64, %66, %cst_40 {dimension_numbers = #tpu.dot_dimension_numbers<[1], [0], [0], [1], [0, 0, 1, 1], [], []>} : vector<64x64xbf16>, vector<64x128xbf16>, vector<64x128xf32> -> vector<64x128xf32>
    %68 = arith.addf %62, %67 : vector<64x128xf32>
    %69 = vector.extract_strided_slice %49 {offsets = [3, 0, 0], sizes = [8, 8, 64], strides = [1, 1, 1]} : vector<12x8x64xbf16> to vector<8x8x64xbf16>
    %70 = vector.shape_cast %69 : vector<8x8x64xbf16> to vector<64x64xbf16>
    %c3_41 = arith.constant 3 : index
    %c0_42 = arith.constant 0 : index
    %c0_43 = arith.constant 0 : index
    %71 = vector.load %arg4[%c3_41, %c0_42, %c0_43] : memref<5x64x128xbf16, #tpu.memory_space<vmem>>, vector<1x64x128xbf16>
    %72 = vector.shape_cast %71 : vector<1x64x128xbf16> to vector<64x128xbf16>
    %cst_44 = arith.constant dense<0.000000e+00> : vector<64x128xf32>
    %73 = tpu.matmul %70, %72, %cst_44 {dimension_numbers = #tpu.dot_dimension_numbers<[1], [0], [0], [1], [0, 0, 1, 1], [], []>} : vector<64x64xbf16>, vector<64x128xbf16>, vector<64x128xf32> -> vector<64x128xf32>
    %74 = arith.addf %68, %73 : vector<64x128xf32>
    %75 = vector.extract_strided_slice %49 {offsets = [4, 0, 0], sizes = [8, 8, 64], strides = [1, 1, 1]} : vector<12x8x64xbf16> to vector<8x8x64xbf16>
    %76 = vector.shape_cast %75 : vector<8x8x64xbf16> to vector<64x64xbf16>
    %c4_45 = arith.constant 4 : index
    %c0_46 = arith.constant 0 : index
    %c0_47 = arith.constant 0 : index
    %77 = vector.load %arg4[%c4_45, %c0_46, %c0_47] : memref<5x64x128xbf16, #tpu.memory_space<vmem>>, vector<1x64x128xbf16>
    %78 = vector.shape_cast %77 : vector<1x64x128xbf16> to vector<64x128xbf16>
    %cst_48 = arith.constant dense<0.000000e+00> : vector<64x128xf32>
    %79 = tpu.matmul %76, %78, %cst_48 {dimension_numbers = #tpu.dot_dimension_numbers<[1], [0], [0], [1], [0, 0, 1, 1], [], []>} : vector<64x64xbf16>, vector<64x128xbf16>, vector<64x128xf32> -> vector<64x128xf32>
    %80 = arith.addf %74, %79 : vector<64x128xf32>
    %81 = vector.shape_cast %80 : vector<64x128xf32> to vector<8x8x128xf32>
    %82 = arith.truncf %81 : vector<8x8x128xf32> to vector<8x8x128xbf16>
    %83 = arith.index_cast %46 : i32 to index
    %c0_49 = arith.constant 0 : index
    %c0_50 = arith.constant 0 : index
    %84 = vector.load %arg5[%83, %c0_49, %c0_50] : memref<24x8x128xbf16, #tpu.memory_space<vmem>>, vector<8x8x128xbf16>
    tpu.vector_store %arg5[%83, %c0_49, %c0_50], %82 {strides = array<i32>} : memref<24x8x128xbf16, #tpu.memory_space<vmem>>, vector<8x8x128xbf16>,
    %cst_51 = arith.constant dense<0.000000e+00> : vector<128xf32>
    %85 = vector.multi_reduction <add>, %80, %cst_51 [0] : vector<64x128xf32> to vector<128xf32>
    %86 = vector.shape_cast %85 : vector<128xf32> to vector<1x128xf32>
    %87 = arith.mulf %80, %80 : vector<64x128xf32>
    %cst_52 = arith.constant dense<0.000000e+00> : vector<128xf32>
    %88 = vector.multi_reduction <add>, %87, %cst_52 [0] : vector<64x128xf32> to vector<128xf32>
    %89 = vector.shape_cast %88 : vector<128xf32> to vector<1x128xf32>
    %90 = arith.addf %44, %86 : vector<1x128xf32>
    %91 = arith.addf %45, %89 : vector<1x128xf32>
    %c1_i32_53 = arith.constant 1 : i32
    %c14 = arith.constant 14 : index
    %c0_54 = arith.constant 0 : index
    %c0_55 = arith.constant 0 : index
    %92 = vector.load %arg1[%c14, %c0_54, %c0_55] : memref<24x8x64xbf16, #tpu.memory_space<vmem>>, vector<10x8x64xbf16>
    %93 = tpu.concatenate %92, %0 in 0 : vector<10x8x64xbf16>, vector<2x8x64xbf16> -> vector<12x8x64xbf16>
    %cst_56 = arith.constant 0.000000e+00 : f32
    %94 = vector.broadcast %cst_56 : f32 to vector<64x128xf32>
    %95 = vector.extract_strided_slice %93 {offsets = [0, 0, 0], sizes = [8, 8, 64], strides = [1, 1, 1]} : vector<12x8x64xbf16> to vector<8x8x64xbf16>
    %96 = vector.shape_cast %95 : vector<8x8x64xbf16> to vector<64x64xbf16>
    %c0_57 = arith.constant 0 : index
    %c0_58 = arith.constant 0 : index
    %c0_59 = arith.constant 0 : index
    %97 = vector.load %arg4[%c0_57, %c0_58, %c0_59] : memref<5x64x128xbf16, #tpu.memory_space<vmem>>, vector<1x64x128xbf16>
    %98 = vector.shape_cast %97 : vector<1x64x128xbf16> to vector<64x128xbf16>
    %cst_60 = arith.constant dense<0.000000e+00> : vector<64x128xf32>
    %99 = tpu.matmul %96, %98, %cst_60 {dimension_numbers = #tpu.dot_dimension_numbers<[1], [0], [0], [1], [0, 0, 1, 1], [], []>} : vector<64x64xbf16>, vector<64x128xbf16>, vector<64x128xf32> -> vector<64x128xf32>
    %100 = arith.addf %94, %99 : vector<64x128xf32>
    %101 = vector.extract_strided_slice %93 {offsets = [1, 0, 0], sizes = [8, 8, 64], strides = [1, 1, 1]} : vector<12x8x64xbf16> to vector<8x8x64xbf16>
    %102 = vector.shape_cast %101 : vector<8x8x64xbf16> to vector<64x64xbf16>
    %c1_61 = arith.constant 1 : index
    %c0_62 = arith.constant 0 : index
    %c0_63 = arith.constant 0 : index
    %103 = vector.load %arg4[%c1_61, %c0_62, %c0_63] : memref<5x64x128xbf16, #tpu.memory_space<vmem>>, vector<1x64x128xbf16>
    %104 = vector.shape_cast %103 : vector<1x64x128xbf16> to vector<64x128xbf16>
    %cst_64 = arith.constant dense<0.000000e+00> : vector<64x128xf32>
    %105 = tpu.matmul %102, %104, %cst_64 {dimension_numbers = #tpu.dot_dimension_numbers<[1], [0], [0], [1], [0, 0, 1, 1], [], []>} : vector<64x64xbf16>, vector<64x128xbf16>, vector<64x128xf32> -> vector<64x128xf32>
    %106 = arith.addf %100, %105 : vector<64x128xf32>
    %107 = vector.extract_strided_slice %93 {offsets = [2, 0, 0], sizes = [8, 8, 64], strides = [1, 1, 1]} : vector<12x8x64xbf16> to vector<8x8x64xbf16>
    %108 = vector.shape_cast %107 : vector<8x8x64xbf16> to vector<64x64xbf16>
    %c2_65 = arith.constant 2 : index
    %c0_66 = arith.constant 0 : index
    %c0_67 = arith.constant 0 : index
    %109 = vector.load %arg4[%c2_65, %c0_66, %c0_67] : memref<5x64x128xbf16, #tpu.memory_space<vmem>>, vector<1x64x128xbf16>
    %110 = vector.shape_cast %109 : vector<1x64x128xbf16> to vector<64x128xbf16>
    %cst_68 = arith.constant dense<0.000000e+00> : vector<64x128xf32>
    %111 = tpu.matmul %108, %110, %cst_68 {dimension_numbers = #tpu.dot_dimension_numbers<[1], [0], [0], [1], [0, 0, 1, 1], [], []>} : vector<64x64xbf16>, vector<64x128xbf16>, vector<64x128xf32> -> vector<64x128xf32>
    %112 = arith.addf %106, %111 : vector<64x128xf32>
    %113 = vector.extract_strided_slice %93 {offsets = [3, 0, 0], sizes = [8, 8, 64], strides = [1, 1, 1]} : vector<12x8x64xbf16> to vector<8x8x64xbf16>
    %114 = vector.shape_cast %113 : vector<8x8x64xbf16> to vector<64x64xbf16>
    %c3_69 = arith.constant 3 : index
    %c0_70 = arith.constant 0 : index
    %c0_71 = arith.constant 0 : index
    %115 = vector.load %arg4[%c3_69, %c0_70, %c0_71] : memref<5x64x128xbf16, #tpu.memory_space<vmem>>, vector<1x64x128xbf16>
    %116 = vector.shape_cast %115 : vector<1x64x128xbf16> to vector<64x128xbf16>
    %cst_72 = arith.constant dense<0.000000e+00> : vector<64x128xf32>
    %117 = tpu.matmul %114, %116, %cst_72 {dimension_numbers = #tpu.dot_dimension_numbers<[1], [0], [0], [1], [0, 0, 1, 1], [], []>} : vector<64x64xbf16>, vector<64x128xbf16>, vector<64x128xf32> -> vector<64x128xf32>
    %118 = arith.addf %112, %117 : vector<64x128xf32>
    %119 = vector.extract_strided_slice %93 {offsets = [4, 0, 0], sizes = [8, 8, 64], strides = [1, 1, 1]} : vector<12x8x64xbf16> to vector<8x8x64xbf16>
    %120 = vector.shape_cast %119 : vector<8x8x64xbf16> to vector<64x64xbf16>
    %c4_73 = arith.constant 4 : index
    %c0_74 = arith.constant 0 : index
    %c0_75 = arith.constant 0 : index
    %121 = vector.load %arg4[%c4_73, %c0_74, %c0_75] : memref<5x64x128xbf16, #tpu.memory_space<vmem>>, vector<1x64x128xbf16>
    %122 = vector.shape_cast %121 : vector<1x64x128xbf16> to vector<64x128xbf16>
    %cst_76 = arith.constant dense<0.000000e+00> : vector<64x128xf32>
    %123 = tpu.matmul %120, %122, %cst_76 {dimension_numbers = #tpu.dot_dimension_numbers<[1], [0], [0], [1], [0, 0, 1, 1], [], []>} : vector<64x64xbf16>, vector<64x128xbf16>, vector<64x128xf32> -> vector<64x128xf32>
    %124 = arith.addf %118, %123 : vector<64x128xf32>
    %125 = vector.shape_cast %124 : vector<64x128xf32> to vector<8x8x128xf32>
    %126 = arith.truncf %125 : vector<8x8x128xf32> to vector<8x8x128xbf16>
    %c16 = arith.constant 16 : index
    %c0_77 = arith.constant 0 : index
    %c0_78 = arith.constant 0 : index
    %127 = vector.load %arg5[%c16, %c0_77, %c0_78] : memref<24x8x128xbf16, #tpu.memory_space<vmem>>, vector<8x8x128xbf16>
    tpu.vector_store %arg5[%c16, %c0_77, %c0_78], %126 {strides = array<i32>} : memref<24x8x128xbf16, #tpu.memory_space<vmem>>, vector<8x8x128xbf16>,
    %cst_79 = arith.constant dense<0.000000e+00> : vector<128xf32>
    %128 = vector.multi_reduction <add>, %124, %cst_79 [0] : vector<64x128xf32> to vector<128xf32>
    %129 = vector.shape_cast %128 : vector<128xf32> to vector<1x128xf32>
    %130 = arith.mulf %124, %124 : vector<64x128xf32>
    %cst_80 = arith.constant dense<0.000000e+00> : vector<128xf32>
    %131 = vector.multi_reduction <add>, %130, %cst_80 [0] : vector<64x128xf32> to vector<128xf32>
    %132 = vector.shape_cast %131 : vector<128xf32> to vector<1x128xf32>
    %133 = arith.addf %90, %129 : vector<1x128xf32>
    %134 = arith.addf %91, %132 : vector<1x128xf32>
    %135 = tpu.concatenate %133, %134 in 0 : vector<1x128xf32>, vector<1x128xf32> -> vector<2x128xf32>
    %136 = vector.shape_cast %135 : vector<2x128xf32> to vector<1x2x128xf32>
    %c0_81 = arith.constant 0 : index
    %c0_82 = arith.constant 0 : index
    %c0_83 = arith.constant 0 : index
    %137 = vector.load %arg6[%c0_81, %c0_82, %c0_83] : memref<1x2x128xf32, #tpu.memory_space<vmem>>, vector<1x2x128xf32>
    tpu.vector_store %arg6[%c0_81, %c0_82, %c0_83], %136 {strides = array<i32>} : memref<1x2x128xf32, #tpu.memory_space<vmem>>, vector<1x2x128xf32>,
    return
  }
  func.func @transform_0(%arg0: i32) -> (i32, i32, i32) {
    %c0_i32 = arith.constant 0 : i32
    %c0_i32_0 = arith.constant 0 : i32
    %c0_i32_1 = arith.constant 0 : i32
    return %c0_i32, %arg0, %c0_i32_0 : i32, i32, i32
  }
  func.func @transform_1(%arg0: i32) -> (i32, i32) {
    %c0_i32 = arith.constant 0 : i32
    %c0_i32_0 = arith.constant 0 : i32
    %c0_i32_1 = arith.constant 0 : i32
    return %c0_i32, %c0_i32_0 : i32, i32
  }
  func.func @transform_2(%arg0: i32) -> (i32, i32) {
    %c0_i32 = arith.constant 0 : i32
    %c0_i32_0 = arith.constant 0 : i32
    %c0_i32_1 = arith.constant 0 : i32
    return %c0_i32, %c0_i32_0 : i32, i32
  }
  func.func @transform_3(%arg0: i32) -> (i32, i32, i32) {
    %c0_i32 = arith.constant 0 : i32
    %c0_i32_0 = arith.constant 0 : i32
    %c0_i32_1 = arith.constant 0 : i32
    %c0_i32_2 = arith.constant 0 : i32
    return %c0_i32, %c0_i32_0, %c0_i32_1 : i32, i32, i32
  }
  func.func @transform_4(%arg0: i32) -> (i32, i32, i32) {
    %c0_i32 = arith.constant 0 : i32
    %c0_i32_0 = arith.constant 0 : i32
    %c0_i32_1 = arith.constant 0 : i32
    return %c0_i32, %arg0, %c0_i32_0 : i32, i32, i32
  }
  func.func @transform_5(%arg0: i32) -> (i32, i32, i32) {
    %c0_i32 = arith.constant 0 : i32
    %c0_i32_0 = arith.constant 0 : i32
    %c0_i32_1 = arith.constant 0 : i32
    return %arg0, %c0_i32, %c0_i32_0 : i32, i32, i32
  }
}

module attributes {stable_mosaic.version = 11 : i64} {
  func.func @_conv_kernel(%arg0: i32, %arg1: memref<24x8x128xbf16, #tpu.memory_space<vmem>>, %arg2: memref<1x128xf32, #tpu.memory_space<vmem>>, %arg3: memref<1x128xf32, #tpu.memory_space<vmem>>, %arg4: memref<5x128x128xbf16, #tpu.memory_space<vmem>>, %arg5: memref<24x8x128xbf16, #tpu.memory_space<vmem>>, %arg6: memref<1x2x128xf32, #tpu.memory_space<vmem>>) attributes {dimension_semantics = [#tpu.dimension_semantics<parallel>], iteration_bounds = array<i64: 2>, scalar_prefetch = 0 : i64, scratch_operands = 0 : i64, tpu.core_type = #tpu.core_type<tc>, window_params = [{transform_indices = @transform_0, window_bounds = array<i64: 24, 8, 128>}, {pipeline_mode = #tpu.pipeline_mode<synchronous>, transform_indices = @transform_1, window_bounds = array<i64: 1, 128>}, {pipeline_mode = #tpu.pipeline_mode<synchronous>, transform_indices = @transform_2, window_bounds = array<i64: 1, 128>}, {pipeline_mode = #tpu.pipeline_mode<synchronous>, transform_indices = @transform_3, window_bounds = array<i64: 5, 128, 128>}, {transform_indices = @transform_4, window_bounds = array<i64: 24, 8, 128>}, {transform_indices = @transform_5, window_bounds = array<i64: 1, 2, 128>}]} {
    %c0 = arith.constant 0 : index
    %c0_0 = arith.constant 0 : index
    %0 = vector.load %arg2[%c0, %c0_0] : memref<1x128xf32, #tpu.memory_space<vmem>>, vector<1x128xf32>
    %c0_1 = arith.constant 0 : index
    %c0_2 = arith.constant 0 : index
    %1 = vector.load %arg3[%c0_1, %c0_2] : memref<1x128xf32, #tpu.memory_space<vmem>>, vector<1x128xf32>
    %cst = arith.constant 0.000000e+00 : bf16
    %2 = vector.broadcast %cst : bf16 to vector<2x8x128xbf16>
    %cst_3 = arith.constant 0.000000e+00 : f32
    %3 = vector.broadcast %cst_3 : f32 to vector<1x128xf32>
    %cst_4 = arith.constant 0.000000e+00 : f32
    %4 = vector.broadcast %cst_4 : f32 to vector<1x128xf32>
    %c0_5 = arith.constant 0 : index
    %c0_6 = arith.constant 0 : index
    %c0_7 = arith.constant 0 : index
    %5 = vector.load %arg1[%c0_5, %c0_6, %c0_7] : memref<24x8x128xbf16, #tpu.memory_space<vmem>>, vector<10x8x128xbf16>
    %6 = arith.extf %5 : vector<10x8x128xbf16> to vector<10x8x128xf32>
    %7 = vector.shape_cast %0 : vector<1x128xf32> to vector<1x1x128xf32>
    %8 = vector.broadcast %7 : vector<1x1x128xf32> to vector<10x8x128xf32>
    %9 = arith.mulf %6, %8 : vector<10x8x128xf32>
    %10 = vector.shape_cast %1 : vector<1x128xf32> to vector<1x1x128xf32>
    %11 = vector.broadcast %10 : vector<1x1x128xf32> to vector<10x8x128xf32>
    %12 = arith.addf %9, %11 : vector<10x8x128xf32>
    %cst_8 = arith.constant 0.000000e+00 : f32
    %13 = vector.broadcast %cst_8 : f32 to vector<10x8x128xf32>
    %14 = arith.maximumf %12, %13 : vector<10x8x128xf32>
    %15 = arith.truncf %14 : vector<10x8x128xf32> to vector<10x8x128xbf16>
    %16 = tpu.concatenate %2, %15 in 0 : vector<2x8x128xbf16>, vector<10x8x128xbf16> -> vector<12x8x128xbf16>
    %cst_9 = arith.constant 0.000000e+00 : f32
    %17 = vector.broadcast %cst_9 : f32 to vector<64x128xf32>
    %18 = vector.extract_strided_slice %16 {offsets = [0, 0, 0], sizes = [8, 8, 128], strides = [1, 1, 1]} : vector<12x8x128xbf16> to vector<8x8x128xbf16>
    %19 = vector.shape_cast %18 : vector<8x8x128xbf16> to vector<64x128xbf16>
    %c0_10 = arith.constant 0 : index
    %c0_11 = arith.constant 0 : index
    %c0_12 = arith.constant 0 : index
    %20 = vector.load %arg4[%c0_10, %c0_11, %c0_12] : memref<5x128x128xbf16, #tpu.memory_space<vmem>>, vector<1x128x128xbf16>
    %21 = vector.shape_cast %20 : vector<1x128x128xbf16> to vector<128x128xbf16>
    %cst_13 = arith.constant dense<0.000000e+00> : vector<64x128xf32>
    %22 = tpu.matmul %19, %21, %cst_13 {dimension_numbers = #tpu.dot_dimension_numbers<[1], [0], [0], [1], [0, 0, 1, 1], [], []>} : vector<64x128xbf16>, vector<128x128xbf16>, vector<64x128xf32> -> vector<64x128xf32>
    %23 = arith.addf %17, %22 : vector<64x128xf32>
    %24 = vector.extract_strided_slice %16 {offsets = [1, 0, 0], sizes = [8, 8, 128], strides = [1, 1, 1]} : vector<12x8x128xbf16> to vector<8x8x128xbf16>
    %25 = vector.shape_cast %24 : vector<8x8x128xbf16> to vector<64x128xbf16>
    %c1 = arith.constant 1 : index
    %c0_14 = arith.constant 0 : index
    %c0_15 = arith.constant 0 : index
    %26 = vector.load %arg4[%c1, %c0_14, %c0_15] : memref<5x128x128xbf16, #tpu.memory_space<vmem>>, vector<1x128x128xbf16>
    %27 = vector.shape_cast %26 : vector<1x128x128xbf16> to vector<128x128xbf16>
    %cst_16 = arith.constant dense<0.000000e+00> : vector<64x128xf32>
    %28 = tpu.matmul %25, %27, %cst_16 {dimension_numbers = #tpu.dot_dimension_numbers<[1], [0], [0], [1], [0, 0, 1, 1], [], []>} : vector<64x128xbf16>, vector<128x128xbf16>, vector<64x128xf32> -> vector<64x128xf32>
    %29 = arith.addf %23, %28 : vector<64x128xf32>
    %30 = vector.extract_strided_slice %16 {offsets = [2, 0, 0], sizes = [8, 8, 128], strides = [1, 1, 1]} : vector<12x8x128xbf16> to vector<8x8x128xbf16>
    %31 = vector.shape_cast %30 : vector<8x8x128xbf16> to vector<64x128xbf16>
    %c2 = arith.constant 2 : index
    %c0_17 = arith.constant 0 : index
    %c0_18 = arith.constant 0 : index
    %32 = vector.load %arg4[%c2, %c0_17, %c0_18] : memref<5x128x128xbf16, #tpu.memory_space<vmem>>, vector<1x128x128xbf16>
    %33 = vector.shape_cast %32 : vector<1x128x128xbf16> to vector<128x128xbf16>
    %cst_19 = arith.constant dense<0.000000e+00> : vector<64x128xf32>
    %34 = tpu.matmul %31, %33, %cst_19 {dimension_numbers = #tpu.dot_dimension_numbers<[1], [0], [0], [1], [0, 0, 1, 1], [], []>} : vector<64x128xbf16>, vector<128x128xbf16>, vector<64x128xf32> -> vector<64x128xf32>
    %35 = arith.addf %29, %34 : vector<64x128xf32>
    %36 = vector.extract_strided_slice %16 {offsets = [3, 0, 0], sizes = [8, 8, 128], strides = [1, 1, 1]} : vector<12x8x128xbf16> to vector<8x8x128xbf16>
    %37 = vector.shape_cast %36 : vector<8x8x128xbf16> to vector<64x128xbf16>
    %c3 = arith.constant 3 : index
    %c0_20 = arith.constant 0 : index
    %c0_21 = arith.constant 0 : index
    %38 = vector.load %arg4[%c3, %c0_20, %c0_21] : memref<5x128x128xbf16, #tpu.memory_space<vmem>>, vector<1x128x128xbf16>
    %39 = vector.shape_cast %38 : vector<1x128x128xbf16> to vector<128x128xbf16>
    %cst_22 = arith.constant dense<0.000000e+00> : vector<64x128xf32>
    %40 = tpu.matmul %37, %39, %cst_22 {dimension_numbers = #tpu.dot_dimension_numbers<[1], [0], [0], [1], [0, 0, 1, 1], [], []>} : vector<64x128xbf16>, vector<128x128xbf16>, vector<64x128xf32> -> vector<64x128xf32>
    %41 = arith.addf %35, %40 : vector<64x128xf32>
    %42 = vector.extract_strided_slice %16 {offsets = [4, 0, 0], sizes = [8, 8, 128], strides = [1, 1, 1]} : vector<12x8x128xbf16> to vector<8x8x128xbf16>
    %43 = vector.shape_cast %42 : vector<8x8x128xbf16> to vector<64x128xbf16>
    %c4 = arith.constant 4 : index
    %c0_23 = arith.constant 0 : index
    %c0_24 = arith.constant 0 : index
    %44 = vector.load %arg4[%c4, %c0_23, %c0_24] : memref<5x128x128xbf16, #tpu.memory_space<vmem>>, vector<1x128x128xbf16>
    %45 = vector.shape_cast %44 : vector<1x128x128xbf16> to vector<128x128xbf16>
    %cst_25 = arith.constant dense<0.000000e+00> : vector<64x128xf32>
    %46 = tpu.matmul %43, %45, %cst_25 {dimension_numbers = #tpu.dot_dimension_numbers<[1], [0], [0], [1], [0, 0, 1, 1], [], []>} : vector<64x128xbf16>, vector<128x128xbf16>, vector<64x128xf32> -> vector<64x128xf32>
    %47 = arith.addf %41, %46 : vector<64x128xf32>
    %48 = vector.shape_cast %47 : vector<64x128xf32> to vector<8x8x128xf32>
    %49 = arith.truncf %48 : vector<8x8x128xf32> to vector<8x8x128xbf16>
    %c0_26 = arith.constant 0 : index
    %c0_27 = arith.constant 0 : index
    %c0_28 = arith.constant 0 : index
    %50 = vector.load %arg5[%c0_26, %c0_27, %c0_28] : memref<24x8x128xbf16, #tpu.memory_space<vmem>>, vector<8x8x128xbf16>
    tpu.vector_store %arg5[%c0_26, %c0_27, %c0_28], %49 {strides = array<i32>} : memref<24x8x128xbf16, #tpu.memory_space<vmem>>, vector<8x8x128xbf16>,
    %cst_29 = arith.constant dense<0.000000e+00> : vector<128xf32>
    %51 = vector.multi_reduction <add>, %47, %cst_29 [0] : vector<64x128xf32> to vector<128xf32>
    %52 = vector.shape_cast %51 : vector<128xf32> to vector<1x128xf32>
    %53 = arith.mulf %47, %47 : vector<64x128xf32>
    %cst_30 = arith.constant dense<0.000000e+00> : vector<128xf32>
    %54 = vector.multi_reduction <add>, %53, %cst_30 [0] : vector<64x128xf32> to vector<128xf32>
    %55 = vector.shape_cast %54 : vector<128xf32> to vector<1x128xf32>
    %56 = arith.addf %3, %52 : vector<1x128xf32>
    %57 = arith.addf %4, %55 : vector<1x128xf32>
    %c1_i32 = arith.constant 1 : i32
    %c8_i32 = arith.constant 8 : i32
    %58 = arith.muli %c1_i32, %c8_i32 : i32
    %c2_i32 = arith.constant 2 : i32
    %59 = arith.subi %58, %c2_i32 : i32
    %60 = arith.index_cast %59 : i32 to index
    %c0_31 = arith.constant 0 : index
    %c0_32 = arith.constant 0 : index
    %61 = vector.load %arg1[%60, %c0_31, %c0_32] : memref<24x8x128xbf16, #tpu.memory_space<vmem>>, vector<12x8x128xbf16>
    %62 = arith.extf %61 : vector<12x8x128xbf16> to vector<12x8x128xf32>
    %63 = vector.shape_cast %0 : vector<1x128xf32> to vector<1x1x128xf32>
    %64 = vector.broadcast %63 : vector<1x1x128xf32> to vector<12x8x128xf32>
    %65 = arith.mulf %62, %64 : vector<12x8x128xf32>
    %66 = vector.shape_cast %1 : vector<1x128xf32> to vector<1x1x128xf32>
    %67 = vector.broadcast %66 : vector<1x1x128xf32> to vector<12x8x128xf32>
    %68 = arith.addf %65, %67 : vector<12x8x128xf32>
    %cst_33 = arith.constant 0.000000e+00 : f32
    %69 = vector.broadcast %cst_33 : f32 to vector<12x8x128xf32>
    %70 = arith.maximumf %68, %69 : vector<12x8x128xf32>
    %71 = arith.truncf %70 : vector<12x8x128xf32> to vector<12x8x128xbf16>
    %cst_34 = arith.constant 0.000000e+00 : f32
    %72 = vector.broadcast %cst_34 : f32 to vector<64x128xf32>
    %73 = vector.extract_strided_slice %71 {offsets = [0, 0, 0], sizes = [8, 8, 128], strides = [1, 1, 1]} : vector<12x8x128xbf16> to vector<8x8x128xbf16>
    %74 = vector.shape_cast %73 : vector<8x8x128xbf16> to vector<64x128xbf16>
    %c0_35 = arith.constant 0 : index
    %c0_36 = arith.constant 0 : index
    %c0_37 = arith.constant 0 : index
    %75 = vector.load %arg4[%c0_35, %c0_36, %c0_37] : memref<5x128x128xbf16, #tpu.memory_space<vmem>>, vector<1x128x128xbf16>
    %76 = vector.shape_cast %75 : vector<1x128x128xbf16> to vector<128x128xbf16>
    %cst_38 = arith.constant dense<0.000000e+00> : vector<64x128xf32>
    %77 = tpu.matmul %74, %76, %cst_38 {dimension_numbers = #tpu.dot_dimension_numbers<[1], [0], [0], [1], [0, 0, 1, 1], [], []>} : vector<64x128xbf16>, vector<128x128xbf16>, vector<64x128xf32> -> vector<64x128xf32>
    %78 = arith.addf %72, %77 : vector<64x128xf32>
    %79 = vector.extract_strided_slice %71 {offsets = [1, 0, 0], sizes = [8, 8, 128], strides = [1, 1, 1]} : vector<12x8x128xbf16> to vector<8x8x128xbf16>
    %80 = vector.shape_cast %79 : vector<8x8x128xbf16> to vector<64x128xbf16>
    %c1_39 = arith.constant 1 : index
    %c0_40 = arith.constant 0 : index
    %c0_41 = arith.constant 0 : index
    %81 = vector.load %arg4[%c1_39, %c0_40, %c0_41] : memref<5x128x128xbf16, #tpu.memory_space<vmem>>, vector<1x128x128xbf16>
    %82 = vector.shape_cast %81 : vector<1x128x128xbf16> to vector<128x128xbf16>
    %cst_42 = arith.constant dense<0.000000e+00> : vector<64x128xf32>
    %83 = tpu.matmul %80, %82, %cst_42 {dimension_numbers = #tpu.dot_dimension_numbers<[1], [0], [0], [1], [0, 0, 1, 1], [], []>} : vector<64x128xbf16>, vector<128x128xbf16>, vector<64x128xf32> -> vector<64x128xf32>
    %84 = arith.addf %78, %83 : vector<64x128xf32>
    %85 = vector.extract_strided_slice %71 {offsets = [2, 0, 0], sizes = [8, 8, 128], strides = [1, 1, 1]} : vector<12x8x128xbf16> to vector<8x8x128xbf16>
    %86 = vector.shape_cast %85 : vector<8x8x128xbf16> to vector<64x128xbf16>
    %c2_43 = arith.constant 2 : index
    %c0_44 = arith.constant 0 : index
    %c0_45 = arith.constant 0 : index
    %87 = vector.load %arg4[%c2_43, %c0_44, %c0_45] : memref<5x128x128xbf16, #tpu.memory_space<vmem>>, vector<1x128x128xbf16>
    %88 = vector.shape_cast %87 : vector<1x128x128xbf16> to vector<128x128xbf16>
    %cst_46 = arith.constant dense<0.000000e+00> : vector<64x128xf32>
    %89 = tpu.matmul %86, %88, %cst_46 {dimension_numbers = #tpu.dot_dimension_numbers<[1], [0], [0], [1], [0, 0, 1, 1], [], []>} : vector<64x128xbf16>, vector<128x128xbf16>, vector<64x128xf32> -> vector<64x128xf32>
    %90 = arith.addf %84, %89 : vector<64x128xf32>
    %91 = vector.extract_strided_slice %71 {offsets = [3, 0, 0], sizes = [8, 8, 128], strides = [1, 1, 1]} : vector<12x8x128xbf16> to vector<8x8x128xbf16>
    %92 = vector.shape_cast %91 : vector<8x8x128xbf16> to vector<64x128xbf16>
    %c3_47 = arith.constant 3 : index
    %c0_48 = arith.constant 0 : index
    %c0_49 = arith.constant 0 : index
    %93 = vector.load %arg4[%c3_47, %c0_48, %c0_49] : memref<5x128x128xbf16, #tpu.memory_space<vmem>>, vector<1x128x128xbf16>
    %94 = vector.shape_cast %93 : vector<1x128x128xbf16> to vector<128x128xbf16>
    %cst_50 = arith.constant dense<0.000000e+00> : vector<64x128xf32>
    %95 = tpu.matmul %92, %94, %cst_50 {dimension_numbers = #tpu.dot_dimension_numbers<[1], [0], [0], [1], [0, 0, 1, 1], [], []>} : vector<64x128xbf16>, vector<128x128xbf16>, vector<64x128xf32> -> vector<64x128xf32>
    %96 = arith.addf %90, %95 : vector<64x128xf32>
    %97 = vector.extract_strided_slice %71 {offsets = [4, 0, 0], sizes = [8, 8, 128], strides = [1, 1, 1]} : vector<12x8x128xbf16> to vector<8x8x128xbf16>
    %98 = vector.shape_cast %97 : vector<8x8x128xbf16> to vector<64x128xbf16>
    %c4_51 = arith.constant 4 : index
    %c0_52 = arith.constant 0 : index
    %c0_53 = arith.constant 0 : index
    %99 = vector.load %arg4[%c4_51, %c0_52, %c0_53] : memref<5x128x128xbf16, #tpu.memory_space<vmem>>, vector<1x128x128xbf16>
    %100 = vector.shape_cast %99 : vector<1x128x128xbf16> to vector<128x128xbf16>
    %cst_54 = arith.constant dense<0.000000e+00> : vector<64x128xf32>
    %101 = tpu.matmul %98, %100, %cst_54 {dimension_numbers = #tpu.dot_dimension_numbers<[1], [0], [0], [1], [0, 0, 1, 1], [], []>} : vector<64x128xbf16>, vector<128x128xbf16>, vector<64x128xf32> -> vector<64x128xf32>
    %102 = arith.addf %96, %101 : vector<64x128xf32>
    %103 = vector.shape_cast %102 : vector<64x128xf32> to vector<8x8x128xf32>
    %104 = arith.truncf %103 : vector<8x8x128xf32> to vector<8x8x128xbf16>
    %105 = arith.index_cast %58 : i32 to index
    %c0_55 = arith.constant 0 : index
    %c0_56 = arith.constant 0 : index
    %106 = vector.load %arg5[%105, %c0_55, %c0_56] : memref<24x8x128xbf16, #tpu.memory_space<vmem>>, vector<8x8x128xbf16>
    tpu.vector_store %arg5[%105, %c0_55, %c0_56], %104 {strides = array<i32>} : memref<24x8x128xbf16, #tpu.memory_space<vmem>>, vector<8x8x128xbf16>,
    %cst_57 = arith.constant dense<0.000000e+00> : vector<128xf32>
    %107 = vector.multi_reduction <add>, %102, %cst_57 [0] : vector<64x128xf32> to vector<128xf32>
    %108 = vector.shape_cast %107 : vector<128xf32> to vector<1x128xf32>
    %109 = arith.mulf %102, %102 : vector<64x128xf32>
    %cst_58 = arith.constant dense<0.000000e+00> : vector<128xf32>
    %110 = vector.multi_reduction <add>, %109, %cst_58 [0] : vector<64x128xf32> to vector<128xf32>
    %111 = vector.shape_cast %110 : vector<128xf32> to vector<1x128xf32>
    %112 = arith.addf %56, %108 : vector<1x128xf32>
    %113 = arith.addf %57, %111 : vector<1x128xf32>
    %c1_i32_59 = arith.constant 1 : i32
    %c14 = arith.constant 14 : index
    %c0_60 = arith.constant 0 : index
    %c0_61 = arith.constant 0 : index
    %114 = vector.load %arg1[%c14, %c0_60, %c0_61] : memref<24x8x128xbf16, #tpu.memory_space<vmem>>, vector<10x8x128xbf16>
    %115 = arith.extf %114 : vector<10x8x128xbf16> to vector<10x8x128xf32>
    %116 = vector.shape_cast %0 : vector<1x128xf32> to vector<1x1x128xf32>
    %117 = vector.broadcast %116 : vector<1x1x128xf32> to vector<10x8x128xf32>
    %118 = arith.mulf %115, %117 : vector<10x8x128xf32>
    %119 = vector.shape_cast %1 : vector<1x128xf32> to vector<1x1x128xf32>
    %120 = vector.broadcast %119 : vector<1x1x128xf32> to vector<10x8x128xf32>
    %121 = arith.addf %118, %120 : vector<10x8x128xf32>
    %cst_62 = arith.constant 0.000000e+00 : f32
    %122 = vector.broadcast %cst_62 : f32 to vector<10x8x128xf32>
    %123 = arith.maximumf %121, %122 : vector<10x8x128xf32>
    %124 = arith.truncf %123 : vector<10x8x128xf32> to vector<10x8x128xbf16>
    %125 = tpu.concatenate %124, %2 in 0 : vector<10x8x128xbf16>, vector<2x8x128xbf16> -> vector<12x8x128xbf16>
    %cst_63 = arith.constant 0.000000e+00 : f32
    %126 = vector.broadcast %cst_63 : f32 to vector<64x128xf32>
    %127 = vector.extract_strided_slice %125 {offsets = [0, 0, 0], sizes = [8, 8, 128], strides = [1, 1, 1]} : vector<12x8x128xbf16> to vector<8x8x128xbf16>
    %128 = vector.shape_cast %127 : vector<8x8x128xbf16> to vector<64x128xbf16>
    %c0_64 = arith.constant 0 : index
    %c0_65 = arith.constant 0 : index
    %c0_66 = arith.constant 0 : index
    %129 = vector.load %arg4[%c0_64, %c0_65, %c0_66] : memref<5x128x128xbf16, #tpu.memory_space<vmem>>, vector<1x128x128xbf16>
    %130 = vector.shape_cast %129 : vector<1x128x128xbf16> to vector<128x128xbf16>
    %cst_67 = arith.constant dense<0.000000e+00> : vector<64x128xf32>
    %131 = tpu.matmul %128, %130, %cst_67 {dimension_numbers = #tpu.dot_dimension_numbers<[1], [0], [0], [1], [0, 0, 1, 1], [], []>} : vector<64x128xbf16>, vector<128x128xbf16>, vector<64x128xf32> -> vector<64x128xf32>
    %132 = arith.addf %126, %131 : vector<64x128xf32>
    %133 = vector.extract_strided_slice %125 {offsets = [1, 0, 0], sizes = [8, 8, 128], strides = [1, 1, 1]} : vector<12x8x128xbf16> to vector<8x8x128xbf16>
    %134 = vector.shape_cast %133 : vector<8x8x128xbf16> to vector<64x128xbf16>
    %c1_68 = arith.constant 1 : index
    %c0_69 = arith.constant 0 : index
    %c0_70 = arith.constant 0 : index
    %135 = vector.load %arg4[%c1_68, %c0_69, %c0_70] : memref<5x128x128xbf16, #tpu.memory_space<vmem>>, vector<1x128x128xbf16>
    %136 = vector.shape_cast %135 : vector<1x128x128xbf16> to vector<128x128xbf16>
    %cst_71 = arith.constant dense<0.000000e+00> : vector<64x128xf32>
    %137 = tpu.matmul %134, %136, %cst_71 {dimension_numbers = #tpu.dot_dimension_numbers<[1], [0], [0], [1], [0, 0, 1, 1], [], []>} : vector<64x128xbf16>, vector<128x128xbf16>, vector<64x128xf32> -> vector<64x128xf32>
    %138 = arith.addf %132, %137 : vector<64x128xf32>
    %139 = vector.extract_strided_slice %125 {offsets = [2, 0, 0], sizes = [8, 8, 128], strides = [1, 1, 1]} : vector<12x8x128xbf16> to vector<8x8x128xbf16>
    %140 = vector.shape_cast %139 : vector<8x8x128xbf16> to vector<64x128xbf16>
    %c2_72 = arith.constant 2 : index
    %c0_73 = arith.constant 0 : index
    %c0_74 = arith.constant 0 : index
    %141 = vector.load %arg4[%c2_72, %c0_73, %c0_74] : memref<5x128x128xbf16, #tpu.memory_space<vmem>>, vector<1x128x128xbf16>
    %142 = vector.shape_cast %141 : vector<1x128x128xbf16> to vector<128x128xbf16>
    %cst_75 = arith.constant dense<0.000000e+00> : vector<64x128xf32>
    %143 = tpu.matmul %140, %142, %cst_75 {dimension_numbers = #tpu.dot_dimension_numbers<[1], [0], [0], [1], [0, 0, 1, 1], [], []>} : vector<64x128xbf16>, vector<128x128xbf16>, vector<64x128xf32> -> vector<64x128xf32>
    %144 = arith.addf %138, %143 : vector<64x128xf32>
    %145 = vector.extract_strided_slice %125 {offsets = [3, 0, 0], sizes = [8, 8, 128], strides = [1, 1, 1]} : vector<12x8x128xbf16> to vector<8x8x128xbf16>
    %146 = vector.shape_cast %145 : vector<8x8x128xbf16> to vector<64x128xbf16>
    %c3_76 = arith.constant 3 : index
    %c0_77 = arith.constant 0 : index
    %c0_78 = arith.constant 0 : index
    %147 = vector.load %arg4[%c3_76, %c0_77, %c0_78] : memref<5x128x128xbf16, #tpu.memory_space<vmem>>, vector<1x128x128xbf16>
    %148 = vector.shape_cast %147 : vector<1x128x128xbf16> to vector<128x128xbf16>
    %cst_79 = arith.constant dense<0.000000e+00> : vector<64x128xf32>
    %149 = tpu.matmul %146, %148, %cst_79 {dimension_numbers = #tpu.dot_dimension_numbers<[1], [0], [0], [1], [0, 0, 1, 1], [], []>} : vector<64x128xbf16>, vector<128x128xbf16>, vector<64x128xf32> -> vector<64x128xf32>
    %150 = arith.addf %144, %149 : vector<64x128xf32>
    %151 = vector.extract_strided_slice %125 {offsets = [4, 0, 0], sizes = [8, 8, 128], strides = [1, 1, 1]} : vector<12x8x128xbf16> to vector<8x8x128xbf16>
    %152 = vector.shape_cast %151 : vector<8x8x128xbf16> to vector<64x128xbf16>
    %c4_80 = arith.constant 4 : index
    %c0_81 = arith.constant 0 : index
    %c0_82 = arith.constant 0 : index
    %153 = vector.load %arg4[%c4_80, %c0_81, %c0_82] : memref<5x128x128xbf16, #tpu.memory_space<vmem>>, vector<1x128x128xbf16>
    %154 = vector.shape_cast %153 : vector<1x128x128xbf16> to vector<128x128xbf16>
    %cst_83 = arith.constant dense<0.000000e+00> : vector<64x128xf32>
    %155 = tpu.matmul %152, %154, %cst_83 {dimension_numbers = #tpu.dot_dimension_numbers<[1], [0], [0], [1], [0, 0, 1, 1], [], []>} : vector<64x128xbf16>, vector<128x128xbf16>, vector<64x128xf32> -> vector<64x128xf32>
    %156 = arith.addf %150, %155 : vector<64x128xf32>
    %157 = vector.shape_cast %156 : vector<64x128xf32> to vector<8x8x128xf32>
    %158 = arith.truncf %157 : vector<8x8x128xf32> to vector<8x8x128xbf16>
    %c16 = arith.constant 16 : index
    %c0_84 = arith.constant 0 : index
    %c0_85 = arith.constant 0 : index
    %159 = vector.load %arg5[%c16, %c0_84, %c0_85] : memref<24x8x128xbf16, #tpu.memory_space<vmem>>, vector<8x8x128xbf16>
    tpu.vector_store %arg5[%c16, %c0_84, %c0_85], %158 {strides = array<i32>} : memref<24x8x128xbf16, #tpu.memory_space<vmem>>, vector<8x8x128xbf16>,
    %cst_86 = arith.constant dense<0.000000e+00> : vector<128xf32>
    %160 = vector.multi_reduction <add>, %156, %cst_86 [0] : vector<64x128xf32> to vector<128xf32>
    %161 = vector.shape_cast %160 : vector<128xf32> to vector<1x128xf32>
    %162 = arith.mulf %156, %156 : vector<64x128xf32>
    %cst_87 = arith.constant dense<0.000000e+00> : vector<128xf32>
    %163 = vector.multi_reduction <add>, %162, %cst_87 [0] : vector<64x128xf32> to vector<128xf32>
    %164 = vector.shape_cast %163 : vector<128xf32> to vector<1x128xf32>
    %165 = arith.addf %112, %161 : vector<1x128xf32>
    %166 = arith.addf %113, %164 : vector<1x128xf32>
    %167 = tpu.concatenate %165, %166 in 0 : vector<1x128xf32>, vector<1x128xf32> -> vector<2x128xf32>
    %168 = vector.shape_cast %167 : vector<2x128xf32> to vector<1x2x128xf32>
    %c0_88 = arith.constant 0 : index
    %c0_89 = arith.constant 0 : index
    %c0_90 = arith.constant 0 : index
    %169 = vector.load %arg6[%c0_88, %c0_89, %c0_90] : memref<1x2x128xf32, #tpu.memory_space<vmem>>, vector<1x2x128xf32>
    tpu.vector_store %arg6[%c0_88, %c0_89, %c0_90], %168 {strides = array<i32>} : memref<1x2x128xf32, #tpu.memory_space<vmem>>, vector<1x2x128xf32>,
    return
  }
  func.func @transform_0(%arg0: i32) -> (i32, i32, i32) {
    %c0_i32 = arith.constant 0 : i32
    %c0_i32_0 = arith.constant 0 : i32
    %c0_i32_1 = arith.constant 0 : i32
    return %c0_i32, %arg0, %c0_i32_0 : i32, i32, i32
  }
  func.func @transform_1(%arg0: i32) -> (i32, i32) {
    %c0_i32 = arith.constant 0 : i32
    %c0_i32_0 = arith.constant 0 : i32
    %c0_i32_1 = arith.constant 0 : i32
    return %c0_i32, %c0_i32_0 : i32, i32
  }
  func.func @transform_2(%arg0: i32) -> (i32, i32) {
    %c0_i32 = arith.constant 0 : i32
    %c0_i32_0 = arith.constant 0 : i32
    %c0_i32_1 = arith.constant 0 : i32
    return %c0_i32, %c0_i32_0 : i32, i32
  }
  func.func @transform_3(%arg0: i32) -> (i32, i32, i32) {
    %c0_i32 = arith.constant 0 : i32
    %c0_i32_0 = arith.constant 0 : i32
    %c0_i32_1 = arith.constant 0 : i32
    %c0_i32_2 = arith.constant 0 : i32
    return %c0_i32, %c0_i32_0, %c0_i32_1 : i32, i32, i32
  }
  func.func @transform_4(%arg0: i32) -> (i32, i32, i32) {
    %c0_i32 = arith.constant 0 : i32
    %c0_i32_0 = arith.constant 0 : i32
    %c0_i32_1 = arith.constant 0 : i32
    return %c0_i32, %arg0, %c0_i32_0 : i32, i32, i32
  }
  func.func @transform_5(%arg0: i32) -> (i32, i32, i32) {
    %c0_i32 = arith.constant 0 : i32
    %c0_i32_0 = arith.constant 0 : i32
    %c0_i32_1 = arith.constant 0 : i32
    return %arg0, %c0_i32, %c0_i32_0 : i32, i32, i32
  }
}

module attributes {stable_mosaic.version = 11 : i64} {
  func.func @_bilstm_kernel(%arg0: i32, %arg1: i32, %arg2: memref<16x1xi32, #tpu.memory_space<vmem>>, %arg3: memref<8x16x128xbf16, #tpu.memory_space<vmem>>, %arg4: memref<1x128xf32, #tpu.memory_space<vmem>>, %arg5: memref<1x128xf32, #tpu.memory_space<vmem>>, %arg6: memref<1x128x512xbf16, #tpu.memory_space<vmem>>, %arg7: memref<1x1x512xf32, #tpu.memory_space<vmem>>, %arg8: memref<1x4x128x128xbf16, #tpu.memory_space<vmem>>, %arg9: memref<16x8x128xf32, #tpu.memory_space<vmem>>, %arg10: memref<16x128xf32, #tpu.memory_space<vmem>>, %arg11: memref<16x128xf32, #tpu.memory_space<vmem>>, %arg12: memref<8x16x512xf32, #tpu.memory_space<vmem>>, %arg13: memref<8x16x128xf32, #tpu.memory_space<vmem>>) attributes {dimension_semantics = [#tpu.dimension_semantics<parallel>, #tpu.dimension_semantics<arbitrary>], iteration_bounds = array<i64: 2, 3>, scalar_prefetch = 0 : i64, scratch_operands = 4 : i64, tpu.core_type = #tpu.core_type<tc>, window_params = [{pipeline_mode = #tpu.pipeline_mode<synchronous>, transform_indices = @transform_0, window_bounds = array<i64: 16, 1>}, {transform_indices = @transform_1, window_bounds = array<i64: 8, 16, 128>}, {pipeline_mode = #tpu.pipeline_mode<synchronous>, transform_indices = @transform_2, window_bounds = array<i64: 1, 128>}, {pipeline_mode = #tpu.pipeline_mode<synchronous>, transform_indices = @transform_3, window_bounds = array<i64: 1, 128>}, {transform_indices = @transform_4, window_bounds = array<i64: 1, 128, 512>}, {transform_indices = @transform_5, window_bounds = array<i64: 1, 1, 512>}, {transform_indices = @transform_6, window_bounds = array<i64: 1, 4, 128, 128>}, {transform_indices = @transform_7, window_bounds = array<i64: 16, 8, 128>}]} {
    %c0_i32 = arith.constant 0 : i32
    %0 = arith.cmpi eq, %arg1, %c0_i32 : i32
    %1 = arith.extui %0 : i1 to i32
    %c0_i32_0 = arith.constant 0 : i32
    %2 = arith.cmpi ne, %1, %c0_i32_0 : i32
    scf.if %2 {
      %cst_28 = arith.constant 0.000000e+00 : f32
      %35 = vector.broadcast %cst_28 : f32 to vector<16x128xf32>
      %c0_29 = arith.constant 0 : index
      %c0_30 = arith.constant 0 : index
      %36 = vector.load %arg10[%c0_29, %c0_30] : memref<16x128xf32, #tpu.memory_space<vmem>>, vector<16x128xf32>
      tpu.vector_store %arg10[%c0_29, %c0_30], %35 {strides = array<i32>} : memref<16x128xf32, #tpu.memory_space<vmem>>, vector<16x128xf32>,
      %cst_31 = arith.constant 0.000000e+00 : f32
      %37 = vector.broadcast %cst_31 : f32 to vector<16x128xf32>
      %c0_32 = arith.constant 0 : index
      %c0_33 = arith.constant 0 : index
      %38 = vector.load %arg11[%c0_32, %c0_33] : memref<16x128xf32, #tpu.memory_space<vmem>>, vector<16x128xf32>
      tpu.vector_store %arg11[%c0_32, %c0_33], %37 {strides = array<i32>} : memref<16x128xf32, #tpu.memory_space<vmem>>, vector<16x128xf32>,
    } else {
    }
    %c0 = arith.constant 0 : index
    %c0_1 = arith.constant 0 : index
    %c0_2 = arith.constant 0 : index
    %3 = vector.load %arg3[%c0, %c0_1, %c0_2] : memref<8x16x128xbf16, #tpu.memory_space<vmem>>, vector<8x16x128xbf16>
    %4 = arith.extf %3 : vector<8x16x128xbf16> to vector<8x16x128xf32>
    %c0_3 = arith.constant 0 : index
    %c0_4 = arith.constant 0 : index
    %5 = vector.load %arg4[%c0_3, %c0_4] : memref<1x128xf32, #tpu.memory_space<vmem>>, vector<1x128xf32>
    %6 = vector.shape_cast %5 : vector<1x128xf32> to vector<1x1x128xf32>
    %7 = vector.broadcast %6 : vector<1x1x128xf32> to vector<8x16x128xf32>
    %8 = arith.mulf %4, %7 : vector<8x16x128xf32>
    %c0_5 = arith.constant 0 : index
    %c0_6 = arith.constant 0 : index
    %9 = vector.load %arg5[%c0_5, %c0_6] : memref<1x128xf32, #tpu.memory_space<vmem>>, vector<1x128xf32>
    %10 = vector.shape_cast %9 : vector<1x128xf32> to vector<1x1x128xf32>
    %11 = vector.broadcast %10 : vector<1x1x128xf32> to vector<8x16x128xf32>
    %12 = arith.addf %8, %11 : vector<8x16x128xf32>
    %cst = arith.constant 0.000000e+00 : f32
    %13 = vector.broadcast %cst : f32 to vector<8x16x128xf32>
    %14 = arith.maximumf %12, %13 : vector<8x16x128xf32>
    %15 = arith.truncf %14 : vector<8x16x128xf32> to vector<8x16x128xbf16>
    %16 = vector.shape_cast %15 : vector<8x16x128xbf16> to vector<128x128xbf16>
    %c0_7 = arith.constant 0 : index
    %c0_8 = arith.constant 0 : index
    %c0_9 = arith.constant 0 : index
    %17 = vector.load %arg6[%c0_7, %c0_8, %c0_9] : memref<1x128x512xbf16, #tpu.memory_space<vmem>>, vector<1x128x512xbf16>
    %18 = vector.shape_cast %17 : vector<1x128x512xbf16> to vector<128x512xbf16>
    %cst_10 = arith.constant dense<0.000000e+00> : vector<128x512xf32>
    %19 = tpu.matmul %16, %18, %cst_10 {dimension_numbers = #tpu.dot_dimension_numbers<[1], [0], [0], [1], [0, 0, 1, 1], [], []>} : vector<128x128xbf16>, vector<128x512xbf16>, vector<128x512xf32> -> vector<128x512xf32>
    %c0_11 = arith.constant 0 : index
    %c0_12 = arith.constant 0 : index
    %c0_13 = arith.constant 0 : index
    %20 = vector.load %arg7[%c0_11, %c0_12, %c0_13] : memref<1x1x512xf32, #tpu.memory_space<vmem>>, vector<1x1x512xf32>
    %21 = vector.shape_cast %20 : vector<1x1x512xf32> to vector<1x512xf32>
    %22 = vector.broadcast %21 : vector<1x512xf32> to vector<128x512xf32>
    %23 = arith.addf %19, %22 : vector<128x512xf32>
    %24 = vector.shape_cast %23 : vector<128x512xf32> to vector<8x16x512xf32>
    %c0_14 = arith.constant 0 : index
    %c0_15 = arith.constant 0 : index
    %c0_16 = arith.constant 0 : index
    %25 = vector.load %arg12[%c0_14, %c0_15, %c0_16] : memref<8x16x512xf32, #tpu.memory_space<vmem>>, vector<8x16x512xf32>
    tpu.vector_store %arg12[%c0_14, %c0_15, %c0_16], %24 {strides = array<i32>} : memref<8x16x512xf32, #tpu.memory_space<vmem>>, vector<8x16x512xf32>,
    %c0_17 = arith.constant 0 : index
    %c0_18 = arith.constant 0 : index
    %26 = vector.load %arg2[%c0_17, %c0_18] : memref<16x1xi32, #tpu.memory_space<vmem>>, vector<16x1xi32>
    %c2_i32 = arith.constant 2 : i32
    %27 = arith.muli %c2_i32, %arg1 : i32
    %c2_i32_19 = arith.constant 2 : i32
    %28 = arith.subi %c2_i32_19, %27 : i32
    %29 = arith.muli %arg0, %28 : i32
    %30 = arith.addi %arg1, %29 : i32
    %c0_i32_20 = arith.constant 0 : i32
    %c8_i32 = arith.constant 8 : i32
    %31 = arith.addi %c0_i32_20, %c8_i32 : i32
    %c1_i32 = arith.constant 1 : i32
    scf.for %arg14 = %c0_i32_20 to %31 step %c1_i32  : i32 {
      %c2_i32_28 = arith.constant 2 : i32
      %35 = arith.muli %c2_i32_28, %arg14 : i32
      %c7_i32 = arith.constant 7 : i32
      %36 = arith.subi %c7_i32, %35 : i32
      %37 = arith.muli %arg0, %36 : i32
      %38 = arith.addi %arg14, %37 : i32
      %c8_i32_29 = arith.constant 8 : i32
      %39 = arith.muli %30, %c8_i32_29 : i32
      %40 = arith.addi %39, %38 : i32
      %c0_30 = arith.constant 0 : index
      %c0_31 = arith.constant 0 : index
      %41 = vector.load %arg10[%c0_30, %c0_31] : memref<16x128xf32, #tpu.memory_space<vmem>>, vector<16x128xf32>
      %42 = arith.truncf %41 : vector<16x128xf32> to vector<16x128xbf16>
      %43 = arith.index_cast %38 : i32 to index
      %c0_32 = arith.constant 0 : index
      %c0_33 = arith.constant 0 : index
      %44 = vector.load %arg12[%43, %c0_32, %c0_33] : memref<8x16x512xf32, #tpu.memory_space<vmem>>, vector<1x16x128xf32>
      %45 = vector.shape_cast %44 : vector<1x16x128xf32> to vector<16x128xf32>
      %c0_34 = arith.constant 0 : index
      %c0_35 = arith.constant 0 : index
      %c0_36 = arith.constant 0 : index
      %c0_37 = arith.constant 0 : index
      %46 = vector.load %arg8[%c0_34, %c0_35, %c0_36, %c0_37] : memref<1x4x128x128xbf16, #tpu.memory_space<vmem>>, vector<1x1x128x128xbf16>
      %47 = vector.shape_cast %46 : vector<1x1x128x128xbf16> to vector<128x128xbf16>
      %cst_38 = arith.constant dense<0.000000e+00> : vector<16x128xf32>
      %48 = tpu.matmul %42, %47, %cst_38 {dimension_numbers = #tpu.dot_dimension_numbers<[1], [0], [0], [1], [0, 0, 1, 1], [], []>} : vector<16x128xbf16>, vector<128x128xbf16>, vector<16x128xf32> -> vector<16x128xf32>
      %49 = arith.addf %45, %48 : vector<16x128xf32>
      %50 = arith.negf %49 : vector<16x128xf32>
      %51 = math.exp %50 : vector<16x128xf32>
      %cst_39 = arith.constant 1.000000e+00 : f32
      %52 = vector.broadcast %cst_39 : f32 to vector<16x128xf32>
      %53 = arith.addf %52, %51 : vector<16x128xf32>
      %54 = arith.divf %52, %53 : vector<16x128xf32>
      %55 = arith.index_cast %38 : i32 to index
      %c0_40 = arith.constant 0 : index
      %c128 = arith.constant 128 : index
      %56 = vector.load %arg12[%55, %c0_40, %c128] : memref<8x16x512xf32, #tpu.memory_space<vmem>>, vector<1x16x128xf32>
      %57 = vector.shape_cast %56 : vector<1x16x128xf32> to vector<16x128xf32>
      %c0_41 = arith.constant 0 : index
      %c1 = arith.constant 1 : index
      %c0_42 = arith.constant 0 : index
      %c0_43 = arith.constant 0 : index
      %58 = vector.load %arg8[%c0_41, %c1, %c0_42, %c0_43] : memref<1x4x128x128xbf16, #tpu.memory_space<vmem>>, vector<1x1x128x128xbf16>
      %59 = vector.shape_cast %58 : vector<1x1x128x128xbf16> to vector<128x128xbf16>
      %cst_44 = arith.constant dense<0.000000e+00> : vector<16x128xf32>
      %60 = tpu.matmul %42, %59, %cst_44 {dimension_numbers = #tpu.dot_dimension_numbers<[1], [0], [0], [1], [0, 0, 1, 1], [], []>} : vector<16x128xbf16>, vector<128x128xbf16>, vector<16x128xf32> -> vector<16x128xf32>
      %61 = arith.addf %57, %60 : vector<16x128xf32>
      %62 = arith.negf %61 : vector<16x128xf32>
      %63 = math.exp %62 : vector<16x128xf32>
      %cst_45 = arith.constant 1.000000e+00 : f32
      %64 = vector.broadcast %cst_45 : f32 to vector<16x128xf32>
      %65 = arith.addf %64, %63 : vector<16x128xf32>
      %66 = arith.divf %64, %65 : vector<16x128xf32>
      %67 = arith.index_cast %38 : i32 to index
      %c0_46 = arith.constant 0 : index
      %c256 = arith.constant 256 : index
      %68 = vector.load %arg12[%67, %c0_46, %c256] : memref<8x16x512xf32, #tpu.memory_space<vmem>>, vector<1x16x128xf32>
      %69 = vector.shape_cast %68 : vector<1x16x128xf32> to vector<16x128xf32>
      %c0_47 = arith.constant 0 : index
      %c2 = arith.constant 2 : index
      %c0_48 = arith.constant 0 : index
      %c0_49 = arith.constant 0 : index
      %70 = vector.load %arg8[%c0_47, %c2, %c0_48, %c0_49] : memref<1x4x128x128xbf16, #tpu.memory_space<vmem>>, vector<1x1x128x128xbf16>
      %71 = vector.shape_cast %70 : vector<1x1x128x128xbf16> to vector<128x128xbf16>
      %cst_50 = arith.constant dense<0.000000e+00> : vector<16x128xf32>
      %72 = tpu.matmul %42, %71, %cst_50 {dimension_numbers = #tpu.dot_dimension_numbers<[1], [0], [0], [1], [0, 0, 1, 1], [], []>} : vector<16x128xbf16>, vector<128x128xbf16>, vector<16x128xf32> -> vector<16x128xf32>
      %73 = arith.addf %69, %72 : vector<16x128xf32>
      %74 = math.tanh %73 : vector<16x128xf32>
      %75 = arith.index_cast %38 : i32 to index
      %c0_51 = arith.constant 0 : index
      %c384 = arith.constant 384 : index
      %76 = vector.load %arg12[%75, %c0_51, %c384] : memref<8x16x512xf32, #tpu.memory_space<vmem>>, vector<1x16x128xf32>
      %77 = vector.shape_cast %76 : vector<1x16x128xf32> to vector<16x128xf32>
      %c0_52 = arith.constant 0 : index
      %c3 = arith.constant 3 : index
      %c0_53 = arith.constant 0 : index
      %c0_54 = arith.constant 0 : index
      %78 = vector.load %arg8[%c0_52, %c3, %c0_53, %c0_54] : memref<1x4x128x128xbf16, #tpu.memory_space<vmem>>, vector<1x1x128x128xbf16>
      %79 = vector.shape_cast %78 : vector<1x1x128x128xbf16> to vector<128x128xbf16>
      %cst_55 = arith.constant dense<0.000000e+00> : vector<16x128xf32>
      %80 = tpu.matmul %42, %79, %cst_55 {dimension_numbers = #tpu.dot_dimension_numbers<[1], [0], [0], [1], [0, 0, 1, 1], [], []>} : vector<16x128xbf16>, vector<128x128xbf16>, vector<16x128xf32> -> vector<16x128xf32>
      %81 = arith.addf %77, %80 : vector<16x128xf32>
      %82 = arith.negf %81 : vector<16x128xf32>
      %83 = math.exp %82 : vector<16x128xf32>
      %cst_56 = arith.constant 1.000000e+00 : f32
      %84 = vector.broadcast %cst_56 : f32 to vector<16x128xf32>
      %85 = arith.addf %84, %83 : vector<16x128xf32>
      %86 = arith.divf %84, %85 : vector<16x128xf32>
      %c0_57 = arith.constant 0 : index
      %c0_58 = arith.constant 0 : index
      %87 = vector.load %arg11[%c0_57, %c0_58] : memref<16x128xf32, #tpu.memory_space<vmem>>, vector<16x128xf32>
      %88 = arith.mulf %66, %87 : vector<16x128xf32>
      %89 = arith.mulf %54, %74 : vector<16x128xf32>
      %90 = arith.addf %88, %89 : vector<16x128xf32>
      %91 = math.tanh %90 : vector<16x128xf32>
      %92 = arith.mulf %86, %91 : vector<16x128xf32>
      %93 = vector.broadcast %40 : i32 to vector<16x1xi32>
      %94 = arith.cmpi slt, %93, %26 : vector<16x1xi32>
      %c0_59 = arith.constant 0 : index
      %c0_60 = arith.constant 0 : index
      %95 = vector.load %arg11[%c0_59, %c0_60] : memref<16x128xf32, #tpu.memory_space<vmem>>, vector<16x128xf32>
      %96 = vector.shape_cast %94 : vector<16x1xi1> to vector<16x1xi1>
      %97 = vector.broadcast %96 : vector<16x1xi1> to vector<16x128xi1>
      %98 = arith.select %97, %90, %95 : vector<16x128xi1>, vector<16x128xf32>
      %c0_61 = arith.constant 0 : index
      %c0_62 = arith.constant 0 : index
      %99 = vector.load %arg11[%c0_61, %c0_62] : memref<16x128xf32, #tpu.memory_space<vmem>>, vector<16x128xf32>
      tpu.vector_store %arg11[%c0_61, %c0_62], %98 {strides = array<i32>} : memref<16x128xf32, #tpu.memory_space<vmem>>, vector<16x128xf32>,
      %c0_63 = arith.constant 0 : index
      %c0_64 = arith.constant 0 : index
      %100 = vector.load %arg10[%c0_63, %c0_64] : memref<16x128xf32, #tpu.memory_space<vmem>>, vector<16x128xf32>
      %101 = vector.shape_cast %94 : vector<16x1xi1> to vector<16x1xi1>
      %102 = vector.broadcast %101 : vector<16x1xi1> to vector<16x128xi1>
      %103 = arith.select %102, %92, %100 : vector<16x128xi1>, vector<16x128xf32>
      %c0_65 = arith.constant 0 : index
      %c0_66 = arith.constant 0 : index
      %104 = vector.load %arg10[%c0_65, %c0_66] : memref<16x128xf32, #tpu.memory_space<vmem>>, vector<16x128xf32>
      tpu.vector_store %arg10[%c0_65, %c0_66], %103 {strides = array<i32>} : memref<16x128xf32, #tpu.memory_space<vmem>>, vector<16x128xf32>,
      %cst_67 = arith.constant 0.000000e+00 : f32
      %105 = vector.shape_cast %94 : vector<16x1xi1> to vector<16x1xi1>
      %106 = vector.broadcast %105 : vector<16x1xi1> to vector<16x128xi1>
      %107 = vector.broadcast %cst_67 : f32 to vector<16x128xf32>
      %108 = arith.select %106, %92, %107 : vector<16x128xi1>, vector<16x128xf32>
      %109 = arith.index_cast %38 : i32 to index
      %c0_68 = arith.constant 0 : index
      %c0_69 = arith.constant 0 : index
      %110 = vector.load %arg13[%109, %c0_68, %c0_69] : memref<8x16x128xf32, #tpu.memory_space<vmem>>, vector<1x16x128xf32>
      %111 = vector.shape_cast %110 : vector<1x16x128xf32> to vector<16x128xf32>
      %112 = vector.shape_cast %108 : vector<16x128xf32> to vector<1x16x128xf32>
      tpu.vector_store %arg13[%109, %c0_68, %c0_69], %112 {strides = array<i32>} : memref<8x16x128xf32, #tpu.memory_space<vmem>>, vector<1x16x128xf32>,
    }
    %c8_i32_21 = arith.constant 8 : i32
    %c0_22 = arith.constant 0 : index
    %c0_23 = arith.constant 0 : index
    %c0_24 = arith.constant 0 : index
    %32 = vector.load %arg13[%c0_22, %c0_23, %c0_24] : memref<8x16x128xf32, #tpu.memory_space<vmem>>, vector<8x16x128xf32>
    %33 = tpu.transpose %32, [1, 0, 2] : vector<8x16x128xf32> -> vector<16x8x128xf32>
    %c0_25 = arith.constant 0 : index
    %c0_26 = arith.constant 0 : index
    %c0_27 = arith.constant 0 : index
    %34 = vector.load %arg9[%c0_25, %c0_26, %c0_27] : memref<16x8x128xf32, #tpu.memory_space<vmem>>, vector<16x8x128xf32>
    tpu.vector_store %arg9[%c0_25, %c0_26, %c0_27], %33 {strides = array<i32>} : memref<16x8x128xf32, #tpu.memory_space<vmem>>, vector<16x8x128xf32>,
    return
  }
  func.func @transform_0(%arg0: i32, %arg1: i32) -> (i32, i32) {
    %c0_i32 = arith.constant 0 : i32
    %c0_i32_0 = arith.constant 0 : i32
    %c0_i32_1 = arith.constant 0 : i32
    return %c0_i32, %c0_i32_0 : i32, i32
  }
  func.func @transform_1(%arg0: i32, %arg1: i32) -> (i32, i32, i32) {
    %c2_i32 = arith.constant 2 : i32
    %0 = arith.muli %c2_i32, %arg1 : i32
    %c2_i32_0 = arith.constant 2 : i32
    %1 = arith.subi %c2_i32_0, %0 : i32
    %2 = arith.muli %arg0, %1 : i32
    %3 = arith.addi %arg1, %2 : i32
    %c0_i32 = arith.constant 0 : i32
    %c0_i32_1 = arith.constant 0 : i32
    %c0_i32_2 = arith.constant 0 : i32
    return %3, %c0_i32, %c0_i32_1 : i32, i32, i32
  }
  func.func @transform_2(%arg0: i32, %arg1: i32) -> (i32, i32) {
    %c0_i32 = arith.constant 0 : i32
    %c0_i32_0 = arith.constant 0 : i32
    %c0_i32_1 = arith.constant 0 : i32
    return %c0_i32, %c0_i32_0 : i32, i32
  }
  func.func @transform_3(%arg0: i32, %arg1: i32) -> (i32, i32) {
    %c0_i32 = arith.constant 0 : i32
    %c0_i32_0 = arith.constant 0 : i32
    %c0_i32_1 = arith.constant 0 : i32
    return %c0_i32, %c0_i32_0 : i32, i32
  }
  func.func @transform_4(%arg0: i32, %arg1: i32) -> (i32, i32, i32) {
    %c0_i32 = arith.constant 0 : i32
    %c0_i32_0 = arith.constant 0 : i32
    %c0_i32_1 = arith.constant 0 : i32
    return %arg0, %c0_i32, %c0_i32_0 : i32, i32, i32
  }
  func.func @transform_5(%arg0: i32, %arg1: i32) -> (i32, i32, i32) {
    %c0_i32 = arith.constant 0 : i32
    %c0_i32_0 = arith.constant 0 : i32
    %c0_i32_1 = arith.constant 0 : i32
    return %arg0, %c0_i32, %c0_i32_0 : i32, i32, i32
  }
  func.func @transform_6(%arg0: i32, %arg1: i32) -> (i32, i32, i32, i32) {
    %c0_i32 = arith.constant 0 : i32
    %c0_i32_0 = arith.constant 0 : i32
    %c0_i32_1 = arith.constant 0 : i32
    %c0_i32_2 = arith.constant 0 : i32
    return %arg0, %c0_i32, %c0_i32_0, %c0_i32_1 : i32, i32, i32, i32
  }
  func.func @transform_7(%arg0: i32, %arg1: i32) -> (i32, i32, i32) {
    %c2_i32 = arith.constant 2 : i32
    %0 = arith.muli %c2_i32, %arg1 : i32
    %c2_i32_0 = arith.constant 2 : i32
    %1 = arith.subi %c2_i32_0, %0 : i32
    %2 = arith.muli %arg0, %1 : i32
    %3 = arith.addi %arg1, %2 : i32
    %c0_i32 = arith.constant 0 : i32
    %c0_i32_1 = arith.constant 0 : i32
    return %c0_i32, %3, %arg0 : i32, i32, i32
  }
}

</mosaic_0001>

<bundles_post_ra>
// kernel: encoder_forward.7
= control target key start
LH: loop header
LB: loop body
LE: loop exit
PB: predicated region body
PF: predicated region fallthrough
CT: control target
= control target key end

     0   :  { %12 = vsyncpa [#allocation7], 0  ;;  %s3206_s0 = inlined_call_operand.vmem [shape: s32[16,1], index: 0, kind: input, shape index: {}]   ;;  %s3207_s1 = inlined_call_operand.vmem [shape: bf16[24,16,128], index: 1, kind: input, shape index: {}]   ;;  %s3208_s2 = inlined_call_operand.vmem [shape: f32[1,128], index: 2, kind: input, shape index: {}]   ;;  %s3209_s3 = inlined_call_operand.vmem [shape: f32[1,128], index: 3, kind: input, shape index: {}]   ;;  %s3210_s4 = inlined_call_operand.vmem [shape: bf16[2,128,512], index: 4, kind: input, shape index: {}]   ;;  %s3211_s5 = inlined_call_operand.vmem [shape: f32[2,1,512], index: 5, kind: input, shape index: {}]   ;;  %s3212_s6 = inlined_call_operand.vmem [shape: bf16[2,4,128,128], index: 6, kind: input, shape index: {}]   ;;  %s3213_s7 = inlined_call_operand.hbm [shape: f32[16,24,256], index: 7, kind: output, shape index: {}]  }
   0x1   :  { %14 = vsyncpa [#allocation7 + $0x1], 0  ;;  %s2664_s24 = smov 0   ;;  %s2666_s25 = smov 0  }
   0x2   :  { %s2668_s26 = smov 0   ;;  %s2670_s27 = smov 0  }
   0x3   :  { %s2672_s28 = smov 0   ;;  %s2674_s29 = smov 0  }
   0x4   :  { %s2676_s30 = smov 0   ;;  %s2678_s8 = smov 0  }
   0x5 LB: > { %3224 = sst [smem:[#allocation9_spill]] %s2579_s24  ;;  %s1996_s9 = sadd.s32 4294967295, %s2607_s8   ;;  %s2607_s8 = sphi %s2678_s8, %s20_s8   ;;  %s2603_s30 = sphi %s2676_s30, %s3244_s30   ;;  %s2599_s29 = sphi %s2674_s29, %s3243_s29   ;;  %s2595_s28 = sphi %s2672_s28, %s3242_s28   ;;  %s2591_s27 = sphi %s2670_s27, %s3241_s27   ;;  %s2587_s26 = sphi %s2668_s26, %s3240_s26   ;;  %s2583_s25 = sphi %s2666_s25, %s3246_s25   ;;  %s2579_s24 = sphi %s2664_s24, %s3245_s24  }
   0x6   : > { %3225 = sst [smem:[#allocation10_spill]] %s2587_s26  ;;  %s1997_s10 = sadd.s32 4294967294, %s2607_s8  }
   0x7   : > { %3226 = sst [smem:[#allocation11_spill]] %s2599_s29  ;;  %s29_s11 = sadd.s32 1, %s2599_s29 }
   0x8   : > { %3227 = sst [smem:[#allocation12_spill]] %s2603_s30  ;;  %s32_s12 = sadd.s32 1, %s2603_s30 }
   0x9   : > { %3228 = sst [smem:[#allocation13_spill]] %s2607_s8  ;;  %p30_p0 = scmp.ge.s32.totalorder %s29_s11, 3 }
   0xa   : > { %s2000_s13 = sshll.u32 %s2599_s29, 1  ;;  %s224_s15 = sadd.s32 1, %s2587_s26 }
   0xb   : > { %s212_s14 = ssub.s32 2, %s2000_s13  ;;  %s3248_s11 = smov (%p30_p0, %s29_s11), 0 }
   0xc   : > { %3229 = sst [smem:[#allocation14_spill]] %s3248_s11  ;;  %s3250_s12 = smov (!%p30_p0, %s32_s12), %s2603_s30 }
   0xd   : > { %s213_s16 = smul.u32 %s2603_s30, %s212_s14  ;;  %s2001_s17 = sshll.u32 %s3248_s11, 1 }
   0xe   : > { %p34_p1 = scmp.ge.s32.totalorder %s3250_s12, 2  ;;  %s216_s18 = ssub.s32 2, %s2001_s17 }
   0xf   : > { %s214_s19 = sadd.s32 %s2599_s29, %s213_s16  ;;  %p234_p2 = scmp.ne.s32.totalorder %s2587_s26, %s2583_s25 }
  0x10   : > { %s3252_s12 = smov (%p34_p1, %s3250_s12), 0  ;;  %p235_p3 = scmp.eq.s32.totalorder %s1996_s9, 5 }
  0x11   : > { %3230 = sst [smem:[#allocation15_spill]] %s3252_s12  ;;  %p240_p4 = scmp.ne.s32.totalorder %s2583_s25, %s2579_s24 }
  0x12   : > { %s217_s20 = smul.u32 %s216_s18, %s3252_s12  ;;  %s220_s21 = ssub.s32 %s2603_s30, %s3252_s12 }
  0x13   : > { %p2725_p5 = por %p235_p3, %p234_p2  ;;  %p241_p6 = scmp.eq.s32.totalorder %s1997_s10, 5 }
  0x14   : > { %s218_s23 = sadd.s32 %s217_s20, %s3248_s11  ;;  %p2004_p7 = scmp.ge.s32.totalorder %s2607_s8, 1 }
  0x15   : > { %s219_s13 = ssub.s32 %s214_s19, %s218_s23  ;;  %p2731_p8 = por %p241_p6, %p240_p4 }
  0x16   : > { %s221_s16 = sor.u32 %s220_s21, %s219_s13  ;;  %p309_p9 = scmp.lt.s32.totalorder %s2607_s8, 7 }
  0x17   : > { %s3232_s14 = scalar_select %p2731_p8, 1, 0 }
  0x18   : > { %p222_p10 = scmp.eq.s32.totalorder %s221_s16, 0  ;;  %p310_p11 = pnand %p2004_p7, %p309_p9 }
  0x19   : > { %3233 = sst [smem:[#allocation16_spill]] %s3232_s14  ;;  %s3218_s10 = sand.u32 (!%p310_p11), 1, %s2583_s25  }
  0x1a   : > { %s2737_s9 = scalar_select %p222_p10, %s2587_s26, %s224_s15  }
  0x1b   : > { %313 = sbr.rel (%p310_p11) target bundleno = 709 (0x2c5), region = 48  ;;  %s2006_s17 = sshll.u32 (!%p310_p11), %s2591_s27, 1 }
  0x1c   : > { %3234 = sst [smem:[#allocation17_spill]] %s2737_s9  ;;  %s2005_s18 = sshll.u32 (!%p310_p11), %s3218_s10, 7 }
  0x1d   : > { %s361_s19 = ssub.s32 (!%p310_p11), 2, %s2006_s17  ;;  %p375_p12 = scmp.lt.s32.totalorder (!%p310_p11), %s2595_s28, 1 }
  0x1e   : > { %s362_s20 = smul.u32 (!%p310_p11), %s2595_s28, %s361_s19  ;;  %p2015_p0 = scmp.ne.s32.totalorder (!%p310_p11), %s2591_s27, 0 }
  0x20   : > { %s2746_s21 = sadd.s32 (!%p310_p11), %s2591_s27, %s362_s20 }
  0x21   : > { %s2749_s15 = sshll.u32 (!%p310_p11), %s2746_s21, 3 }
  0x22   : > { %p365_p13 = scmp.lt.s32.totalorder %s2749_s15, 23  ;;  %397 = sbr.rel (%p2015_p0) target bundleno = 41 (0x29), region = 52  ;;  %v2613_v0 = vmov (!%p2015_p0), 0.0  }
  0x23   : > { %s376_s23 = scalar_select %p375_p12, %s2595_s28, 1 }
  0x24   : > { %s366_s13 = scalar_select %p365_p13, %s2749_s15, 23 }
  0x25   : > { %s2149_s16 = sshll.u32 %s376_s23, 8  ;;  %s2012_s12 = sshll.u32 %s376_s23, 2  ;;  %398 = vst [vmem:[#allocation2] sm:$0xff] (!%p2015_p0), %v2613_v0  ;;  %399 = vst [vmem:[#allocation2 + $0x8] sm:$0xff] (!%p2015_p0), %v2613_v0 }
  0x26   : > { %s2148_s11 = sshll.u32 %s366_s13, 3  ;;  %s2757_s10 = scalar_lea.vmem %s3210_s4, %s2149_s16  ;;  %400 = vst [vmem:[#allocation3] sm:$0xff] (!%p2015_p0), %v2613_v0  ;;  %401 = vst [vmem:[#allocation3 + $0x8] sm:$0xff] (!%p2015_p0), %v2613_v0 }
  0x27   : > { %s2762_s20 = scalar_lea.vmem %s3207_s1, %s2148_s11  ;;  %s2767_s14 = scalar_lea.vmem %s3211_s5, %s2012_s12 }
  0x28   : > { %s2772_s23 = scalar_lea.vmem %s3212_s6, %s2149_s16  ;;  %s2774_s13 = scalar_lea.vmem [#allocation6], %s2005_s18 }
  0x29 PF: > { %v2396_v1 = vld [vmem:[%s2757_s10 + $0x4] ss:$16 sps:$4 sm:$0xff]   ;;  %v2398_v2 = vld [vmem:[%s2757_s10 + $0xc] ss:$16 sps:$4 sm:$0xff]   ;;  %v2614_v3 = vmov 0  }
  0x2a   : > { %750 = vmatprep.mubr.bf16.mxu0 %v2614_v3  ;;  %863 = vmatprep.mubr.bf16.mxu1 %v2614_v3  ;;  %v2400_v4 = vld [vmem:[%s2757_s10] ss:$16 sps:$4 sm:$0xff]   ;;  %v2401_v5 = vld [vmem:[%s2757_s10 + $0x8] ss:$16 sps:$4 sm:$0xff]   ;;  %v2402_v6 = vld [vmem:[%s2757_s10 + $0x24] ss:$16 sps:$4 sm:$0xff]  }
  0x2b   : > { %718 = vmatprep.subr.bf16.mxu0 %v2396_v1  ;;  %831 = vmatprep.subr.bf16.mxu1 %v2398_v2  ;;  %v2404_v7 = vld [vmem:[%s2757_s10 + $0x2c] ss:$16 sps:$4 sm:$0xff]   ;;  %v2406_v8 = vld [vmem:[%s2757_s10 + $0x20] ss:$16 sps:$4 sm:$0xff]   ;;  %v2407_v9 = vld [vmem:[%s2757_s10 + $0x28] ss:$16 sps:$4 sm:$0xff]  }
  0x2c   : > { %719 = vmatpush1.bf16.msra.mxu0 %v2400_v4  ;;  %832 = vmatpush1.bf16.msra.mxu1 %v2401_v5  ;;  %v2408_v10 = vld [vmem:[%s2757_s10 + $0x44] ss:$16 sps:$4 sm:$0xff]   ;;  %v2410_v11 = vld [vmem:[%s2757_s10 + $0x4c] ss:$16 sps:$4 sm:$0xff]   ;;  %v2412_v12 = vld [vmem:[%s2757_s10 + $0x40] ss:$16 sps:$4 sm:$0xff]  }
  0x2d   : > { %720 = vmatprep.subr.bf16.mxu0 %v2402_v6  ;;  %833 = vmatprep.subr.bf16.mxu1 %v2404_v7  ;;  %v2413_v13 = vld [vmem:[%s2757_s10 + $0x48] ss:$16 sps:$4 sm:$0xff]   ;;  %v2414_v14 = vld [vmem:[%s2757_s10 + $0x64] ss:$16 sps:$4 sm:$0xff]   ;;  %v2416_v15 = vld [vmem:[%s2757_s10 + $0x6c] ss:$16 sps:$4 sm:$0xff]  }
  0x2e   : > { %v2418_v16 = vld [vmem:[%s2757_s10 + $0x60] ss:$16 sps:$4 sm:$0xff]   ;;  %v2419_v17 = vld [vmem:[%s2757_s10 + $0x68] ss:$16 sps:$4 sm:$0xff]   ;;  %v2420_v18 = vld [vmem:[%s2757_s10 + $0x84] ss:$16 sps:$4 sm:$0xff]  }
  0x2f   : > { %v2422_v19 = vld [vmem:[%s2757_s10 + $0x8c] ss:$16 sps:$4 sm:$0xff]   ;;  %v2424_v20 = vld [vmem:[%s2757_s10 + $0x80] ss:$16 sps:$4 sm:$0xff]   ;;  %v2425_v21 = vld [vmem:[%s2757_s10 + $0x88] ss:$16 sps:$4 sm:$0xff]  }
  0x30   : > { %721 = vmatpush1.bf16.msra.mxu0 %v2406_v8  ;;  %834 = vmatpush1.bf16.msra.mxu1 %v2407_v9  ;;  %v2426_v22 = vld [vmem:[%s2757_s10 + $0xa4] ss:$16 sps:$4 sm:$0xff]   ;;  %v2428_v23 = vld [vmem:[%s2757_s10 + $0xac] ss:$16 sps:$4 sm:$0xff]   ;;  %v2430_v24 = vld [vmem:[%s2757_s10 + $0xa0] ss:$16 sps:$4 sm:$0xff]  }
  0x31   : > { %722 = vmatprep.subr.bf16.mxu0 %v2408_v10  ;;  %835 = vmatprep.subr.bf16.mxu1 %v2410_v11  ;;  %v2431_v25 = vld [vmem:[%s2757_s10 + $0xa8] ss:$16 sps:$4 sm:$0xff]   ;;  %v2432_v26 = vld [vmem:[%s2757_s10 + $0xc4] ss:$16 sps:$4 sm:$0xff]   ;;  %v2434_v27 = vld [vmem:[%s2757_s10 + $0xcc] ss:$16 sps:$4 sm:$0xff]  }
  0x32   : > { %v2153_v28 = vld [vmem:[%s2762_s20] sm:$0xff]   ;;  %v2184_v32 = vld [vmem:[%s2762_s20 + $0x8] sm:$0xff]   ;;  %v2185_v46 = vld [vmem:[%s2762_s20 + $0x10] sm:$0xff]  }
  0x33   : > { %v2809_v29 = vld [vmem:[%s3208_s2] ss:$0 sm:$0xff]  ;;  %v2154_v30 = vunpack.c.l.bf16 %v2153_v28  ;;  %v2155_v31 = vunpack.c.h.bf16 %v2153_v28  ;;  %v2158_v34 = vunpack.c.l.bf16 %v2184_v32  ;;  %v2159_v35 = vunpack.c.h.bf16 %v2184_v32  ;;  %v2437_v37 = vld [vmem:[%s2757_s10 + $0xc8] ss:$16 sps:$4 sm:$0xff]   ;;  %v2438_v40 = vld [vmem:[%s2757_s10 + $0xe4] ss:$16 sps:$4 sm:$0xff]  }
  0x34   : > { %723 = vmatpush1.bf16.msra.mxu0 %v2412_v12  ;;  %836 = vmatpush1.bf16.msra.mxu1 %v2413_v13  ;;  %v2815_v33 = vld [vmem:[%s3209_s3] ss:$0 sm:$0xff]  ;;  %v2440_v41 = vld [vmem:[%s2757_s10 + $0xec] ss:$16 sps:$4 sm:$0xff]   ;;  %v2443_v48 = vld [vmem:[%s2757_s10 + $0xe8] ss:$16 sps:$4 sm:$0xff]   ;;  %v2162_v51 = vunpack.c.l.bf16 %v2185_v46  ;;  %v2163_v55 = vunpack.c.h.bf16 %v2185_v46 }
  0x35   : > { %724 = vmatprep.subr.bf16.mxu0 %v2414_v14  ;;  %837 = vmatprep.subr.bf16.mxu1 %v2416_v15  ;;  %v2436_v36 = vld [vmem:[%s2757_s10 + $0xc0] ss:$16 sps:$4 sm:$0xff]   ;;  %v441_v38 = vmul.f32 %v2154_v30, %v2809_v29  ;;  %v442_v39 = vmul.f32 %v2155_v31, %v2809_v29  ;;  %v443_v44 = vmul.f32 %v2158_v34, %v2809_v29  ;;  %v2186_v60 = vld [vmem:[%s2762_s20 + $0x18] sm:$0xff]  }
  0x36   : > { %v444_v45 = vmul.f32 %v2159_v35, %v2809_v29  ;;  %v2442_v47 = vld [vmem:[%s2757_s10 + $0xe0] ss:$16 sps:$4 sm:$0xff]   ;;  %v445_v58 = vmul.f32 %v2162_v51, %v2809_v29  ;;  %v446_v59 = vmul.f32 %v2163_v55, %v2809_v29  ;;  %v2166_v61 = vunpack.c.l.bf16 %v2186_v60 }
  0x37   : > { %v464_v42 = vadd.f32 %v2815_v33, %v441_v38  ;;  %v465_v43 = vadd.f32 %v2815_v33, %v442_v39  ;;  %v466_v53 = vadd.f32 %v2815_v33, %v443_v44  ;;  %v2167_v1 = vunpack.c.h.bf16 %v2186_v60  ;;  %v2187_v7 = vld [vmem:[%s2762_s20 + $0x20] sm:$0xff]   ;;  %v2190_v39 = vld [vmem:[%s2762_s20 + $0x38] sm:$0xff]  }
  0x38   : > { %725 = vmatpush1.bf16.msra.mxu0 %v2418_v16  ;;  %838 = vmatpush1.bf16.msra.mxu1 %v2419_v17  ;;  %v467_v54 = vadd.f32 %v2815_v33, %v444_v45  ;;  %v468_v63 = vadd.f32 %v2815_v33, %v445_v58  ;;  %v469_v0 = vadd.f32 %v2815_v33, %v446_v59  ;;  %v2170_v8 = vunpack.c.l.bf16 %v2187_v7  ;;  %v2188_v17 = vld [vmem:[%s2762_s20 + $0x28] sm:$0xff]   ;;  %v536_v58 = vld [vmem:[%s2767_s14] sm:$0xf]  ;;  %s2964_s14 = smov 0  }
  0x39   : > { %726 = vmatprep.subr.bf16.mxu0 %v2420_v18  ;;  %839 = vmatprep.subr.bf16.mxu1 %v2422_v19  ;;  %v480_v49 = vmax.f32 %v464_v42, 0.0  ;;  %v481_v50 = vmax.f32 %v465_v43, 0.0  ;;  %v482_v56 = vmax.f32 %v466_v53, 0.0  ;;  %v447_v5 = vmul.f32 %v2166_v61, %v2809_v29 }
  0x3a   : > { %v483_v57 = vmax.f32 %v467_v54, 0.0  ;;  %v484_v2 = vmax.f32 %v468_v63, 0.0  ;;  %v485_v4 = vmax.f32 %v469_v0, 0.0  ;;  %v448_v6 = vmul.f32 %v2167_v1, %v2809_v29 }
  0x3b   : > { %v496_v52 = vpack.c.bf16 %v481_v50, %v480_v49  ;;  %v470_v10 = vadd.f32 %v2815_v33, %v447_v5  ;;  %v2171_v12 = vunpack.c.h.bf16 %v2187_v7  ;;  %v449_v15 = vmul.f32 %v2170_v8, %v2809_v29 }
  0x3c   : > { %727 = vmatpush1.bf16.msra.mxu0 %v2424_v20  ;;  %840 = vmatpush1.bf16.msra.mxu1 %v2425_v21  ;;  %v497_v62 = vpack.c.bf16 %v483_v57, %v482_v56  ;;  %v498_v9 = vpack.c.bf16 %v485_v4, %v484_v2  ;;  %v471_v11 = vadd.f32 %v2815_v33, %v448_v6  ;;  %v2174_v18 = vunpack.c.l.bf16 %v2188_v17 }
  0x3d   : > { %728 = vmatprep.subr.bf16.mxu0 %v2426_v22  ;;  %841 = vmatprep.subr.bf16.mxu1 %v2428_v23  ;;  %v486_v13 = vmax.f32 %v470_v10, 0.0  ;;  %v450_v16 = vmul.f32 %v2171_v12, %v2809_v29  ;;  %v472_v20 = vadd.f32 %v2815_v33, %v449_v15  ;;  %v2175_v22 = vunpack.c.h.bf16 %v2188_v17 }
  0x3e   : > { %v487_v14 = vmax.f32 %v471_v11, 0.0  ;;  %v2183_v44 = vunpack.c.h.bf16 %v2190_v39  ;;  %v538_v55 = vlaneseq }
  0x3f   : > { %v473_v21 = vadd.f32 %v2815_v33, %v450_v16  ;;  %v488_v23 = vmax.f32 %v472_v20, 0.0 }
  0x40   : > { %729 = vmatpush1.bf16.msra.mxu0 %v2430_v24  ;;  %842 = vmatpush1.bf16.msra.mxu1 %v2431_v25  ;;  %v499_v19 = vpack.c.bf16 %v487_v14, %v486_v13  ;;  %v451_v25 = vmul.f32 %v2174_v18, %v2809_v29  ;;  %v2885_v56 = vshrl.u32 %v538_v55, 7 }
  0x41   : > { %730 = vmatprep.subr.bf16.mxu0 %v2432_v26  ;;  %843 = vmatprep.subr.bf16.mxu1 %v2434_v27  ;;  %v489_v24 = vmax.f32 %v473_v21, 0.0  ;;  %v452_v26 = vmul.f32 %v2175_v22, %v2809_v29  ;;  %v2189_v27 = vld [vmem:[%s2762_s20 + $0x30] sm:$0xff]  }
  0x42   : > { %v2178_v28 = vunpack.c.l.bf16 %v2189_v27  ;;  %v474_v31 = vadd.f32 %v2815_v33, %v451_v25  ;;  %v2179_v34 = vunpack.c.h.bf16 %v2189_v27  ;;  %v540_v57 = vsub.s32 0, %v2885_v56 }
  0x43   : > { %v500_v30 = vpack.c.bf16 %v489_v24, %v488_v23  ;;  %v475_v32 = vadd.f32 %v2815_v33, %v452_v26  ;;  %v544_v59 = vsub.s32 1, %v2885_v56  ;;  %v552_v60 = vsub.s32 3, %v2885_v56 }
  0x44   : > { %731 = vmatpush1.bf16.msra.mxu0 %v2436_v36  ;;  %844 = vmatpush1.bf16.msra.mxu1 %v2437_v37  ;;  %v490_v35 = vmax.f32 %v474_v31, 0.0  ;;  %v453_v37 = vmul.f32 %v2178_v28, %v2809_v29  ;;  %v454_v38 = vmul.f32 %v2179_v34, %v2809_v29  ;;  %v2892_v61 = vrot.slane %v536_v58, %v540_v57 }
  0x45   : > { %732 = vmatprep.subr.bf16.mxu0 %v2438_v40  ;;  %845 = vmatprep.subr.bf16.mxu1 %v2440_v41  ;;  %v491_v36 = vmax.f32 %v475_v32, 0.0  ;;  %v2182_v40 = vunpack.c.l.bf16 %v2190_v39  ;;  %v2896_v63 = vrot.slane %v536_v58, %v544_v59  ;;  %v2898_v0 = vrot.slane %v536_v58, %v552_v60 }
  0x46   : > { %v476_v42 = vadd.f32 %v2815_v33, %v453_v37  ;;  %v477_v43 = vadd.f32 %v2815_v33, %v454_v38 }
  0x47   : > { %v501_v41 = vpack.c.bf16 %v491_v36, %v490_v35 }
  0x48   : > { %733 = vmatpush1.bf16.msra.mxu0 %v2442_v47  ;;  %846 = vmatpush1.bf16.msra.mxu1 %v2443_v48  ;;  %v492_v45 = vmax.f32 %v476_v42, 0.0  ;;  %v493_v46 = vmax.f32 %v477_v43, 0.0  ;;  %v455_v47 = vmul.f32 %v2182_v40, %v2809_v29  ;;  %v456_v48 = vmul.f32 %v2183_v44, %v2809_v29  ;;  %v2878_v29 = vld [vmem:[%s3206_s0] sm:$0xff] }
  0x4a   : > { %v502_v49 = vpack.c.bf16 %v493_v46, %v492_v45  ;;  %v478_v50 = vadd.f32 %v2815_v33, %v455_v47  ;;  %v479_v51 = vadd.f32 %v2815_v33, %v456_v48  ;;  %v2883_v33 = vld [vmem:[%s3206_s0 + $0x8] sm:$0xff] }
  0x4b   : > { %751 = vmatmul.mubr.bf16.vlgmr.msra.gmra.mrb[0].mxu0 %v496_v52  ;;  %864 = vmatmul.mubr.bf16.vlgmr.msra.gmra.mrb[0].mxu1 %v496_v52 }
  0x4c   : > { %760 = vmatprep.mubr.bf16.mxu0 %v2614_v3  ;;  %873 = vmatprep.mubr.bf16.mxu1 %v2614_v3  ;;  %v494_v52 = vmax.f32 %v478_v50, 0.0  ;;  %v495_v53 = vmax.f32 %v479_v51, 0.0 }
  0x4e   : > { %v503_v54 = vpack.c.bf16 %v495_v53, %v494_v52 }
  0x53   : > { %761 = vmatmul.mubr.bf16.gmra.mrb[4].mxu0 %v497_v62  ;;  %874 = vmatmul.mubr.bf16.gmra.mrb[4].mxu1 %v497_v62 }
  0x54   : > { %770 = vmatprep.mubr.bf16.mxu0 %v2614_v3  ;;  %883 = vmatprep.mubr.bf16.mxu1 %v2614_v3 }
  0x5b   : > { %771 = vmatmul.mubr.bf16.gmra.mrb[8].mxu0 %v498_v9  ;;  %884 = vmatmul.mubr.bf16.gmra.mrb[8].mxu1 %v498_v9 }
  0x5c   : > { %780 = vmatprep.mubr.bf16.mxu0 %v2614_v3  ;;  %893 = vmatprep.mubr.bf16.mxu1 %v2614_v3 }
  0x63   : > { %781 = vmatmul.mubr.bf16.gmra.mrb[12].mxu0 %v499_v19  ;;  %894 = vmatmul.mubr.bf16.gmra.mrb[12].mxu1 %v499_v19 }
  0x64   : > { %790 = vmatprep.mubr.bf16.mxu0 %v2614_v3  ;;  %903 = vmatprep.mubr.bf16.mxu1 %v2614_v3 }
  0x6b   : > { %791 = vmatmul.mubr.bf16.gmra.mrb[16].mxu0 %v500_v30  ;;  %904 = vmatmul.mubr.bf16.gmra.mrb[16].mxu1 %v500_v30 }
  0x6c   : > { %800 = vmatprep.mubr.bf16.mxu0 %v2614_v3  ;;  %913 = vmatprep.mubr.bf16.mxu1 %v2614_v3 }
  0x73   : > { %801 = vmatmul.mubr.bf16.gmra.mrb[20].mxu0 %v501_v41  ;;  %914 = vmatmul.mubr.bf16.gmra.mrb[20].mxu1 %v501_v41 }
  0x74   : > { %810 = vmatprep.mubr.bf16.mxu0 %v2614_v3  ;;  %923 = vmatprep.mubr.bf16.mxu1 %v2614_v3 }
  0x7b   : > { %811 = vmatmul.mubr.bf16.gmra.mrb[24].mxu0 %v502_v49  ;;  %924 = vmatmul.mubr.bf16.gmra.mrb[24].mxu1 %v502_v49 }
  0x7c   : > { %820 = vmatprep.mubr.bf16.mxu0 %v2614_v3  ;;  %933 = vmatprep.mubr.bf16.mxu1 %v2614_v3  ;;  %v548_v3 = vsub.s32 2, %v2885_v56 }
  0x7e   : > { %v2894_v62 = vrot.slane %v536_v58, %v548_v3 }
  0x83   : > { %821 = vmatmul.mubr.bf16.gmra.mrb[28].mxu0 %v503_v54  ;;  %934 = vmatmul.mubr.bf16.gmra.mrb[28].mxu1 %v503_v54 }
 0x11e   : > { %v752_v1 = vpop.f32.mrb[0].mxu0  ;;  %v865_v2 = vpop.f32.mrb[0].mxu1 }
 0x11f   : > { %v753_v4 = vadd.f32 %v752_v1, %v2892_v61  ;;  %v866_v5 = vadd.f32 %v865_v2, %v2894_v62  ;;  %v754_v6 = vpop.f32.mrb[1].mxu0  ;;  %v867_v7 = vpop.f32.mrb[1].mxu1 }
 0x120   : > { %v755_v8 = vadd.f32 %v754_v6, %v2896_v63  ;;  %v868_v9 = vadd.f32 %v867_v7, %v2898_v0  ;;  %v756_v10 = vpop.f32.mrb[2].mxu0  ;;  %v869_v11 = vpop.f32.mrb[2].mxu1 }
 0x121   : > { %944 = vst [vmem:[#allocation4] sm:$0xff] %v753_v4  ;;  %946 = vst [vmem:[#allocation4 + $0x10] sm:$0xff] %v866_v5  ;;  %v757_v12 = vadd.f32 %v756_v10, %v2892_v61  ;;  %v870_v13 = vadd.f32 %v869_v11, %v2894_v62  ;;  %v758_v14 = vpop.f32.mrb[3].mxu0  ;;  %v871_v15 = vpop.f32.mrb[3].mxu1 }
 0x122   : > { %945 = vst [vmem:[#allocation4 + $0x8] sm:$0xff] %v755_v8  ;;  %947 = vst [vmem:[#allocation4 + $0x18] sm:$0xff] %v868_v9  ;;  %v759_v16 = vadd.f32 %v758_v14, %v2896_v63  ;;  %v872_v17 = vadd.f32 %v871_v15, %v2898_v0 }
 0x123   : > { %948 = vst [vmem:[#allocation4 + $0x20] sm:$0xff] %v757_v12  ;;  %950 = vst [vmem:[#allocation4 + $0x30] sm:$0xff] %v870_v13 }
 0x124   : > { %949 = vst [vmem:[#allocation4 + $0x28] sm:$0xff] %v759_v16  ;;  %951 = vst [vmem:[#allocation4 + $0x38] sm:$0xff] %v872_v17 }
 0x126   : > { %v762_v18 = vpop.f32.mrb[4].mxu0  ;;  %v875_v19 = vpop.f32.mrb[4].mxu1 }
 0x127   : > { %v763_v20 = vadd.f32 %v762_v18, %v2892_v61  ;;  %v876_v21 = vadd.f32 %v875_v19, %v2894_v62  ;;  %v764_v22 = vpop.f32.mrb[5].mxu0  ;;  %v877_v23 = vpop.f32.mrb[5].mxu1 }
 0x128   : > { %v765_v24 = vadd.f32 %v764_v22, %v2896_v63  ;;  %v878_v25 = vadd.f32 %v877_v23, %v2898_v0  ;;  %v766_v26 = vpop.f32.mrb[6].mxu0  ;;  %v879_v27 = vpop.f32.mrb[6].mxu1 }
 0x129   : > { %952 = vst [vmem:[#allocation4 + $0x40] sm:$0xff] %v763_v20  ;;  %954 = vst [vmem:[#allocation4 + $0x50] sm:$0xff] %v876_v21  ;;  %v767_v28 = vadd.f32 %v766_v26, %v2892_v61  ;;  %v880_v30 = vadd.f32 %v879_v27, %v2894_v62  ;;  %v768_v31 = vpop.f32.mrb[7].mxu0  ;;  %v881_v32 = vpop.f32.mrb[7].mxu1 }
 0x12a   : > { %953 = vst [vmem:[#allocation4 + $0x48] sm:$0xff] %v765_v24  ;;  %955 = vst [vmem:[#allocation4 + $0x58] sm:$0xff] %v878_v25  ;;  %v769_v34 = vadd.f32 %v768_v31, %v2896_v63  ;;  %v882_v35 = vadd.f32 %v881_v32, %v2898_v0 }
 0x12b   : > { %956 = vst [vmem:[#allocation4 + $0x60] sm:$0xff] %v767_v28  ;;  %958 = vst [vmem:[#allocation4 + $0x70] sm:$0xff] %v880_v30 }
 0x12c   : > { %957 = vst [vmem:[#allocation4 + $0x68] sm:$0xff] %v769_v34  ;;  %959 = vst [vmem:[#allocation4 + $0x78] sm:$0xff] %v882_v35 }
 0x12e   : > { %v772_v36 = vpop.f32.mrb[8].mxu0  ;;  %v885_v37 = vpop.f32.mrb[8].mxu1 }
 0x12f   : > { %v773_v38 = vadd.f32 %v772_v36, %v2892_v61  ;;  %v886_v39 = vadd.f32 %v885_v37, %v2894_v62  ;;  %v774_v40 = vpop.f32.mrb[9].mxu0  ;;  %v887_v41 = vpop.f32.mrb[9].mxu1 }
 0x130   : > { %v775_v42 = vadd.f32 %v774_v40, %v2896_v63  ;;  %v888_v43 = vadd.f32 %v887_v41, %v2898_v0  ;;  %v776_v44 = vpop.f32.mrb[10].mxu0  ;;  %v889_v45 = vpop.f32.mrb[10].mxu1 }
 0x131   : > { %960 = vst [vmem:[#allocation4 + $0x80] sm:$0xff] %v773_v38  ;;  %962 = vst [vmem:[#allocation4 + $0x90] sm:$0xff] %v886_v39  ;;  %v777_v46 = vadd.f32 %v776_v44, %v2892_v61  ;;  %v890_v47 = vadd.f32 %v889_v45, %v2894_v62  ;;  %v778_v48 = vpop.f32.mrb[11].mxu0  ;;  %v891_v49 = vpop.f32.mrb[11].mxu1 }
 0x132   : > { %961 = vst [vmem:[#allocation4 + $0x88] sm:$0xff] %v775_v42  ;;  %963 = vst [vmem:[#allocation4 + $0x98] sm:$0xff] %v888_v43  ;;  %v779_v50 = vadd.f32 %v778_v48, %v2896_v63  ;;  %v892_v51 = vadd.f32 %v891_v49, %v2898_v0 }
 0x133   : > { %964 = vst [vmem:[#allocation4 + $0xa0] sm:$0xff] %v777_v46  ;;  %966 = vst [vmem:[#allocation4 + $0xb0] sm:$0xff] %v890_v47 }
 0x134   : > { %965 = vst [vmem:[#allocation4 + $0xa8] sm:$0xff] %v779_v50  ;;  %967 = vst [vmem:[#allocation4 + $0xb8] sm:$0xff] %v892_v51 }
 0x136   : > { %v782_v52 = vpop.f32.mrb[12].mxu0  ;;  %v895_v53 = vpop.f32.mrb[12].mxu1 }
 0x137   : > { %v783_v54 = vadd.f32 %v782_v52, %v2892_v61  ;;  %v896_v55 = vadd.f32 %v895_v53, %v2894_v62  ;;  %v784_v57 = vpop.f32.mrb[13].mxu0  ;;  %v897_v3 = vpop.f32.mrb[13].mxu1 }
 0x138   : > { %v785_v58 = vadd.f32 %v784_v57, %v2896_v63  ;;  %v898_v59 = vadd.f32 %v897_v3, %v2898_v0  ;;  %v786_v60 = vpop.f32.mrb[14].mxu0  ;;  %v899_v1 = vpop.f32.mrb[14].mxu1 }
 0x139   : > { %968 = vst [vmem:[#allocation4 + $0xc0] sm:$0xff] %v783_v54  ;;  %970 = vst [vmem:[#allocation4 + $0xd0] sm:$0xff] %v896_v55  ;;  %v787_v2 = vadd.f32 %v786_v60, %v2892_v61  ;;  %v900_v4 = vadd.f32 %v899_v1, %v2894_v62  ;;  %v788_v5 = vpop.f32.mrb[15].mxu0  ;;  %v901_v6 = vpop.f32.mrb[15].mxu1 }
 0x13a   : > { %969 = vst [vmem:[#allocation4 + $0xc8] sm:$0xff] %v785_v58  ;;  %971 = vst [vmem:[#allocation4 + $0xd8] sm:$0xff] %v898_v59  ;;  %v789_v7 = vadd.f32 %v788_v5, %v2896_v63  ;;  %v902_v8 = vadd.f32 %v901_v6, %v2898_v0 }
 0x13b   : > { %972 = vst [vmem:[#allocation4 + $0xe0] sm:$0xff] %v787_v2  ;;  %974 = vst [vmem:[#allocation4 + $0xf0] sm:$0xff] %v900_v4 }
 0x13c   : > { %973 = vst [vmem:[#allocation4 + $0xe8] sm:$0xff] %v789_v7  ;;  %975 = vst [vmem:[#allocation4 + $0xf8] sm:$0xff] %v902_v8 }
 0x13e   : > { %v792_v9 = vpop.f32.mrb[16].mxu0  ;;  %v905_v10 = vpop.f32.mrb[16].mxu1 }
 0x13f   : > { %v793_v11 = vadd.f32 %v792_v9, %v2892_v61  ;;  %v906_v12 = vadd.f32 %v905_v10, %v2894_v62  ;;  %v794_v13 = vpop.f32.mrb[17].mxu0  ;;  %v907_v14 = vpop.f32.mrb[17].mxu1 }
 0x140   : > { %v795_v15 = vadd.f32 %v794_v13, %v2896_v63  ;;  %v908_v16 = vadd.f32 %v907_v14, %v2898_v0  ;;  %v796_v17 = vpop.f32.mrb[18].mxu0  ;;  %v909_v18 = vpop.f32.mrb[18].mxu1 }
 0x141   : > { %976 = vst [vmem:[#allocation4 + $0x100] sm:$0xff] %v793_v11  ;;  %978 = vst [vmem:[#allocation4 + $0x110] sm:$0xff] %v906_v12  ;;  %v797_v19 = vadd.f32 %v796_v17, %v2892_v61  ;;  %v910_v20 = vadd.f32 %v909_v18, %v2894_v62  ;;  %v798_v21 = vpop.f32.mrb[19].mxu0  ;;  %v911_v22 = vpop.f32.mrb[19].mxu1 }
 0x142   : > { %977 = vst [vmem:[#allocation4 + $0x108] sm:$0xff] %v795_v15  ;;  %979 = vst [vmem:[#allocation4 + $0x118] sm:$0xff] %v908_v16  ;;  %v799_v23 = vadd.f32 %v798_v21, %v2896_v63  ;;  %v912_v24 = vadd.f32 %v911_v22, %v2898_v0 }
 0x143   : > { %980 = vst [vmem:[#allocation4 + $0x120] sm:$0xff] %v797_v19  ;;  %982 = vst [vmem:[#allocation4 + $0x130] sm:$0xff] %v910_v20 }
 0x144   : > { %981 = vst [vmem:[#allocation4 + $0x128] sm:$0xff] %v799_v23  ;;  %983 = vst [vmem:[#allocation4 + $0x138] sm:$0xff] %v912_v24 }
 0x146   : > { %v802_v25 = vpop.f32.mrb[20].mxu0  ;;  %v915_v26 = vpop.f32.mrb[20].mxu1 }
 0x147   : > { %v803_v27 = vadd.f32 %v802_v25, %v2892_v61  ;;  %v916_v28 = vadd.f32 %v915_v26, %v2894_v62  ;;  %v804_v30 = vpop.f32.mrb[21].mxu0  ;;  %v917_v31 = vpop.f32.mrb[21].mxu1 }
 0x148   : > { %v805_v32 = vadd.f32 %v804_v30, %v2896_v63  ;;  %v918_v34 = vadd.f32 %v917_v31, %v2898_v0  ;;  %v806_v35 = vpop.f32.mrb[22].mxu0  ;;  %v919_v36 = vpop.f32.mrb[22].mxu1 }
 0x149   : > { %984 = vst [vmem:[#allocation4 + $0x140] sm:$0xff] %v803_v27  ;;  %986 = vst [vmem:[#allocation4 + $0x150] sm:$0xff] %v916_v28  ;;  %v807_v37 = vadd.f32 %v806_v35, %v2892_v61  ;;  %v920_v38 = vadd.f32 %v919_v36, %v2894_v62  ;;  %v808_v39 = vpop.f32.mrb[23].mxu0  ;;  %v921_v40 = vpop.f32.mrb[23].mxu1 }
 0x14a   : > { %985 = vst [vmem:[#allocation4 + $0x148] sm:$0xff] %v805_v32  ;;  %987 = vst [vmem:[#allocation4 + $0x158] sm:$0xff] %v918_v34  ;;  %v809_v41 = vadd.f32 %v808_v39, %v2896_v63  ;;  %v922_v42 = vadd.f32 %v921_v40, %v2898_v0 }
 0x14b   : > { %988 = vst [vmem:[#allocation4 + $0x160] sm:$0xff] %v807_v37  ;;  %990 = vst [vmem:[#allocation4 + $0x170] sm:$0xff] %v920_v38 }
 0x14c   : > { %989 = vst [vmem:[#allocation4 + $0x168] sm:$0xff] %v809_v41  ;;  %991 = vst [vmem:[#allocation4 + $0x178] sm:$0xff] %v922_v42 }
 0x14e   : > { %v812_v43 = vpop.f32.mrb[24].mxu0  ;;  %v925_v44 = vpop.f32.mrb[24].mxu1 }
 0x14f   : > { %v813_v45 = vadd.f32 %v812_v43, %v2892_v61  ;;  %v926_v46 = vadd.f32 %v925_v44, %v2894_v62  ;;  %v814_v47 = vpop.f32.mrb[25].mxu0  ;;  %v927_v48 = vpop.f32.mrb[25].mxu1 }
 0x150   : > { %v815_v49 = vadd.f32 %v814_v47, %v2896_v63  ;;  %v928_v50 = vadd.f32 %v927_v48, %v2898_v0  ;;  %v816_v51 = vpop.f32.mrb[26].mxu0  ;;  %v929_v52 = vpop.f32.mrb[26].mxu1 }
 0x151   : > { %992 = vst [vmem:[#allocation4 + $0x180] sm:$0xff] %v813_v45  ;;  %994 = vst [vmem:[#allocation4 + $0x190] sm:$0xff] %v926_v46  ;;  %v817_v53 = vadd.f32 %v816_v51, %v2892_v61  ;;  %v930_v54 = vadd.f32 %v929_v52, %v2894_v62  ;;  %v818_v55 = vpop.f32.mrb[27].mxu0  ;;  %v931_v57 = vpop.f32.mrb[27].mxu1 }
 0x152   : > { %993 = vst [vmem:[#allocation4 + $0x188] sm:$0xff] %v815_v49  ;;  %995 = vst [vmem:[#allocation4 + $0x198] sm:$0xff] %v928_v50  ;;  %v819_v3 = vadd.f32 %v818_v55, %v2896_v63  ;;  %v932_v58 = vadd.f32 %v931_v57, %v2898_v0 }
 0x153   : > { %996 = vst [vmem:[#allocation4 + $0x1a0] sm:$0xff] %v817_v53  ;;  %998 = vst [vmem:[#allocation4 + $0x1b0] sm:$0xff] %v930_v54 }
 0x154   : > { %997 = vst [vmem:[#allocation4 + $0x1a8] sm:$0xff] %v819_v3  ;;  %999 = vst [vmem:[#allocation4 + $0x1b8] sm:$0xff] %v932_v58 }
 0x156   : > { %v822_v59 = vpop.f32.mrb[28].mxu0  ;;  %v935_v60 = vpop.f32.mrb[28].mxu1 }
 0x157   : > { %v823_v1 = vadd.f32 %v822_v59, %v2892_v61  ;;  %v936_v2 = vadd.f32 %v935_v60, %v2894_v62  ;;  %v824_v4 = vpop.f32.mrb[29].mxu0  ;;  %v937_v5 = vpop.f32.mrb[29].mxu1 }
 0x158   : > { %v825_v6 = vadd.f32 %v824_v4, %v2896_v63  ;;  %v938_v7 = vadd.f32 %v937_v5, %v2898_v0  ;;  %v826_v8 = vpop.f32.mrb[30].mxu0  ;;  %v939_v9 = vpop.f32.mrb[30].mxu1 }
 0x159   : > { %1000 = vst [vmem:[#allocation4 + $0x1c0] sm:$0xff] %v823_v1  ;;  %1002 = vst [vmem:[#allocation4 + $0x1d0] sm:$0xff] %v936_v2  ;;  %v827_v10 = vadd.f32 %v826_v8, %v2892_v61  ;;  %v940_v11 = vadd.f32 %v939_v9, %v2894_v62  ;;  %v828_v12 = vpop.f32.mrb[31].mxu0  ;;  %v941_v13 = vpop.f32.mrb[31].mxu1 }
 0x15a   : > { %1001 = vst [vmem:[#allocation4 + $0x1c8] sm:$0xff] %v825_v6  ;;  %1003 = vst [vmem:[#allocation4 + $0x1d8] sm:$0xff] %v938_v7  ;;  %v829_v14 = vadd.f32 %v828_v12, %v2896_v63  ;;  %v942_v15 = vadd.f32 %v941_v13, %v2898_v0 }
 0x15b   : > { %1004 = vst [vmem:[#allocation4 + $0x1e0] sm:$0xff] %v827_v10  ;;  %1006 = vst [vmem:[#allocation4 + $0x1f0] sm:$0xff] %v940_v11 }
 0x15c   : > { %1005 = vst [vmem:[#allocation4 + $0x1e8] sm:$0xff] %v829_v14  ;;  %1007 = vst [vmem:[#allocation4 + $0x1f8] sm:$0xff] %v942_v15 }
 0x15d LB: >> { %v2445_v61 = vld [vmem:[%s2772_s23] sm:$0xff]   ;;  %v2615_v62 = vmov 0.0   ;;  %v2447_v0 = vld [vmem:[%s2772_s23 + $0x8] sm:$0xff]   ;;  %vm2616_vm0 = vmmov 0   ;;  %s2051_s9 = sshll.u32 %s2611_s14, 1  ;;  %v2617_v17 = vmov 0   ;;  %s2611_s14 = sphi %s2964_s14, %s1019_s14  }
 0x15e   : >> { %2227 = vmatprep.subr.bf16.mxu0 %v2615_v62  ;;  %2247 = vmatprep.subr.bf16.mxu1 %v2615_v62  ;;  %v2446_v63 = vld [vmem:[%s2772_s23 + $0x40] sm:$0xff]   ;;  %v2448_v16 = vld [vmem:[%s2772_s23 + $0x48] sm:$0xff]   ;;  %s1021_s10 = ssub.s32 7, %s2051_s9  ;;  %v2449_v18 = vld [vmem:[%s2772_s23 + $0x10] sm:$0xff]  }
 0x15f   : >> { %2228 = vmatpush3.bf16.msra.mxu0 %v2445_v61  ;;  %2243 = vmatprep.mubr.msk.bf16.mxu0 %vm2616_vm0, %v2615_v62  ;;  %s1022_s18 = smul.u32 %s2595_s28, %s1021_s10  ;;  %v2450_v19 = vld [vmem:[%s2772_s23 + $0x50] sm:$0xff]   ;;  %v2451_v21 = vld [vmem:[%s2772_s23 + $0x18] sm:$0xff]   ;;  %v2453_v25 = vld [vmem:[%s2772_s23 + $0x20] sm:$0xff]  }
 0x160   : >> { %2248 = vmatpush3.bf16.msra.mxu1 %v2446_v63  ;;  %2229 = vmatprep.subr.bf16.mxu0 %v2615_v62  ;;  %v2452_v22 = vld [vmem:[%s2772_s23 + $0x58] sm:$0xff]   ;;  %v2454_v26 = vld [vmem:[%s2772_s23 + $0x60] sm:$0xff]   ;;  %v2455_v27 = vld [vmem:[%s2772_s23 + $0x28] sm:$0xff]  }
 0x161   : >> { %2249 = vmatprep.subr.bf16.mxu1 %v2615_v62  ;;  %2263 = vmatprep.mubr.msk.bf16.mxu1 %vm2616_vm0, %v2615_v62  ;;  %s2987_s16 = sadd.s32 %s2611_s14, %s1022_s18  ;;  %v2456_v28 = vld [vmem:[%s2772_s23 + $0x68] sm:$0xff]   ;;  %v2457_v30 = vld [vmem:[%s2772_s23 + $0x30] sm:$0xff]   ;;  %v2459_v32 = vld [vmem:[%s2772_s23 + $0x38] sm:$0xff]   ;;  %s1019_s14 = sadd.s32 1, %s2611_s14  }
 0x162   : >> { %2444 = vset.pattern.permute.xlu0 %v2617_v17  ;;  %s1025_s17 = sadd.s32 %s2749_s15, %s2987_s16  ;;  %v2458_v31 = vld [vmem:[%s2772_s23 + $0x70] sm:$0xff]   ;;  %v3011_v34 = vld [vmem:[#allocation2] sm:$0xff]  ;;  %v3013_v35 = vld [vmem:[#allocation2 + $0x8] sm:$0xff]  ;;  %s2151_s19 = sshll.u32 %s2987_s16, 6 }
 0x163   : >> { %2230 = vmatpush3.bf16.msra.mxu0 %v2447_v0  ;;  %v1521_v20 = vstv %s1025_s17  ;;  %v2460_v36 = vld [vmem:[%s2772_s23 + $0x78] sm:$0xff]   ;;  %v1028_v37 = vpack.c.bf16 %v3013_v35, %v3011_v34  ;;  %v2461_v38 = vld [vmem:[%s2772_s23 + $0x80] sm:$0xff]   ;;  %v2463_v40 = vld [vmem:[%s2772_s23 + $0x88] sm:$0xff]   ;;  %s3057_s20 = scalar_lea.vmem [#allocation4], %s2151_s19  ;;  %s2141_s24 = sshll.u32 %s2987_s16, 4 }
 0x164   : >> { %2250 = vmatpush3.bf16.msra.mxu1 %v2448_v16  ;;  %2231 = vmatprep.subr.bf16.mxu0 %v2615_v62  ;;  %vm1522_vm1 = vcmp.lt.s32.totalorder %v1521_v20, %v2878_v29  ;;  %vm1523_vm2 = vcmp.lt.s32.totalorder %v1521_v20, %v2883_v33  ;;  %v2462_v39 = vld [vmem:[%s2772_s23 + $0xc0] sm:$0xff]   ;;  %v2464_v41 = vld [vmem:[%s2772_s23 + $0xc8] sm:$0xff]   ;;  %v2465_v42 = vld [vmem:[%s2772_s23 + $0x90] sm:$0xff]   ;;  %s1547_s26 = scalar_lea.vmem [#allocation5], %s2141_s24  ;;  %p1016_p1 = scmp.ge.s32.totalorder %s1019_s14, 8  }
 0x165   : >> { %2251 = vmatprep.subr.bf16.mxu1 %v2615_v62  ;;  %v1524_v23 = vsel %vm1522_vm1, 1, %v2617_v17  ;;  %v1525_v24 = vsel %vm1523_vm2, 1, %v2617_v17  ;;  %v2466_v43 = vld [vmem:[%s2772_s23 + $0xd0] sm:$0xff]   ;;  %v2467_v44 = vld [vmem:[%s2772_s23 + $0x98] sm:$0xff]   ;;  %v2469_v46 = vld [vmem:[%s2772_s23 + $0xa0] sm:$0xff]   ;;  %s2144_s15 = sshll.u32 (%p1016_p1), %s2746_s21, 1 }
 0x166   : >> { %1527 = vperm.xlu0 %2444, %v1524_v23   ;;  %v2468_v45 = vld [vmem:[%s2772_s23 + $0xd8] sm:$0xff]   ;;  %v2470_v47 = vld [vmem:[%s2772_s23 + $0xe0] sm:$0xff]   ;;  %v2471_v48 = vld [vmem:[%s2772_s23 + $0xa8] sm:$0xff]   ;;  %s3121_s21 = sadd.s32 (%p1016_p1), %s2595_s28, %s2144_s15  ;;  %s3235_s8 = sand.u32 (%p1016_p1), 1, %s2583_s25  }
 0x167   : >> { %2232 = vmatpush3.bf16.msra.mxu0 %v2449_v18  ;;  %v2472_v49 = vld [vmem:[%s2772_s23 + $0xe8] sm:$0xff]   ;;  %v2473_v50 = vld [vmem:[%s2772_s23 + $0xb0] sm:$0xff]   ;;  %v2475_v52 = vld [vmem:[%s2772_s23 + $0xb8] sm:$0xff]   ;;  %s2145_s28 = sshll.u32 (%p1016_p1), %s3121_s21, 7  ;;  %s3154_s11 = scalar_lea.sflag (%p1016_p1), [#allocation7], %s3235_s8 }
 0x168   : >> { %2252 = vmatpush3.bf16.msra.mxu1 %v2450_v19  ;;  %2233 = vmatprep.subr.bf16.mxu0 %v2615_v62  ;;  %v2474_v51 = vld [vmem:[%s2772_s23 + $0xf0] sm:$0xff]   ;;  %v2476_v53 = vld [vmem:[%s2772_s23 + $0xf8] sm:$0xff]   ;;  %v1032_v1 = vld [vmem:[%s3057_s20] sm:$0xff]  ;;  %s1873_s23 = sshll.u32 (%p1016_p1), %s2774_s13, 4  ;;  %s3142_s30 = scalar_lea.hbm (%p1016_p1), %s3213_s7, %s2145_s28  ;;  %s3137_s23 = int_to_ptr.vmem [resolvable:$true] %s1873_s23 }
 0x169   : >> { %2253 = vmatprep.subr.bf16.mxu1 %v2615_v62  ;;  %v1153_v4 = vld [vmem:[%s3057_s20 + $0x8] sm:$0xff]  ;;  %v1033_v8 = vld [vmem:[%s3057_s20 + $0x20] sm:$0xff]  ;;  %v1275_v18 = vld [vmem:[%s3057_s20 + $0x10] sm:$0xff]  ;;  %s2509_s12 = scalar_lea.vmem (%p1016_p1), %s3137_s23, 2048  ;;  %s2620_s14 = smov (%p1016_p1), [#allocation6]  }
 0x16a   : >> { %1530 = vperm.xlu0 %2444, %v1525_v24   ;;  %v1154_v5 = vld [vmem:[%s3057_s20 + $0x28] sm:$0xff]  ;;  %v1387_v19 = vld [vmem:[%s3057_s20 + $0x18] sm:$0xff]  ;;  %p2510_p2 = scmp.ne.s32.totalorder (%p1016_p1), %s3137_s23, %s2509_s12  ;;  %s2513_s9 = sshll.u32 (%p1016_p1), %s2620_s14, 4  ;;  %s2514_s9 = int_to_ptr.vmem [resolvable:$false] %s2513_s9 }
 0x16b   : >> { %2234 = vmatpush3.bf16.msra.mxu0 %v2451_v21  ;;  %s2515_s10 = scalar_lea.vmem (%p1016_p1), %s2514_s9, 4096  ;;  %p2516_p6 = scmp.lt.s32.totalorder (%p1016_p1), %s3137_s23, %s2514_s9 }
 0x16c   : >> { %2254 = vmatpush3.bf16.msra.mxu1 %v2452_v22  ;;  %2235 = vmatprep.subr.bf16.mxu0 %v2615_v62  ;;  %v1276_v22 = vld [vmem:[%s3057_s20 + $0x30] sm:$0xff]  ;;  %p2511_p3 = pnand (%p1016_p1), %p2510_p2, %p2725_p5  ;;  %p2517_p7 = scmp.lt.s32.totalorder (%p1016_p1), %s2515_s10, %s2509_s12 }
 0x16d   : >> { %2255 = vmatprep.subr.bf16.mxu1 %v2615_v62 }
 0x16e   : > { %p2512_p4 = pneg (%p1016_p1), %p2511_p3  ;;  %p2518_p9 = por (%p1016_p1), %p2517_p7, %p2516_p6 }
 0x16f   : >> { %2236 = vmatpush3.bf16.msra.mxu0 %v2453_v25 }
 0x170   : >> { %2256 = vmatpush3.bf16.msra.mxu1 %v2454_v26  ;;  %2237 = vmatprep.subr.bf16.mxu0 %v2615_v62  ;;  %v1388_v26 = vld [vmem:[%s3057_s20 + $0x38] sm:$0xff]  ;;  %p2519_p10 = pnand (%p1016_p1), %p2518_p9, %p2512_p4 }
 0x171   : >> { %2257 = vmatprep.subr.bf16.mxu1 %v2615_v62 }
 0x173   : >> { %2238 = vmatpush3.bf16.msra.mxu0 %v2455_v27 }
 0x174   : >> { %2258 = vmatpush3.bf16.msra.mxu1 %v2456_v28  ;;  %2239 = vmatprep.subr.bf16.mxu0 %v2615_v62 }
 0x175   : >> { %2259 = vmatprep.subr.bf16.mxu1 %v2615_v62 }
 0x177   : >> { %2240 = vmatpush3.bf16.msra.mxu0 %v2457_v30 }
 0x178   : >> { %2260 = vmatpush3.bf16.msra.mxu1 %v2458_v31  ;;  %2241 = vmatprep.subr.bf16.mxu0 %v2615_v62 }
 0x179   : >> { %2261 = vmatprep.subr.bf16.mxu1 %v2615_v62 }
 0x17b   : >> { %2242 = vmatpush3.bf16.msra.mxu0 %v2459_v32 }
 0x17c   : >> { %2262 = vmatpush3.bf16.msra.mxu1 %v2460_v36  ;;  %2267 = vmatprep.subr.bf16.mxu0 %v2615_v62 }
 0x17d   : >> { %2287 = vmatprep.subr.bf16.mxu1 %v2615_v62 }
 0x17e   : >> { %2244 = vmatmul.mubr.bf16.vlgmr.msra.gmra.mrb[0].mxu0 %v1028_v37 }
 0x17f   : >> { %2264 = vmatmul.mubr.bf16.vlgmr.msra.gmra.mrb[0].mxu1 %v1028_v37  ;;  %2268 = vmatpush3.bf16.msra.mxu0 %v2461_v38 }
 0x180   : >> { %2288 = vmatpush3.bf16.msra.mxu1 %v2462_v39  ;;  %2269 = vmatprep.subr.bf16.mxu0 %v2615_v62 }
 0x181   : >> { %2289 = vmatprep.subr.bf16.mxu1 %v2615_v62  ;;  %2283 = vmatprep.mubr.msk.bf16.mxu0 %vm2616_vm0, %v2615_v62 }
 0x182   : >> { %2303 = vmatprep.mubr.msk.bf16.mxu1 %vm2616_vm0, %v2615_v62 }
 0x183   : >> { %2270 = vmatpush3.bf16.msra.mxu0 %v2463_v40 }
 0x184   : >> { %2290 = vmatpush3.bf16.msra.mxu1 %v2464_v41  ;;  %2271 = vmatprep.subr.bf16.mxu0 %v2615_v62 }
 0x185   : >> { %2291 = vmatprep.subr.bf16.mxu1 %v2615_v62 }
 0x187   : >> { %2272 = vmatpush3.bf16.msra.mxu0 %v2465_v42 }
 0x188   : >> { %2292 = vmatpush3.bf16.msra.mxu1 %v2466_v43  ;;  %2273 = vmatprep.subr.bf16.mxu0 %v2615_v62 }
 0x189   : >> { %2293 = vmatprep.subr.bf16.mxu1 %v2615_v62 }
 0x18b   : >> { %2274 = vmatpush3.bf16.msra.mxu0 %v2467_v44  ;;  %v1509_v44 = vld [vmem:[#allocation3] sm:$0xff] }
 0x18c   : >> { %2294 = vmatpush3.bf16.msra.mxu1 %v2468_v45  ;;  %2275 = vmatprep.subr.bf16.mxu0 %v2615_v62 }
 0x18d   : >> { %2295 = vmatprep.subr.bf16.mxu1 %v2615_v62 }
 0x18f   : >> { %2276 = vmatpush3.bf16.msra.mxu0 %v2469_v46 }
 0x190   : >> { %2296 = vmatpush3.bf16.msra.mxu1 %v2470_v47  ;;  %2277 = vmatprep.subr.bf16.mxu0 %v2615_v62  ;;  %v1510_v47 = vld [vmem:[#allocation3 + $0x8] sm:$0xff] }
 0x191   : >> { %2297 = vmatprep.subr.bf16.mxu1 %v2615_v62 }
 0x193   : >> { %2278 = vmatpush3.bf16.msra.mxu0 %v2471_v48 }
 0x194   : >> { %2298 = vmatpush3.bf16.msra.mxu1 %v2472_v49  ;;  %2279 = vmatprep.subr.bf16.mxu0 %v2615_v62 }
 0x195   : >> { %2299 = vmatprep.subr.bf16.mxu1 %v2615_v62 }
 0x197   : >> { %2280 = vmatpush3.bf16.msra.mxu0 %v2473_v50 }
 0x198   : >> { %2300 = vmatpush3.bf16.msra.mxu1 %v2474_v51  ;;  %2281 = vmatprep.subr.bf16.mxu0 %v2615_v62 }
 0x199   : >> { %2301 = vmatprep.subr.bf16.mxu1 %v2615_v62 }
 0x19b   : >> { %2282 = vmatpush3.bf16.msra.mxu0 %v2475_v52 }
 0x19c   : >> { %2302 = vmatpush3.bf16.msra.mxu1 %v2476_v53 }
 0x19e   : >> { %2284 = vmatmul.mubr.bf16.vlgmr.msra.gmra.mrb[4].mxu0 %v1028_v37 }
 0x19f   : >> { %2304 = vmatmul.mubr.bf16.vlgmr.msra.gmra.mrb[4].mxu1 %v1028_v37 }
 0x1e5   : >> { %v1528_v41 = vpop.permute.xlu0 %1527 }
 0x1e6   : >> { %vm1532_vm3 = vcmp.eq.s32.totalorder %v1528_v41, 1 }
 0x1e9   : >> { %v1531_v51 = vpop.permute.xlu0 %1530 }
 0x1ea   : >> { %vm1533_vm4 = vcmp.eq.s32.totalorder %v1531_v51, 1 }
 0x251   : >> { %v1132_v54 = vpop.f32.mrb[0].mxu0 }
 0x252   : >> { %v1254_v55 = vpop.f32.mrb[0].mxu1  ;;  %v2245_v57 = vpop.f32.mrb[1].mxu0  ;;  %v1139_v6 = vadd.f32 %v1132_v54, %v1032_v1 }
 0x253   : >> { %v2265_v3 = vpop.f32.mrb[1].mxu1  ;;  %v1135_v58 = vpop.f32.mrb[2].mxu0  ;;  %v1261_v7 = vadd.f32 %v1254_v55, %v1153_v4 }
 0x254   : >> { %v1257_v59 = vpop.f32.mrb[2].mxu1  ;;  %v2246_v60 = vpop.f32.mrb[3].mxu0  ;;  %v2063_v10 = vmul.f32 -1.442695, %v1139_v6  ;;  %v1140_v11 = vadd.f32 %v1135_v58, %v1033_v8 }
 0x255   : >> { %v2266_v2 = vpop.f32.mrb[3].mxu1  ;;  %v1262_v9 = vadd.f32 %v1257_v59, %v1154_v5  ;;  %v2089_v12 = vmul.f32 -1.442695, %v1261_v7 }
 0x256   : >> { %2477 = vpow2.f32 %v2063_v10  ;;  %v2064_v14 = vmul.f32 -1.442695, %v1140_v11 }
 0x257   : >> { %v2090_v13 = vmul.f32 -1.442695, %v1262_v9  ;;  %2479 = vpow2.f32 %v2089_v12 }
 0x259   : >> { %2481 = vpow2.f32 %v2090_v13 }
 0x25a   : >> { %2483 = vpow2.f32 %v2064_v14 }
 0x260   : >> { %v2478_v15 = vpop.eup %2477 }
 0x261   : >> { %v2480_v61 = vpop.eup %2479  ;;  %v1147_v63 = vadd.f32 1.0, %v2478_v15 }
 0x262   : >> { %v1269_v16 = vadd.f32 1.0, %v2480_v61 }
 0x263   : >> { %v2482_v62 = vpop.eup %2481  ;;  %2485 = vrcp.f32 %v1147_v63 }
 0x264   : >> { %v2484_v0 = vpop.eup %2483  ;;  %v1270_v17 = vadd.f32 1.0, %v2482_v62  ;;  %2487 = vrcp.f32 %v1269_v16  ;;  %v2618_v16 = vmov (%p1016_p1), 1983009808  }
 0x265   : >> { %v1148_v20 = vadd.f32 1.0, %v2484_v0 }
 0x266   : >> { %2489 = vrcp.f32 %v1270_v17  ;;  %v1569_v17 = vunpack.c.l.s4 (%p1016_p1), %v2618_v16 }
 0x26d   : >> { %v2486_v42 = vpop.eup %2485 }
 0x26e   : >> { %v2488_v43 = vpop.eup %2487 }
 0x26f   : >> { %v1511_v49 = vmul.f32 %v2488_v43, %v1509_v44 }
 0x270   : >> { %v2490_v45 = vpop.eup %2489 }
 0x271   : >> { %v1376_v21 = vpop.f32.mrb[4].mxu0  ;;  %v1512_v55 = vmul.f32 %v2490_v45, %v1510_v47 }
 0x272   : >> { %v1383_v23 = vadd.f32 %v1376_v21, %v1275_v18  ;;  %v1488_v24 = vpop.f32.mrb[4].mxu1  ;;  %v2285_v25 = vpop.f32.mrb[5].mxu0 }
 0x273   : >> { %v1495_v27 = vadd.f32 %v1488_v24, %v1387_v19  ;;  %v2305_v28 = vpop.f32.mrb[5].mxu1  ;;  %v1379_v30 = vpop.f32.mrb[6].mxu0  ;;  %v1570_v25 = vunpack.c.0.s8 (%p1016_p1), %v1569_v17 }
 0x274   : >> { %2491 = vtanh.f32 %v1383_v23  ;;  %v1384_v31 = vadd.f32 %v1379_v30, %v1276_v22  ;;  %v1491_v32 = vpop.f32.mrb[6].mxu1  ;;  %v2286_v36 = vpop.f32.mrb[7].mxu0 }
 0x275   : >> { %2493 = vrcp.f32 %v1148_v20  ;;  %v2139_v37 = vmul.f32 -1.442695, %v1495_v27  ;;  %v1496_v38 = vadd.f32 %v1491_v32, %v1388_v26  ;;  %v2306_v39 = vpop.f32.mrb[7].mxu1  ;;  %v2619_v20 = vmov (%p1016_p1), 1934713408  }
 0x276   : >> { %2495 = vtanh.f32 %v1384_v31  ;;  %v1633_v21 = vunpack.c.l.s4 (%p1016_p1), %v2619_v20  ;;  %v1573_v41 = vsub.s32 (%p1016_p1), %v1570_v25, %v2885_v56 }
 0x277   : >> { %2497 = vpow2.f32 %v2139_v37  ;;  %v2140_v40 = vmul.f32 -1.442695, %v1496_v38 }
 0x278   : > { %v1634_v31 = vunpack.c.0.s8 (%p1016_p1), %v1633_v21 }
 0x279   : >> { %2499 = vpow2.f32 %v2140_v40 }
 0x27e   : >> { %v2492_v46 = vpop.eup %2491 }
 0x27f   : >> { %v2494_v48 = vpop.eup %2493  ;;  %v1513_v50 = vmul.f32 %v2492_v46, %v2486_v42  ;;  %v3102_v46 = vsub.s32 (%p1016_p1), %v1634_v31, %v2885_v56 }
 0x280   : >> { %v2496_v52 = vpop.eup %2495 }
 0x281   : >> { %v2498_v53 = vpop.eup %2497  ;;  %v1515_v54 = vadd.f32 %v1513_v50, %v1511_v49  ;;  %v1514_v57 = vmul.f32 %v2496_v52, %v2494_v48 }
 0x282   : >> { %v1503_v3 = vadd.f32 1.0, %v2498_v53 }
 0x283   : >> { %v2500_v58 = vpop.eup %2499  ;;  %2501 = vtanh.f32 %v1515_v54  ;;  %v1534_v59 = vsel %vm1532_vm3, %v1515_v54, %v1509_v44  ;;  %v1516_v60 = vadd.f32 %v1514_v57, %v1512_v55 }
 0x284   : >> { %2503 = vrcp.f32 %v1503_v3  ;;  %v1504_v1 = vadd.f32 1.0, %v2500_v58  ;;  %1536 = vst [vmem:[#allocation3] sm:$0xff] %v1534_v59 }
 0x285   : >> { %2505 = vtanh.f32 %v1516_v60  ;;  %v1535_v2 = vsel %vm1533_vm4, %v1516_v60, %v1510_v47 }
 0x286   : >> { %2507 = vrcp.f32 %v1504_v1  ;;  %1537 = vst [vmem:[#allocation3 + $0x8] sm:$0xff] %v1535_v2 }
 0x28d   : >> { %v2502_v4 = vpop.eup %2501 }
 0x28e   : >> { %v2504_v5 = vpop.eup %2503  ;;  %1018 = sbr.rel (!%p1016_p1) target bundleno = 349 (0x15d), region = 108 }
 0x28f   : >> { %v2506_v6 = vpop.eup %2505  ;;  %v1519_v7 = vmul.f32 %v2504_v5, %v2502_v4 }
 0x290   : >> { %v2508_v8 = vpop.eup %2507 }
 0x291   : >> { %v1540_v9 = vsel %vm1532_vm3, %v1519_v7, %v3011_v34  ;;  %v1544_v10 = vsel %vm1532_vm3, %v1519_v7, 0.0  ;;  %v1520_v11 = vmul.f32 %v2508_v8, %v2506_v6 }
 0x292   : >> { %1542 = vst [vmem:[#allocation2] sm:$0xff] %v1540_v9  ;;  %1548 = vst [vmem:[%s1547_s26] sm:$0xff] %v1544_v10 }
 0x293   : >> { %v1541_v12 = vsel %vm1533_vm4, %v1520_v11, %v3013_v35  ;;  %v1545_v13 = vsel %vm1533_vm4, %v1520_v11, 0.0 }
 0x294   : >> { %1543 = vst [vmem:[#allocation2 + $0x8] sm:$0xff] %v1541_v12  ;;  %1549 = vst [vmem:[%s1547_s26 + $0x8] sm:$0xff] %v1545_v13 }
 0x29b   : > { %v1550_v34 = vld [vmem:[#allocation5] sm:$0xff]  ;;  %v1552_v14 = vld [vmem:[#allocation5 + $0x10] sm:$0xff]  ;;  %v3079_v24 = vld [vmem:[#allocation5 + $0x8] sm:$0xff] }
 0x29c   : > { %v1554_v15 = vld [vmem:[#allocation5 + $0x20] sm:$0xff]  ;;  %v1556_v61 = vld [vmem:[#allocation5 + $0x30] sm:$0xff]  ;;  %v3081_v27 = vld [vmem:[#allocation5 + $0x18] sm:$0xff] }
 0x29d   : > { %v1558_v62 = vld [vmem:[#allocation5 + $0x40] sm:$0xff]  ;;  %v1560_v63 = vld [vmem:[#allocation5 + $0x50] sm:$0xff]  ;;  %v1566_v0 = vcombine.low %v1550_v34, %v1554_v15  ;;  %v1582_v19 = vcombine.low %v1552_v14, %v1556_v61  ;;  %v1567_v22 = vcombine.high %v1550_v34, %v1554_v15  ;;  %v1583_v23 = vcombine.high %v1552_v14, %v1556_v61  ;;  %v3083_v28 = vld [vmem:[#allocation5 + $0x28] sm:$0xff] }
 0x29e   : > { %v1562_v35 = vld [vmem:[#allocation5 + $0x60] sm:$0xff]  ;;  %v1564_v18 = vld [vmem:[#allocation5 + $0x70] sm:$0xff]  ;;  %v3085_v30 = vld [vmem:[#allocation5 + $0x38] sm:$0xff]  ;;  %v1702_v39 = vcombine.low %v3079_v24, %v3083_v28  ;;  %v1703_v44 = vcombine.high %v3079_v24, %v3083_v28 }
 0x29f   : > { %v1598_v26 = vcombine.low %v1558_v62, %v1562_v35  ;;  %v1614_v29 = vcombine.low %v1560_v63, %v1564_v18  ;;  %v1599_v33 = vcombine.high %v1558_v62, %v1562_v35  ;;  %v1615_v32 = vcombine.high %v1560_v63, %v1564_v18  ;;  %v3087_v36 = vld [vmem:[#allocation5 + $0x48] sm:$0xff]  ;;  %v3089_v37 = vld [vmem:[#allocation5 + $0x58] sm:$0xff] }
 0x2a0   : > { %v1563_v38 = vld [vmem:[#allocation5 + $0x68] sm:$0xff]  ;;  %v1718_v40 = vcombine.low %v3081_v27, %v3085_v30  ;;  %v1565_v42 = vld [vmem:[#allocation5 + $0x78] sm:$0xff]  ;;  %v1719_v45 = vcombine.high %v3081_v27, %v3085_v30  ;;  %v1574_v50 = vrot.slane %v1566_v0, %v1573_v41  ;;  %v1590_v51 = vrot.slane %v1582_v19, %v1573_v41 }
 0x2a1   : > { %v1734_v43 = vcombine.low %v3087_v36, %v1563_v38  ;;  %v1750_v47 = vcombine.low %v3089_v37, %v1565_v42  ;;  %v1735_v48 = vcombine.high %v3087_v36, %v1563_v38  ;;  %v1751_v49 = vcombine.high %v3089_v37, %v1565_v42 }
 0x2a2   : > { %v1606_v52 = vrot.slane %v1598_v26, %v1573_v41  ;;  %v1622_v53 = vrot.slane %v1614_v29, %v1573_v41  ;;  %v1581_v54 = vrot.slane %v1567_v22, %v1573_v41  ;;  %v1597_v55 = vrot.slane %v1583_v23, %v1573_v41 }
 0x2a3   : > { %v1613_v57 = vrot.slane %v1599_v33, %v1573_v41  ;;  %v1629_v3 = vrot.slane %v1615_v32, %v1573_v41  ;;  %v1630_v58 = vcombine.low %v1574_v50, %v1590_v51  ;;  %v1631_v60 = vcombine.high %v1574_v50, %v1590_v51 }
 0x2a4   : > { %v1662_v59 = vcombine.low %v1606_v52, %v1622_v53  ;;  %v1663_v56 = vcombine.high %v1606_v52, %v1622_v53  ;;  %v1646_v1 = vcombine.low %v1581_v54, %v1597_v55  ;;  %v1647_v4 = vcombine.high %v1581_v54, %v1597_v55 }
 0x2a5   : > { %v1678_v2 = vcombine.low %v1613_v57, %v1629_v3  ;;  %v1679_v5 = vcombine.high %v1613_v57, %v1629_v3  ;;  %v1638_v6 = vrot.slane %v1630_v58, %v3102_v46  ;;  %v1645_v8 = vrot.slane %v1631_v60, %v3102_v46 }
 0x2a6   : > { %v1670_v7 = vrot.slane %v1662_v59, %v3102_v46  ;;  %v1677_v9 = vrot.slane %v1663_v56, %v3102_v46  ;;  %v1654_v10 = vrot.slane %v1646_v1, %v3102_v46  ;;  %v1661_v12 = vrot.slane %v1647_v4, %v3102_v46 }
 0x2a7   : > { %v1686_v11 = vrot.slane %v1678_v2, %v3102_v46  ;;  %v1693_v13 = vrot.slane %v1679_v5, %v3102_v46  ;;  %v1710_v17 = vrot.slane %v1702_v39, %v1573_v41  ;;  %v1726_v35 = vrot.slane %v1718_v40, %v1573_v41 }
 0x2a8   : > { %v1694_v34 = vcombine.low %v1638_v6, %v1670_v7  ;;  %v1695_v14 = vcombine.high %v1638_v6, %v1670_v7  ;;  %v1696_v15 = vcombine.low %v1645_v8, %v1677_v9  ;;  %v1697_v61 = vcombine.high %v1645_v8, %v1677_v9 }
 0x2a9   : > { %v1698_v62 = vcombine.low %v1654_v10, %v1686_v11  ;;  %v1699_v63 = vcombine.high %v1654_v10, %v1686_v11  ;;  %v1700_v0 = vcombine.low %v1661_v12, %v1693_v13  ;;  %v1701_v16 = vcombine.high %v1661_v12, %v1693_v13 }
 0x2aa   : > { %1838 = vst [vmem:[%s2774_s13] sm:$0xff] %v1694_v34  ;;  %1839 = vst [vmem:[%s2774_s13 + $0x8] sm:$0xff] %v1695_v14  ;;  %v1742_v18 = vrot.slane %v1734_v43, %v1573_v41  ;;  %v1758_v19 = vrot.slane %v1750_v47, %v1573_v41  ;;  %v1717_v20 = vrot.slane %v1703_v44, %v1573_v41 }
 0x2ab   : > { %1840 = vst [vmem:[%s2774_s13 + $0x10] sm:$0xff] %v1696_v15  ;;  %1841 = vst [vmem:[%s2774_s13 + $0x18] sm:$0xff] %v1697_v61  ;;  %v1733_v21 = vrot.slane %v1719_v45, %v1573_v41  ;;  %v1749_v22 = vrot.slane %v1735_v48, %v1573_v41  ;;  %v1765_v23 = vrot.slane %v1751_v49, %v1573_v41 }
 0x2ac   : > { %1842 = vst [vmem:[%s2774_s13 + $0x20] sm:$0xff] %v1698_v62  ;;  %1843 = vst [vmem:[%s2774_s13 + $0x28] sm:$0xff] %v1699_v63  ;;  %v1766_v24 = vcombine.low %v1710_v17, %v1726_v35  ;;  %v1798_v25 = vcombine.low %v1742_v18, %v1758_v19  ;;  %v1767_v26 = vcombine.high %v1710_v17, %v1726_v35 }
 0x2ad   : > { %1844 = vst [vmem:[%s2774_s13 + $0x30] sm:$0xff] %v1700_v0  ;;  %1845 = vst [vmem:[%s2774_s13 + $0x38] sm:$0xff] %v1701_v16  ;;  %v1799_v29 = vcombine.high %v1742_v18, %v1758_v19  ;;  %v1782_v33 = vcombine.low %v1717_v20, %v1733_v21  ;;  %v1814_v27 = vcombine.low %v1749_v22, %v1765_v23 }
 0x2ae   : > { %v1783_v28 = vcombine.high %v1717_v20, %v1733_v21  ;;  %v1815_v30 = vcombine.high %v1749_v22, %v1765_v23  ;;  %v1774_v31 = vrot.slane %v1766_v24, %v3102_v46  ;;  %v1806_v32 = vrot.slane %v1798_v25, %v3102_v46 }
 0x2af   : > { %v1781_v36 = vrot.slane %v1767_v26, %v3102_v46  ;;  %v1813_v37 = vrot.slane %v1799_v29, %v3102_v46  ;;  %v1790_v38 = vrot.slane %v1782_v33, %v3102_v46  ;;  %v1822_v39 = vrot.slane %v1814_v27, %v3102_v46 }
 0x2b0   : > { %v1797_v40 = vrot.slane %v1783_v28, %v3102_v46  ;;  %v1829_v41 = vrot.slane %v1815_v30, %v3102_v46  ;;  %v1830_v42 = vcombine.low %v1774_v31, %v1806_v32  ;;  %v1831_v43 = vcombine.high %v1774_v31, %v1806_v32 }
 0x2b1   : > { %v1832_v44 = vcombine.low %v1781_v36, %v1813_v37  ;;  %v1833_v45 = vcombine.high %v1781_v36, %v1813_v37  ;;  %v1834_v47 = vcombine.low %v1790_v38, %v1822_v39  ;;  %v1835_v46 = vcombine.high %v1790_v38, %v1822_v39 }
 0x2b2   : > { %v1836_v48 = vcombine.low %v1797_v40, %v1829_v41  ;;  %v1837_v49 = vcombine.high %v1797_v40, %v1829_v41  ;;  %1846 = vst [vmem:[%s2774_s13 + $0x40] sm:$0xff] %v1830_v42  ;;  %1847 = vst [vmem:[%s2774_s13 + $0x48] sm:$0xff] %v1831_v43 }
 0x2b3   : > { %1848 = vst [vmem:[%s2774_s13 + $0x50] sm:$0xff] %v1832_v44  ;;  %1849 = vst [vmem:[%s2774_s13 + $0x58] sm:$0xff] %v1833_v45 }
 0x2b4   : > { %1850 = vst [vmem:[%s2774_s13 + $0x60] sm:$0xff] %v1834_v47  ;;  %1851 = vst [vmem:[%s2774_s13 + $0x68] sm:$0xff] %v1835_v46 }
 0x2b5   : > { %1852 = vst [vmem:[%s2774_s13 + $0x70] sm:$0xff] %v1836_v48  ;;  %1853 = vst [vmem:[%s2774_s13 + $0x78] sm:$0xff] %v1837_v49 }
 0x2b6   : > { %2522 = shalt.err (!%p2519_p10)
}
 0x2b7   : > { %s2523_s13 = scalar_lea.hbm %s3142_s30, 2048  ;;  %s2527_s17 = scalar_lea.hbm %s3213_s7, 12288 }
 0x2b8   : > { %p2524_p11 = scmp.ne.s32.totalorder %s3142_s30, %s2523_s13  ;;  %p2528_p0 = scmp.lt.u32.totalorder %s3142_s30, %s3213_s7 }
 0x2b9   : > { %p2529_p1 = scmp.lt.u32.totalorder %s2527_s17, %s2523_s13  ;;  %p2531_p3 = scmp.lt.u32.totalorder %s2523_s13, %s3142_s30 }
 0x2ba   : > { %p2525_p12 = pnand %p2524_p11, %p2725_p5 }
 0x2bb   : > { %p2530_p2 = por %p2529_p1, %p2528_p0 }
 0x2bc   : > { %p2526_p13 = pneg %p2525_p12 }
 0x2bd   : > { %p2532_p4 = por %p2531_p3, %p2530_p2 }
 0x2bf   : > { %p2533_p6 = pnand %p2532_p4, %p2526_p13 }
 0x2c1   : > { %2536 = shalt.err (!%p2533_p6)
}
 0x2c2   : > { %s2621_s24 = smov 128   ;;  %s2622_s26 = smov 768  }
 0x2c3   : > { %s2623_s15 = smov 8  }
 0x2c4   : > { %2307 = dma.vmem_to_hbm [thread:$0]  (%p2725_p5), %s3137_s23, 2048, %s3142_s30, %s3154_s11, %s2621_s24, %s2622_s26, %s2623_s15  }
 0x2c5 PF: > { %s3236_s21 = sld [smem:[#allocation13_spill]]  ;;  %s3237_s28 = sld [smem:[#allocation9_spill]] }
 0x2cb   : > { %p2313_p7 = scmp.ge.s32.totalorder %s3236_s21, 2  ;;  %s1888_s29 = sand.u32 1, %s3237_s28  }
 0x2cc   : > { %s1889_s8 = scalar_lea.sflag [#allocation7], %s1888_s29 }
 0x2cd   : > { %p2310_p9 = pnand %p2313_p7, %p2731_p8 }
 0x2cf   : > { %2574 = dma.done.wait (!%p2310_p9), %s1889_s8, 2048  }
 0x2d0   : > { %2576 = vsyncadd (!%p2310_p9), %s1889_s8, 4294965248  ;;  %s20_s8 = sadd.s32 1, %s3236_s21   ;;  %s3239_s12 = sld [smem:[#allocation10_spill]] }
 0x2d1   : > { %p17_p10 = scmp.ge.s32.totalorder %s20_s8, 8   ;;  %s3240_s26 = sld [smem:[#allocation17_spill]] }
 0x2d2   : > { %s3241_s27 = sld [smem:[#allocation11_spill]]  ;;  %s3242_s28 = sld [smem:[#allocation12_spill]] }
 0x2d3   : > { %s3243_s29 = sld [smem:[#allocation14_spill]]  ;;  %s3244_s30 = sld [smem:[#allocation15_spill]] }
 0x2d4   : > { %s3245_s24 = smov %s2583_s25  ;;  %19 = sbr.rel (!%p17_p10) target bundleno = 5 (0x5), region = 119 }
 0x2d6   : > { %s3246_s25 = smov %s3239_s12 }
 0x2db   :  { %1894 = vsyncpa [#allocation7], 1 }
 0x2dc   :  { %1896 = vsyncpa [#allocation7 + $0x1], 1 }

// kernel: encoder_forward.4
= control target key start
LH: loop header
LB: loop body
LE: loop exit
PB: predicated region body
PF: predicated region fallthrough
CT: control target
= control target key end

     0   :  { %s3514_s18 = smov 0   ;;  %s3516_s19 = smov 0   ;;  %s4082_s0 = inlined_call_operand.vmem [shape: bf16[24,16,64], index: 0, kind: input, shape index: {}]   ;;  %s4083_s1 = inlined_call_operand.vmem [shape: f32[1,64], index: 1, kind: input, shape index: {}]   ;;  %s4084_s2 = inlined_call_operand.vmem [shape: f32[1,64], index: 2, kind: input, shape index: {}]   ;;  %s4085_s3 = inlined_call_operand.vmem [shape: bf16[5,64,128], index: 3, kind: input, shape index: {}]   ;;  %s4086_s4 = inlined_call_operand.vmem [shape: bf16[24,16,128], index: 4, kind: output, shape index: {0}]   ;;  %s4087_s5 = inlined_call_operand.vmem [shape: f32[2,2,128], index: 5, kind: output, shape index: {1}]  }
   0x1   :  { %s3518_s20 = smov 0  }
   0x2 LB: > { %s3530_s1 = sadd.s32 4294967295, %s3481_s20   ;;  %s3533_s2 = sadd.s32 1, %s3481_s20   ;;  %s3481_s20 = sphi %s3518_s20, %s4091_s20   ;;  %s3477_s19 = sphi %s3516_s19, %s4090_s19   ;;  %s3473_s18 = sphi %s3514_s18, %s4089_s18  }
   0x3   : > { %s20_s21 = ssub.s32 %s3481_s20, %s3533_s2  ;;  %s23_s22 = sadd.s32 1, %s3477_s19 }
   0x4   : > { %p21_p0 = scmp.eq.s32.totalorder %s20_s21, 0  ;;  %p30_p1 = scmp.ne.s32.totalorder %s3477_s19, %s3473_s18 }
   0x5   : > { %p31_p2 = scmp.eq.s32.totalorder %s3481_s20, 0  ;;  %p123_p3 = scmp.eq.s32.totalorder %s3530_s1, 1 }
   0x6   : > { %s3543_s23 = scalar_select %p21_p0, %s3477_s19, %s23_s22  }
   0x7   : > { %p32_p4 = por %p31_p2, %p30_p1  ;;  %p3545_p5 = por %p123_p3, %p30_p1 }
   0x8   : > { %p2515_p6 = scmp.ge.s32.totalorder %s3481_s20, 2 }
   0xa   : > { %180 = sbr.rel (%p2515_p6) target bundleno = 37 (0x25), region = 28 }
  0x11   : > { %183 = sbr.rel (!%p32_p4) target bundleno = 37 (0x25), region = 32  ;;  %s185_s25 = sand.u32 (%p32_p4), 1, %s3477_s19  }
  0x12   : > { %s2516_s26 = sshll.u32 (%p32_p4), %s3481_s20, 2  ;;  %s3343_s27 = smul.u32 (%p32_p4), 96, %s185_s25 }
  0x13   : > { %s3555_s30 = scalar_lea.vmem (%p32_p4), %s4082_s0, %s2516_s26 }
  0x14   : > { %v205_v0 = vld [vmem:[%s3555_s30] sm:$0xf] (%p32_p4)  ;;  %v207_v1 = vld [vmem:[%s3555_s30 + $0x8] sm:$0xf] (%p32_p4)  ;;  %v209_v2 = vld [vmem:[%s3555_s30 + $0x10] sm:$0xf] (%p32_p4) }
  0x15   : > { %v211_v3 = vld [vmem:[%s3555_s30 + $0x18] sm:$0xf] (%p32_p4)  ;;  %v213_v4 = vld [vmem:[%s3555_s30 + $0x20] sm:$0xf] (%p32_p4)  ;;  %s3562_s6 = scalar_lea.vmem (%p32_p4), [#allocation2], %s3343_s27 }
  0x16   : > { %206 = vst [vmem:[%s3562_s6] sm:$0xf] (%p32_p4), %v205_v0  ;;  %208 = vst [vmem:[%s3562_s6 + $0x4] sm:$0xf] (%p32_p4), %v207_v1  ;;  %v215_v5 = vld [vmem:[%s3555_s30 + $0x28] sm:$0xf] (%p32_p4) }
  0x17   : > { %210 = vst [vmem:[%s3562_s6 + $0x8] sm:$0xf] (%p32_p4), %v209_v2  ;;  %212 = vst [vmem:[%s3562_s6 + $0xc] sm:$0xf] (%p32_p4), %v211_v3  ;;  %v217_v6 = vld [vmem:[%s3555_s30 + $0x30] sm:$0xf] (%p32_p4) }
  0x18   : > { %214 = vst [vmem:[%s3562_s6 + $0x10] sm:$0xf] %v213_v4  ;;  %v219_v7 = vld [vmem:[%s3555_s30 + $0x38] sm:$0xf]  ;;  %216 = vst [vmem:[%s3562_s6 + $0x14] sm:$0xf] %v215_v5 }
  0x19   : > { %218 = vst [vmem:[%s3562_s6 + $0x18] sm:$0xf] %v217_v6  ;;  %220 = vst [vmem:[%s3562_s6 + $0x1c] sm:$0xf] %v219_v7  ;;  %v221_v8 = vld [vmem:[%s3555_s30 + $0x40] sm:$0xf] }
  0x1a   : > { %v223_v9 = vld [vmem:[%s3555_s30 + $0x48] sm:$0xf]  ;;  %v225_v10 = vld [vmem:[%s3555_s30 + $0x50] sm:$0xf]  ;;  %222 = vst [vmem:[%s3562_s6 + $0x20] sm:$0xf] %v221_v8 }
  0x1b   : > { %224 = vst [vmem:[%s3562_s6 + $0x24] sm:$0xf] %v223_v9  ;;  %226 = vst [vmem:[%s3562_s6 + $0x28] sm:$0xf] %v225_v10  ;;  %v227_v11 = vld [vmem:[%s3555_s30 + $0x58] sm:$0xf] }
  0x1c   : > { %v229_v12 = vld [vmem:[%s3555_s30 + $0x60] sm:$0xf]  ;;  %v231_v13 = vld [vmem:[%s3555_s30 + $0x68] sm:$0xf]  ;;  %228 = vst [vmem:[%s3562_s6 + $0x2c] sm:$0xf] %v227_v11 }
  0x1d   : > { %230 = vst [vmem:[%s3562_s6 + $0x30] sm:$0xf] %v229_v12  ;;  %232 = vst [vmem:[%s3562_s6 + $0x34] sm:$0xf] %v231_v13  ;;  %v233_v14 = vld [vmem:[%s3555_s30 + $0x70] sm:$0xf] }
  0x1e   : > { %v235_v15 = vld [vmem:[%s3555_s30 + $0x78] sm:$0xf]  ;;  %v237_v16 = vld [vmem:[%s3555_s30 + $0x80] sm:$0xf]  ;;  %234 = vst [vmem:[%s3562_s6 + $0x38] sm:$0xf] %v233_v14 }
  0x1f   : > { %236 = vst [vmem:[%s3562_s6 + $0x3c] sm:$0xf] %v235_v15  ;;  %238 = vst [vmem:[%s3562_s6 + $0x40] sm:$0xf] %v237_v16  ;;  %v239_v17 = vld [vmem:[%s3555_s30 + $0x88] sm:$0xf] }
  0x20   : > { %v241_v18 = vld [vmem:[%s3555_s30 + $0x90] sm:$0xf]  ;;  %v243_v19 = vld [vmem:[%s3555_s30 + $0x98] sm:$0xf]  ;;  %240 = vst [vmem:[%s3562_s6 + $0x44] sm:$0xf] %v239_v17 }
  0x21   : > { %242 = vst [vmem:[%s3562_s6 + $0x48] sm:$0xf] %v241_v18  ;;  %244 = vst [vmem:[%s3562_s6 + $0x4c] sm:$0xf] %v243_v19  ;;  %v245_v20 = vld [vmem:[%s3555_s30 + $0xa0] sm:$0xf] }
  0x22   : > { %v247_v21 = vld [vmem:[%s3555_s30 + $0xa8] sm:$0xf]  ;;  %v249_v22 = vld [vmem:[%s3555_s30 + $0xb0] sm:$0xf]  ;;  %246 = vst [vmem:[%s3562_s6 + $0x50] sm:$0xf] %v245_v20 }
  0x23   : > { %248 = vst [vmem:[%s3562_s6 + $0x54] sm:$0xf] %v247_v21  ;;  %250 = vst [vmem:[%s3562_s6 + $0x58] sm:$0xf] %v249_v22  ;;  %v251_v23 = vld [vmem:[%s3555_s30 + $0xb8] sm:$0xf] }
  0x24   : > { %252 = vst [vmem:[%s3562_s6 + $0x5c] sm:$0xf] %v251_v23 }
  0x25 PF: > { %p2517_p7 = scmp.ge.s32.totalorder %s3481_s20, 1  ;;  %p322_p8 = scmp.lt.s32.totalorder %s3481_s20, 3 }
  0x27   : > { %p323_p9 = pnand %p2517_p7, %p322_p8 }
  0x28   : > { %v3370_v24 = vld [vmem:[%s4085_s3 + $0x20] sm:$0xff] (!%p323_p9)   ;;  %s329_s9 = sand.u32 (!%p323_p9), 1, %s3473_s18   ;;  %v3372_v26 = vld [vmem:[%s4085_s3 + $0x28] sm:$0xff] (!%p323_p9)   ;;  %v3374_v28 = vld [vmem:[%s4085_s3 + $0x30] sm:$0xff] (!%p323_p9)   ;;  %vm435_vm0 = vcmask (!%p323_p9), 523264   ;;  %v3483_v35 = vmov (!%p323_p9), 0  }
  0x29   : > { %326 = sbr.rel (%p323_p9) target bundleno = 417 (0x1a1), region = 73  ;;  %v3371_v25 = vld [vmem:[%s4085_s3 + $0x40] sm:$0xff] (!%p323_p9)   ;;  %2999 = vmatprep.subr.bf16.mxu1 (!%p323_p9), %v3370_v24  ;;  %v3373_v27 = vld [vmem:[%s4085_s3 + $0x48] sm:$0xff] (!%p323_p9)   ;;  %v3375_v29 = vld [vmem:[%s4085_s3 + $0x50] sm:$0xff] (!%p323_p9)   ;;  %v3688_v58 = vcombine.low (!%p323_p9), %v3483_v35, %v3483_v35  ;;  %p359_p10 = scmp.lt.s32.totalorder (!%p323_p9), %s3530_s1, 1  ;;  %vm2282_vm1 = vcmask (!%p323_p9), 1040384  }
  0x2a   : > { %s3616_s12 = smul.u32 (!%p323_p9), 96, %s329_s9  ;;  %3031 = vmatprep.subr.bf16.mxu0 (!%p323_p9), %v3371_v25  ;;  %3000 = vmatpush3.bf16.msra.mxu1 (!%p323_p9), %v3370_v24  ;;  %v3376_v30 = vld [vmem:[%s4085_s3 + $0x38] sm:$0xff] (!%p323_p9)   ;;  %v3381_v41 = vld [vmem:[%s4085_s3] sm:$0xff] (!%p323_p9)   ;;  %v3383_v47 = vld [vmem:[%s4085_s3 + $0x8] sm:$0xff] (!%p323_p9)  }
  0x2b   : > { %3032 = vmatpush3.bf16.msra.mxu0 (!%p323_p9), %v3371_v25  ;;  %3001 = vmatprep.subr.bf16.mxu1 (!%p323_p9), %v3372_v26  ;;  %v3377_v34 = vld [vmem:[%s4085_s3 + $0x58] sm:$0xff] (!%p323_p9)   ;;  %v3382_v42 = vld [vmem:[%s4085_s3 + $0x60] sm:$0xff] (!%p323_p9)   ;;  %v3384_v48 = vld [vmem:[%s4085_s3 + $0x68] sm:$0xff] (!%p323_p9)  }
  0x2c   : > { %3033 = vmatprep.subr.bf16.mxu0 (!%p323_p9), %v3373_v27  ;;  %s3634_s26 = scalar_lea.vmem (!%p323_p9), [#allocation2], %s3616_s12  ;;  %v3388_v52 = vld [vmem:[%s4085_s3 + $0x10] sm:$0xff] (!%p323_p9)   ;;  %v3391_v57 = vld [vmem:[%s4085_s3 + $0x18] sm:$0xff] (!%p323_p9)   ;;  %v3394_v60 = vld [vmem:[%s4085_s3 + $0x20] sm:$0xff] (!%p323_p9)  }
  0x2d   : > { %v364_v31 = vld [vmem:[%s3634_s26] sm:$0xf] (!%p323_p9)  ;;  %v3638_v32 = vld [vmem:[%s3634_s26 + $0x5c] sm:$0xf] (!%p323_p9)  ;;  %v365_v33 = vld [vmem:[%s3634_s26 + $0x4] sm:$0xf] (!%p323_p9) }
  0x2e   : > { %3002 = vmatpush3.bf16.msra.mxu1 (!%p323_p9), %v3372_v26  ;;  %v2527_v36 = vcombine.low (!%p323_p9), %v3483_v35, %v364_v31  ;;  %v3645_v37 = vcombine.low (!%p323_p9), %v3638_v32, %v3483_v35  ;;  %v2540_v38 = vcombine.low (!%p323_p9), %v364_v31, %v365_v33  ;;  %v366_v39 = vld [vmem:[%s3634_s26 + $0x8] sm:$0xf] (!%p323_p9)  ;;  %v367_v40 = vld [vmem:[%s3634_s26 + $0xc] sm:$0xf] (!%p323_p9)  ;;  %v368_v44 = vld [vmem:[%s3634_s26 + $0x10] sm:$0xf] (!%p323_p9) }
  0x2f   : > { %3034 = vmatpush3.bf16.msra.mxu0 (!%p323_p9), %v3373_v27  ;;  %3003 = vmatprep.subr.bf16.mxu1 (!%p323_p9), %v3374_v28  ;;  %v2528_v43 = vcombine.low (!%p323_p9), %v365_v33, %v366_v39  ;;  %v3658_v45 = vcombine.low (!%p323_p9), %v366_v39, %v367_v40  ;;  %v369_v46 = vld [vmem:[%s3634_s26 + $0x14] sm:$0xf] (!%p323_p9)  ;;  %v2529_v49 = vcombine.low (!%p323_p9), %v367_v40, %v368_v44  ;;  %v370_v51 = vld [vmem:[%s3634_s26 + $0x18] sm:$0xf] (!%p323_p9)  ;;  %v371_v53 = vld [vmem:[%s3634_s26 + $0x1c] sm:$0xf] (!%p323_p9) }
  0x30   : > { %3035 = vmatprep.subr.bf16.mxu0 %v3375_v29  ;;  %3007 = vmatprep.mubr.msk.bf16.mxu1 %vm435_vm0, %v2527_v36  ;;  %v3668_v50 = vcombine.low %v368_v44, %v369_v46  ;;  %v3390_v54 = vld [vmem:[%s4085_s3 + $0x70] sm:$0xff]   ;;  %v2530_v55 = vcombine.low %v369_v46, %v370_v51  ;;  %v3683_v56 = vcombine.low %v370_v51, %v371_v53  ;;  %v3392_v59 = vld [vmem:[%s4085_s3 + $0x78] sm:$0xff]   ;;  %v3393_v61 = vld [vmem:[%s4085_s3 + $0x80] sm:$0xff]   ;;  %s2805_s13 = sshll.u32 (%p3545_p5), %s3530_s1, 2 }
  0x31   : > { %3039 = vmatprep.mubr.msk.bf16.mxu0 %vm435_vm0, %v2540_v38  ;;  %v3396_v62 = vld [vmem:[%s4085_s3 + $0x28] sm:$0xff]   ;;  %v3714_v0 = vld [vmem:[%s3634_s26 + $0x20] sm:$0xf]  ;;  %v3399_v1 = vld [vmem:[%s4085_s3 + $0x30] sm:$0xff]   ;;  %s4024_s16 = scalar_lea.vmem (%p3545_p5), %s4086_s4, %s2805_s13 }
  0x32   : > { %3004 = vmatpush3.bf16.msra.mxu1 %v3374_v28  ;;  %v3395_v63 = vld [vmem:[%s4085_s3 + $0x88] sm:$0xff]   ;;  %v3398_v2 = vld [vmem:[%s4085_s3 + $0x90] sm:$0xff]   ;;  %v2576_v3 = vcombine.low %v371_v53, %v3714_v0  ;;  %v3727_v4 = vld [vmem:[%s3634_s26 + $0x1c] sm:$0xf] }
  0x33   : > { %3036 = vmatpush3.bf16.msra.mxu0 %v3375_v29  ;;  %3005 = vmatprep.subr.bf16.mxu1 %v3376_v30  ;;  %v3730_v5 = vld [vmem:[%s3634_s26 + $0x20] sm:$0xf]  ;;  %v3401_v6 = vld [vmem:[%s4085_s3 + $0x38] sm:$0xff]   ;;  %v2605_v8 = vld [vmem:[%s3634_s26 + $0x24] sm:$0xf] }
  0x34   : > { %3037 = vmatprep.subr.bf16.mxu0 %v3377_v34  ;;  %v3400_v7 = vld [vmem:[%s4085_s3 + $0x98] sm:$0xff]   ;;  %v2622_v9 = vcombine.low %v3727_v4, %v3730_v5  ;;  %v3745_v10 = vld [vmem:[%s3634_s26 + $0x28] sm:$0xf]  ;;  %v3405_v11 = vld [vmem:[%s4085_s3] sm:$0xff]   ;;  %v2635_v39 = vcombine.low %v3730_v5, %v2605_v8 }
  0x35   : > { %v3406_v12 = vld [vmem:[%s4085_s3 + $0x20] sm:$0xff]   ;;  %v3756_v13 = vcombine.low %v2605_v8, %v3745_v10  ;;  %v2607_v14 = vld [vmem:[%s3634_s26 + $0x2c] sm:$0xf]  ;;  %v3761_v15 = vld [vmem:[%s3634_s26 + $0x30] sm:$0xf] }
  0x36   : > { %3006 = vmatpush3.bf16.msra.mxu1 %v3376_v30  ;;  %v3407_v16 = vld [vmem:[%s4085_s3 + $0x8] sm:$0xff]   ;;  %v3772_v18 = vcombine.low %v2607_v14, %v3761_v15  ;;  %v373_v19 = vld [vmem:[%s3634_s26 + $0x24] sm:$0xf]  ;;  %v2609_v20 = vld [vmem:[%s3634_s26 + $0x34] sm:$0xf] }
  0x37   : > { %3038 = vmatpush3.bf16.msra.mxu0 %v3377_v34  ;;  %3015 = vmatprep.subr.bf16.mxu1 %v3381_v41  ;;  %v3408_v17 = vld [vmem:[%s4085_s3 + $0x28] sm:$0xff]   ;;  %v3779_v21 = vld [vmem:[%s3634_s26 + $0x38] sm:$0xf]  ;;  %v3412_v22 = vld [vmem:[%s4085_s3 + $0x10] sm:$0xff]   ;;  %v2593_v27 = vcombine.low %v3714_v0, %v373_v19  ;;  %v3858_v51 = vcombine.low %v3761_v15, %v2609_v20 }
  0x38   : > { %3047 = vmatprep.subr.bf16.mxu0 %v3382_v42  ;;  %v3413_v23 = vld [vmem:[%s4085_s3 + $0x30] sm:$0xff]   ;;  %v2602_v24 = vld [vmem:[%s3634_s26 + $0x18] sm:$0xf]  ;;  %v3793_v25 = vcombine.low %v2609_v20, %v3779_v21  ;;  %v3796_v26 = vld [vmem:[%s3634_s26 + $0x3c] sm:$0xf] }
  0x39   : > { %3008 = vmatmul.mubr.msk.bf16.vlgmr.msra.gmra.mrb[0].mxu1 %vm435_vm0, %v2528_v43  ;;  %v3800_v28 = vld [vmem:[%s3634_s26 + $0x40] sm:$0xf]  ;;  %v3414_v29 = vld [vmem:[%s4085_s3 + $0x18] sm:$0xff]   ;;  %v2634_v31 = vcombine.low %v2602_v24, %v3727_v4  ;;  %v2708_v33 = vld [vmem:[%s3634_s26 + $0x44] sm:$0xf] }
  0x3a   : > { %3040 = vmatmul.mubr.msk.bf16.vlgmr.msra.gmra.mrb[0].mxu0 %vm435_vm0, %v3658_v45  ;;  %3016 = vmatpush3.bf16.msra.mxu1 %v3381_v41  ;;  %v3415_v30 = vld [vmem:[%s4085_s3 + $0x38] sm:$0xff]   ;;  %v2723_v34 = vcombine.low %v3796_v26, %v3800_v28  ;;  %v2709_v35 = vld [vmem:[%s3634_s26 + $0x48] sm:$0xf]  ;;  %v3420_v36 = vld [vmem:[%s4085_s3 + $0x40] sm:$0xff]  }
  0x3b   : > { %3048 = vmatpush3.bf16.msra.mxu0 %v3382_v42  ;;  %3017 = vmatprep.subr.bf16.mxu1 %v3383_v47  ;;  %v2710_v40 = vld [vmem:[%s3634_s26 + $0x4c] sm:$0xf]  ;;  %v3826_v41 = vcombine.low %v2708_v33, %v2709_v35  ;;  %v2711_v42 = vld [vmem:[%s3634_s26 + $0x50] sm:$0xf]  ;;  %v2705_v53 = vld [vmem:[%s3634_s26 + $0x38] sm:$0xf] }
  0x3c   : > { %3049 = vmatprep.subr.bf16.mxu0 %v3384_v48  ;;  %3011 = vmatprep.mubr.msk.bf16.mxu1 %vm435_vm0, %v2529_v49  ;;  %v3423_v44 = vld [vmem:[%s4085_s3 + $0x8] sm:$0xff]   ;;  %v3839_v46 = vcombine.low %v2710_v40, %v2711_v42  ;;  %v2611_v0 = vld [vmem:[%s3634_s26 + $0x3c] sm:$0xf]  ;;  %v3445_v8 = vld [vmem:[%s4085_s3 + $0x60] sm:$0xff]  }
  0x3d   : > { %3043 = vmatprep.mubr.msk.bf16.mxu0 %vm435_vm0, %v3668_v50  ;;  %v3442_v5 = vld [vmem:[%s4085_s3 + $0x78] sm:$0xff]   ;;  %v2613_v19 = vld [vmem:[%s3634_s26 + $0x44] sm:$0xf]  ;;  %v3457_v20 = vld [vmem:[%s4085_s3 + $0x90] sm:$0xff]  }
  0x3e   : > { %3018 = vmatpush3.bf16.msra.mxu1 %v3383_v47  ;;  %v3427_v47 = vld [vmem:[%s4085_s3 + $0x50] sm:$0xff]  }
  0x3f   : > { %3050 = vmatpush3.bf16.msra.mxu0 %v3384_v48  ;;  %3019 = vmatprep.subr.bf16.mxu1 %v3388_v52  ;;  %v2712_v48 = vld [vmem:[%s3634_s26 + $0x54] sm:$0xf] }
  0x40   : > { %3051 = vmatprep.subr.bf16.mxu0 %v3390_v54  ;;  %v3909_v4 = vcombine.low %v2711_v42, %v2712_v48 }
  0x41   : > { %3012 = vmatmul.mubr.msk.bf16.gmra.mrb[4].mxu1 %vm435_vm0, %v2530_v55 }
  0x42   : > { %3044 = vmatmul.mubr.msk.bf16.gmra.mrb[4].mxu0 %vm435_vm0, %v3683_v56  ;;  %3020 = vmatpush3.bf16.msra.mxu1 %v3388_v52 }
  0x43   : > { %3052 = vmatpush3.bf16.msra.mxu0 %v3390_v54  ;;  %3021 = vmatprep.subr.bf16.mxu1 %v3391_v57  ;;  %v3430_v54 = vld [vmem:[%s4085_s3 + $0x58] sm:$0xff]  }
  0x44   : > { %3053 = vmatprep.subr.bf16.mxu0 %v3392_v59  ;;  %3023 = vmatprep.mubr.msk.bf16.mxu1 %vm435_vm0, %v3688_v58 }
  0x45   : > { %3055 = vmatprep.mubr.msk.bf16.mxu0 %vm435_vm0, %v2528_v43  ;;  %v3422_v43 = vld [vmem:[%s4085_s3 + $0x48] sm:$0xff]  }
  0x46   : > { %3022 = vmatpush3.bf16.msra.mxu1 %v3391_v57  ;;  %v3433_v57 = vld [vmem:[%s4085_s3 + $0x60] sm:$0xff]  }
  0x47   : > { %3054 = vmatpush3.bf16.msra.mxu0 %v3392_v59  ;;  %3079 = vmatprep.subr.bf16.mxu1 %v3394_v60  ;;  %v3434_v59 = vld [vmem:[%s4085_s3 + $0x40] sm:$0xff]  }
  0x48   : > { %3063 = vmatprep.subr.bf16.mxu0 %v3393_v61 }
  0x49   : > { %3024 = vmatmul.mubr.msk.bf16.vlgmr.msra.gmra.mrb[0].mxu1 %vm435_vm0, %v2540_v38  ;;  %v3421_v38 = vld [vmem:[%s4085_s3] sm:$0xff]  }
  0x4a   : > { %3056 = vmatmul.mubr.msk.bf16.vlgmr.msra.gmra.mrb[0].mxu0 %vm435_vm0, %v2529_v49  ;;  %3080 = vmatpush3.bf16.msra.mxu1 %v3394_v60  ;;  %v3848_v49 = vld [vmem:[%s3634_s26 + $0x58] sm:$0xf]  ;;  %v2736_v60 = vcombine.low %v3800_v28, %v2708_v33 }
  0x4b   : > { %3064 = vmatpush3.bf16.msra.mxu0 %v3393_v61  ;;  %3081 = vmatprep.subr.bf16.mxu1 %v3396_v62  ;;  %v3861_v52 = vcombine.low %v2712_v48, %v3848_v49  ;;  %v3435_v61 = vld [vmem:[%s4085_s3 + $0x68] sm:$0xff]   ;;  %v2755_v15 = vcombine.low %v3848_v49, %v3638_v32  ;;  %v3454_v32 = vld [vmem:[%s4085_s3 + $0x80] sm:$0xff]  }
  0x4c   : > { %3065 = vmatprep.subr.bf16.mxu0 %v3395_v63  ;;  %3027 = vmatprep.mubr.msk.bf16.mxu1 %vm435_vm0, %v3658_v45 }
  0x4d   : > { %3059 = vmatprep.mubr.msk.bf16.mxu0 %vm435_vm0, %v2530_v55  ;;  %v3431_v55 = vld [vmem:[%s4085_s3 + $0x18] sm:$0xff]  }
  0x4e   : > { %3082 = vmatpush3.bf16.msra.mxu1 %v3396_v62  ;;  %v3436_v62 = vld [vmem:[%s4085_s3 + $0x48] sm:$0xff]  }
  0x4f   : > { %3066 = vmatpush3.bf16.msra.mxu0 %v3395_v63  ;;  %3083 = vmatprep.subr.bf16.mxu1 %v3399_v1  ;;  %v3892_v63 = vcombine.low %v2709_v35, %v2710_v40 }
  0x50   : > { %3067 = vmatprep.subr.bf16.mxu0 %v3398_v2 }
  0x51   : > { %3028 = vmatmul.mubr.msk.bf16.gmra.mrb[4].mxu1 %vm435_vm0, %v3668_v50 }
  0x52   : > { %3060 = vmatmul.mubr.msk.bf16.gmra.mrb[4].mxu0 %vm435_vm0, %v2576_v3  ;;  %3084 = vmatpush3.bf16.msra.mxu1 %v3399_v1  ;;  %v3439_v1 = vld [vmem:[%s4085_s3 + $0x70] sm:$0xff]   ;;  %v3907_v3 = vcombine.low %v3779_v21, %v2611_v0 }
  0x53   : > { %3068 = vmatpush3.bf16.msra.mxu0 %v3398_v2  ;;  %3085 = vmatprep.subr.bf16.mxu1 %v3401_v6  ;;  %v3441_v2 = vld [vmem:[%s4085_s3 + $0x50] sm:$0xff]  }
  0x54   : > { %3069 = vmatprep.subr.bf16.mxu0 %v3400_v7  ;;  %3071 = vmatprep.mubr.msk.bf16.mxu0 %vm435_vm0, %v3658_v45  ;;  %v3836_v45 = vcombine.low %v3745_v10, %v2607_v14  ;;  %v3447_v10 = vld [vmem:[%s4085_s3 + $0x68] sm:$0xff]  }
  0x55   : > { %3087 = vmatprep.mubr.msk.bf16.mxu1 %vm435_vm0, %v2622_v9  ;;  %v3446_v9 = vld [vmem:[%s4085_s3 + $0x88] sm:$0xff]  }
  0x56   : > { %3086 = vmatpush3.bf16.msra.mxu1 %v3401_v6  ;;  %v3443_v6 = vld [vmem:[%s4085_s3 + $0x58] sm:$0xff]  }
  0x57   : > { %3070 = vmatpush3.bf16.msra.mxu0 %v3400_v7  ;;  %3095 = vmatprep.subr.bf16.mxu1 %v3405_v11  ;;  %v3444_v7 = vld [vmem:[%s4085_s3 + $0x80] sm:$0xff]  }
  0x58   : > { %3159 = vmatprep.subr.bf16.mxu0 %v3406_v12 }
  0x59   : > { %3088 = vmatmul.mubr.msk.bf16.vlgmr.msra.gmra.mrb[8].mxu1 %vm435_vm0, %v3756_v13 }
  0x5a   : > { %3072 = vmatmul.mubr.msk.bf16.vlgmr.msra.gmra.mrb[0].mxu0 %vm435_vm0, %v3668_v50  ;;  %3096 = vmatpush3.bf16.msra.mxu1 %v3405_v11  ;;  %v3429_v50 = vld [vmem:[%s4085_s3 + $0x10] sm:$0xff]   ;;  %v2612_v11 = vld [vmem:[%s3634_s26 + $0x40] sm:$0xf]  ;;  %s3997_s26 = scalar_lea.vmem [#allocation3], %s3616_s12 }
  0x5b   : > { %3160 = vmatpush3.bf16.msra.mxu0 %v3406_v12  ;;  %3097 = vmatprep.subr.bf16.mxu1 %v3407_v16  ;;  %v3449_v12 = vld [vmem:[%s4085_s3 + $0x90] sm:$0xff]   ;;  %v2671_v14 = vcombine.low %v2611_v0, %v2612_v11  ;;  %v2688_v21 = vcombine.low %v2612_v11, %v2613_v19  ;;  %s360_s12 = scalar_select %p359_p10, %s3530_s1, 1 }
  0x5c   : > { %3161 = vmatprep.subr.bf16.mxu0 %v3408_v17  ;;  %3075 = vmatprep.mubr.msk.bf16.mxu0 %vm435_vm0, %v3683_v56  ;;  %v2735_v56 = vcombine.low %v2705_v53, %v3796_v26 }
  0x5d   : > { %3091 = vmatprep.mubr.msk.bf16.mxu1 %vm435_vm0, %v3772_v18  ;;  %s2518_s8 = sshll.u32 %s360_s12, 1 }
  0x5e   : > { %3098 = vmatpush3.bf16.msra.mxu1 %v3407_v16  ;;  %v3452_v16 = vld [vmem:[%s4085_s3 + $0x98] sm:$0xff]   ;;  %s362_s11 = scalar_lea.vmem %s4087_s5, %s2518_s8 }
  0x5f   : > { %3162 = vmatpush3.bf16.msra.mxu0 %v3408_v17  ;;  %3099 = vmatprep.subr.bf16.mxu1 %v3412_v22  ;;  %v3453_v17 = vld [vmem:[%s4085_s3 + $0x78] sm:$0xff]  }
  0x60   : > { %3163 = vmatprep.subr.bf16.mxu0 %v3413_v23 }
  0x61   : > { %3092 = vmatmul.mubr.msk.bf16.gmra.mrb[12].mxu1 %vm435_vm0, %v3793_v25 }
  0x62   : > { %3076 = vmatmul.mubr.msk.bf16.gmra.mrb[4].mxu0 %vm435_vm0, %v2593_v27  ;;  %3100 = vmatpush3.bf16.msra.mxu1 %v3412_v22  ;;  %v3458_v22 = vld [vmem:[%s4085_s3 + $0x98] sm:$0xff]  }
  0x63   : > { %3164 = vmatpush3.bf16.msra.mxu0 %v3413_v23  ;;  %3101 = vmatprep.subr.bf16.mxu1 %v3414_v29 }
  0x64   : > { %3165 = vmatprep.subr.bf16.mxu0 %v3415_v30  ;;  %3103 = vmatprep.mubr.msk.bf16.mxu1 %vm435_vm0, %v2634_v31 }
  0x65   : > { %3167 = vmatprep.mubr.msk.bf16.mxu0 %vm435_vm0, %v2723_v34 }
  0x66   : > { %3102 = vmatpush3.bf16.msra.mxu1 %v3414_v29 }
  0x67   : > { %3166 = vmatpush3.bf16.msra.mxu0 %v3415_v30  ;;  %3111 = vmatprep.subr.bf16.mxu1 %v3420_v36 }
  0x68   : > { %3175 = vmatprep.subr.bf16.mxu0 %v3421_v38 }
  0x69   : > { %3104 = vmatmul.mubr.msk.bf16.vlgmr.msra.gmra.mrb[8].mxu1 %vm435_vm0, %v2635_v39 }
  0x6a   : > { %3168 = vmatmul.mubr.msk.bf16.vlgmr.msra.gmra.mrb[8].mxu0 %vm435_vm0, %v3826_v41  ;;  %3112 = vmatpush3.bf16.msra.mxu1 %v3420_v36 }
  0x6b   : > { %3176 = vmatpush3.bf16.msra.mxu0 %v3421_v38  ;;  %3113 = vmatprep.subr.bf16.mxu1 %v3422_v43 }
  0x6c   : > { %3177 = vmatprep.subr.bf16.mxu0 %v3423_v44  ;;  %3107 = vmatprep.mubr.msk.bf16.mxu1 %vm435_vm0, %v3836_v45 }
  0x6d   : > { %3171 = vmatprep.mubr.msk.bf16.mxu0 %vm435_vm0, %v3839_v46 }
  0x6e   : > { %3114 = vmatpush3.bf16.msra.mxu1 %v3422_v43 }
  0x6f   : > { %3178 = vmatpush3.bf16.msra.mxu0 %v3423_v44  ;;  %3115 = vmatprep.subr.bf16.mxu1 %v3427_v47 }
  0x70   : > { %3179 = vmatprep.subr.bf16.mxu0 %v3429_v50 }
  0x71   : > { %3108 = vmatmul.mubr.msk.bf16.gmra.mrb[12].mxu1 %vm435_vm0, %v3858_v51 }
  0x72   : > { %3172 = vmatmul.mubr.msk.bf16.gmra.mrb[12].mxu0 %vm435_vm0, %v3861_v52  ;;  %3116 = vmatpush3.bf16.msra.mxu1 %v3427_v47 }
  0x73   : > { %3180 = vmatpush3.bf16.msra.mxu0 %v3429_v50  ;;  %3117 = vmatprep.subr.bf16.mxu1 %v3430_v54 }
  0x74   : > { %3181 = vmatprep.subr.bf16.mxu0 %v3431_v55  ;;  %3119 = vmatprep.mubr.msk.bf16.mxu1 %vm435_vm0, %v2635_v39 }
  0x75   : > { %3183 = vmatprep.mubr.msk.bf16.mxu0 %vm435_vm0, %v2735_v56 }
  0x76   : > { %3118 = vmatpush3.bf16.msra.mxu1 %v3430_v54 }
  0x77   : > { %3182 = vmatpush3.bf16.msra.mxu0 %v3431_v55  ;;  %3127 = vmatprep.subr.bf16.mxu1 %v3433_v57 }
  0x78   : > { %3191 = vmatprep.subr.bf16.mxu0 %v3434_v59 }
  0x79   : > { %3120 = vmatmul.mubr.msk.bf16.vlgmr.msra.gmra.mrb[8].mxu1 %vm435_vm0, %v3836_v45 }
  0x7a   : > { %3184 = vmatmul.mubr.msk.bf16.vlgmr.msra.gmra.mrb[8].mxu0 %vm435_vm0, %v2736_v60  ;;  %3128 = vmatpush3.bf16.msra.mxu1 %v3433_v57 }
  0x7b   : > { %3192 = vmatpush3.bf16.msra.mxu0 %v3434_v59  ;;  %3129 = vmatprep.subr.bf16.mxu1 %v3435_v61 }
  0x7c   : > { %3193 = vmatprep.subr.bf16.mxu0 %v3436_v62  ;;  %3123 = vmatprep.mubr.msk.bf16.mxu1 %vm435_vm0, %v3858_v51 }
  0x7d   : > { %3187 = vmatprep.mubr.msk.bf16.mxu0 %vm435_vm0, %v3892_v63 }
  0x7e   : > { %3130 = vmatpush3.bf16.msra.mxu1 %v3435_v61 }
  0x7f   : > { %3194 = vmatpush3.bf16.msra.mxu0 %v3436_v62  ;;  %3131 = vmatprep.subr.bf16.mxu1 %v3439_v1 }
  0x80   : > { %3195 = vmatprep.subr.bf16.mxu0 %v3441_v2 }
  0x81   : > { %3124 = vmatmul.mubr.msk.bf16.gmra.mrb[12].mxu1 %vm435_vm0, %v3907_v3 }
  0x82   : > { %3188 = vmatmul.mubr.msk.bf16.gmra.mrb[12].mxu0 %vm435_vm0, %v3909_v4  ;;  %3132 = vmatpush3.bf16.msra.mxu1 %v3439_v1 }
  0x83   : > { %3196 = vmatpush3.bf16.msra.mxu0 %v3441_v2  ;;  %3133 = vmatprep.subr.bf16.mxu1 %v3442_v5 }
  0x84   : > { %3197 = vmatprep.subr.bf16.mxu0 %v3443_v6  ;;  %3135 = vmatprep.mubr.msk.bf16.mxu1 %vm435_vm0, %v3756_v13  ;;  %v3451_v13 = vld [vmem:[%s4085_s3 + $0x70] sm:$0xff]  }
  0x85   : > { %3199 = vmatprep.mubr.msk.bf16.mxu0 %vm435_vm0, %v2736_v60 }
  0x86   : > { %3134 = vmatpush3.bf16.msra.mxu1 %v3442_v5 }
  0x87   : > { %3198 = vmatpush3.bf16.msra.mxu0 %v3443_v6  ;;  %3143 = vmatprep.subr.bf16.mxu1 %v3444_v7 }
  0x88   : > { %3207 = vmatprep.subr.bf16.mxu0 %v3445_v8 }
  0x89   : > { %3136 = vmatmul.mubr.msk.bf16.vlgmr.msra.gmra.mrb[8].mxu1 %vm435_vm0, %v3772_v18  ;;  %v3455_v18 = vld [vmem:[%s4085_s3 + $0x88] sm:$0xff]  }
  0x8a   : > { %3200 = vmatmul.mubr.msk.bf16.vlgmr.msra.gmra.mrb[8].mxu0 %vm435_vm0, %v3892_v63  ;;  %3144 = vmatpush3.bf16.msra.mxu1 %v3444_v7 }
  0x8b   : > { %3208 = vmatpush3.bf16.msra.mxu0 %v3445_v8  ;;  %3145 = vmatprep.subr.bf16.mxu1 %v3446_v9 }
  0x8c   : > { %3209 = vmatprep.subr.bf16.mxu0 %v3447_v10  ;;  %3139 = vmatprep.mubr.msk.bf16.mxu1 %vm435_vm0, %v3793_v25 }
  0x8d   : > { %3203 = vmatprep.mubr.msk.bf16.mxu0 %vm435_vm0, %v3909_v4 }
  0x8e   : > { %3146 = vmatpush3.bf16.msra.mxu1 %v3446_v9 }
  0x8f   : > { %3210 = vmatpush3.bf16.msra.mxu0 %v3447_v10  ;;  %3147 = vmatprep.subr.bf16.mxu1 %v3449_v12 }
  0x90   : > { %3211 = vmatprep.subr.bf16.mxu0 %v3451_v13 }
  0x91   : > { %3140 = vmatmul.mubr.msk.bf16.gmra.mrb[12].mxu1 %vm435_vm0, %v2671_v14 }
  0x92   : > { %3204 = vmatmul.mubr.msk.bf16.gmra.mrb[12].mxu0 %vm435_vm0, %v2755_v15  ;;  %3148 = vmatpush3.bf16.msra.mxu1 %v3449_v12 }
  0x93   : > { %3212 = vmatpush3.bf16.msra.mxu0 %v3451_v13  ;;  %3149 = vmatprep.subr.bf16.mxu1 %v3452_v16 }
  0x94   : > { %3213 = vmatprep.subr.bf16.mxu0 %v3453_v17  ;;  %3151 = vmatprep.mubr.msk.bf16.mxu1 %vm435_vm0, %v3836_v45 }
  0x95   : > { %3215 = vmatprep.mubr.msk.bf16.mxu0 %vm435_vm0, %v3826_v41 }
  0x96   : > { %3150 = vmatpush3.bf16.msra.mxu1 %v3452_v16 }
  0x97   : > { %3214 = vmatpush3.bf16.msra.mxu0 %v3453_v17  ;;  %3239 = vmatprep.subr.bf16.mxu1 %v3454_v32 }
  0x98   : > { %3223 = vmatprep.subr.bf16.mxu0 %v3454_v32 }
  0x99   : > { %3152 = vmatmul.mubr.msk.bf16.vlgmr.msra.gmra.mrb[8].mxu1 %vm435_vm0, %v3858_v51 }
  0x9a   : > { %3216 = vmatmul.mubr.msk.bf16.vlgmr.msra.gmra.mrb[8].mxu0 %vm435_vm0, %v3839_v46  ;;  %3243 = vmatpush3.bf16.msra.mxu1 %v3454_v32 }
  0x9b   : > { %3224 = vmatpush3.bf16.msra.mxu0 %v3454_v32  ;;  %3240 = vmatprep.subr.bf16.mxu1 %v3455_v18 }
  0x9c   : > { %3225 = vmatprep.subr.bf16.mxu0 %v3455_v18  ;;  %3155 = vmatprep.mubr.msk.bf16.mxu1 %vm435_vm0, %v3907_v3 }
  0x9d   : > { %3219 = vmatprep.mubr.msk.bf16.mxu0 %vm435_vm0, %v3861_v52 }
  0x9e   : > { %3244 = vmatpush3.bf16.msra.mxu1 %v3455_v18 }
  0x9f   : > { %3226 = vmatpush3.bf16.msra.mxu0 %v3455_v18  ;;  %3241 = vmatprep.subr.bf16.mxu1 %v3457_v20 }
  0xa0   : > { %3227 = vmatprep.subr.bf16.mxu0 %v3457_v20 }
  0xa1   : > { %3156 = vmatmul.mubr.msk.bf16.gmra.mrb[12].mxu1 %vm435_vm0, %v2688_v21 }
  0xa2   : > { %3220 = vmatmul.mubr.msk.bf16.gmra.mrb[12].mxu0 %vm435_vm0, %v3645_v37  ;;  %3245 = vmatpush3.bf16.msra.mxu1 %v3457_v20 }
  0xa3   : > { %3228 = vmatpush3.bf16.msra.mxu0 %v3457_v20  ;;  %3242 = vmatprep.subr.bf16.mxu1 %v3458_v22 }
  0xa4   : > { %3229 = vmatprep.subr.bf16.mxu0 %v3458_v22  ;;  %3231 = vmatprep.mubr.msk.bf16.mxu0 %vm435_vm0, %v3892_v63 }
  0xa5   : > { %3235 = vmatprep.mubr.msk.bf16.mxu1 %vm435_vm0, %v2755_v15 }
  0xa6   : > { %3246 = vmatpush3.bf16.msra.mxu1 %v3458_v22 }
  0xa7   : > { %3230 = vmatpush3.bf16.msra.mxu0 %v3458_v22 }
  0xa9   : > { %3236 = vmatmul.mubr.msk.bf16.vlgmr.msra.gmra.mrb[16].mxu1 %vm435_vm0, %v3688_v58 }
  0xaa   : > { %3232 = vmatmul.mubr.msk.bf16.vlgmr.msra.gmra.mrb[8].mxu0 %vm435_vm0, %v3909_v4 }
 0x11c   : > { %v3025_v23 = vpop.f32.mrb[0].mxu1 }
 0x11d   : > { %v587_v24 = vpop.f32.mrb[1].mxu1 }
 0x11e   : > { %v3026_v37 = vpop.f32.mrb[2].mxu1 }
 0x11f   : > { %v590_v25 = vpop.f32.mrb[3].mxu1 }
 0x124   : > { %v3029_v26 = vpop.f32.mrb[4].mxu1 }
 0x125   : > { %v603_v27 = vpop.f32.mrb[5].mxu1 }
 0x126   : > { %v3030_v28 = vpop.f32.mrb[6].mxu1 }
 0x127   : > { %v606_v29 = vpop.f32.mrb[7].mxu1 }
 0x12d   : > { %v3073_v30 = vpop.f32.mrb[0].mxu0 }
 0x12e   : > { %v3247_v31 = vadd.f32 %v3073_v30, %v3025_v23  ;;  %v915_v33 = vpop.f32.mrb[1].mxu0 }
 0x12f   : > { %v3248_v34 = vadd.f32 %v915_v33, %v587_v24  ;;  %v3074_v35 = vpop.f32.mrb[2].mxu0 }
 0x130   : > { %v3249_v36 = vadd.f32 %v3074_v35, %v3026_v37  ;;  %v918_v38 = vpop.f32.mrb[3].mxu0  ;;  %v985_v44 = vmul.f32 %v3247_v31, %v3247_v31 }
 0x131   : > { %v3250_v58 = vadd.f32 %v918_v38, %v590_v25  ;;  %v983_v40 = vmul.f32 %v3248_v34, %v3248_v34 }
 0x132   : > { %v2816_v39 = vpack.c.bf16 %v3249_v36, %v3247_v31  ;;  %v986_v50 = vmul.f32 %v3249_v36, %v3249_v36 }
 0x133   : > { %v2811_v41 = vpack.c.bf16 %v3250_v58, %v3248_v34  ;;  %v970_v42 = vadd.f32 %v3250_v58, %v3248_v34  ;;  %v984_v43 = vmul.f32 %v3250_v58, %v3250_v58 }
 0x134   : > { %2868 = vst [vmem:[%s3997_s26 + $0x8] sm:$0xff] %v2816_v39  }
 0x135   : > { %2812 = vst [vmem:[%s3997_s26] sm:$0xff] %v2811_v41   ;;  %v971_v45 = vadd.f32 %v3247_v31, %v970_v42  ;;  %v991_v46 = vadd.f32 %v984_v43, %v983_v40  ;;  %v3077_v47 = vpop.f32.mrb[4].mxu0 }
 0x136   : > { %v3251_v48 = vadd.f32 %v3077_v47, %v3029_v26  ;;  %v931_v49 = vpop.f32.mrb[5].mxu0 }
 0x137   : > { %v992_v51 = vadd.f32 %v991_v46, %v985_v44  ;;  %v3252_v52 = vadd.f32 %v931_v49, %v603_v27  ;;  %v972_v53 = vadd.f32 %v3249_v36, %v971_v45  ;;  %v3078_v54 = vpop.f32.mrb[6].mxu0 }
 0x138   : > { %v3253_v55 = vadd.f32 %v3078_v54, %v3030_v28  ;;  %v934_v56 = vpop.f32.mrb[7].mxu0  ;;  %v989_v3 = vmul.f32 %v3251_v48, %v3251_v48 }
 0x139   : > { %v973_v57 = vadd.f32 %v3252_v52, %v972_v53  ;;  %v987_v59 = vmul.f32 %v3252_v52, %v3252_v52  ;;  %v993_v60 = vadd.f32 %v992_v51, %v986_v50  ;;  %v3254_v61 = vadd.f32 %v934_v56, %v606_v29 }
 0x13a   : > { %v2826_v62 = vpack.c.bf16 %v3253_v55, %v3251_v48  ;;  %v990_v6 = vmul.f32 %v3253_v55, %v3253_v55 }
 0x13b   : > { %v994_v63 = vadd.f32 %v993_v60, %v987_v59  ;;  %v2821_v0 = vpack.c.bf16 %v3254_v61, %v3252_v52  ;;  %v974_v1 = vadd.f32 %v3254_v61, %v973_v57  ;;  %v988_v2 = vmul.f32 %v3254_v61, %v3254_v61 }
 0x13c   : > { %2870 = vst [vmem:[%s3997_s26 + $0x18] sm:$0xff] %v2826_v62  }
 0x13d   : > { %2869 = vst [vmem:[%s3997_s26 + $0x10] sm:$0xff] %v2821_v0   ;;  %v975_v4 = vadd.f32 %v3251_v48, %v974_v1  ;;  %v995_v5 = vadd.f32 %v994_v63, %v988_v2 }
 0x13f   : > { %v976_v7 = vadd.f32 %v3253_v55, %v975_v4  ;;  %v996_v8 = vadd.f32 %v995_v5, %v989_v3 }
 0x141   : > { %v997_v9 = vadd.f32 %v996_v8, %v990_v6  ;;  %v977_v21 = vrot.slane %v976_v7, 4 }
 0x143   : > { %v998_v25 = vrot.slane %v997_v9, 4  ;;  %v978_v34 = vadd.f32 %v977_v21, %v976_v7 }
 0x145   : > { %v999_v43 = vadd.f32 %v998_v25, %v997_v9  ;;  %v979_v47 = vrot.slane %v978_v34, 2 }
 0x147   : > { %v1000_v52 = vrot.slane %v999_v43, 2  ;;  %v980_v62 = vadd.f32 %v979_v47, %v978_v34 }
 0x149   : > { %v1001_v6 = vadd.f32 %v1000_v52, %v999_v43 }
 0x16c   : > { %v3153_v10 = vpop.f32.mrb[8].mxu1 }
 0x16d   : > { %v1557_v11 = vpop.f32.mrb[9].mxu1  ;;  %v1628_v18 = vmul.f32 %v3153_v10, %v3153_v10 }
 0x16e   : > { %v3154_v12 = vpop.f32.mrb[10].mxu1  ;;  %v1626_v15 = vmul.f32 %v1557_v11, %v1557_v11 }
 0x16f   : > { %v2836_v13 = vpack.c.bf16 %v3154_v12, %v3153_v10  ;;  %v1560_v14 = vpop.f32.mrb[11].mxu1  ;;  %v1629_v22 = vmul.f32 %v3154_v12, %v3154_v12 }
 0x170   : > { %v2831_v16 = vpack.c.bf16 %v1560_v14, %v1557_v11  ;;  %v1613_v17 = vadd.f32 %v1560_v14, %v1557_v11  ;;  %v1627_v32 = vmul.f32 %v1560_v14, %v1560_v14  ;;  %v981_v14 = vrot.slane %v980_v62, 1 }
 0x171   : > { %2872 = vst [vmem:[%s3997_s26 + $0x28] sm:$0xff] %v2836_v13  }
 0x172   : > { %2871 = vst [vmem:[%s3997_s26 + $0x20] sm:$0xff] %v2831_v16   ;;  %v1614_v19 = vadd.f32 %v3153_v10, %v1613_v17  ;;  %v1634_v20 = vadd.f32 %v1627_v32, %v1626_v15 }
 0x174   : > { %v1635_v23 = vadd.f32 %v1634_v20, %v1628_v18  ;;  %v3157_v24 = vpop.f32.mrb[12].mxu1  ;;  %v1615_v37 = vadd.f32 %v3154_v12, %v1614_v19  ;;  %v1002_v20 = vrot.slane %v1001_v6, 1 }
 0x175   : > { %v3221_v26 = vpop.f32.mrb[12].mxu0  ;;  %v1573_v27 = vpop.f32.mrb[13].mxu1  ;;  %v1632_v44 = vmul.f32 %v3157_v24, %v3157_v24 }
 0x176   : > { %v1616_v28 = vadd.f32 %v1615_v37, %v1573_v27  ;;  %v1630_v29 = vmul.f32 %v1573_v27, %v1573_v27  ;;  %v1636_v30 = vadd.f32 %v1635_v23, %v1629_v22  ;;  %v2101_v31 = vpop.f32.mrb[13].mxu0  ;;  %v3158_v33 = vpop.f32.mrb[14].mxu1 }
 0x177   : > { %v2846_v35 = vpack.c.bf16 %v3158_v33, %v3157_v24  ;;  %v3222_v36 = vpop.f32.mrb[14].mxu0  ;;  %v1576_v38 = vpop.f32.mrb[15].mxu1  ;;  %v1633_v48 = vmul.f32 %v3158_v33, %v3158_v33 }
 0x178   : > { %v1637_v58 = vadd.f32 %v1636_v30, %v1630_v29  ;;  %v2841_v39 = vpack.c.bf16 %v1576_v38, %v1573_v27  ;;  %v1617_v40 = vadd.f32 %v1616_v28, %v1576_v38  ;;  %v1631_v41 = vmul.f32 %v1576_v38, %v1576_v38  ;;  %v2104_v42 = vpop.f32.mrb[15].mxu0 }
 0x179   : > { %2874 = vst [vmem:[%s3997_s26 + $0x38] sm:$0xff] %v2846_v35  }
 0x17a   : > { %2873 = vst [vmem:[%s3997_s26 + $0x30] sm:$0xff] %v2841_v39   ;;  %v1618_v45 = vadd.f32 %v3157_v24, %v1617_v40  ;;  %v1638_v46 = vadd.f32 %v1637_v58, %v1631_v41 }
 0x17c   : > { %v1619_v49 = vadd.f32 %v3158_v33, %v1618_v45  ;;  %v1639_v50 = vadd.f32 %v1638_v46, %v1632_v44  ;;  %v3237_v51 = vpop.f32.mrb[16].mxu1  ;;  %v1003_v33 = vadd.f32 %v1002_v20, %v1001_v6  ;;  %v2327_v6 = vld [vmem:[%s3997_s26 + $0x1c] sm:$0xf] (%p3545_p5) }
 0x17d   : > { %v3233_v53 = vpop.f32.mrb[8].mxu0  ;;  %v3255_v54 = vadd.f32 %v3237_v51, %v3221_v26  ;;  %v2206_v55 = vpop.f32.mrb[17].mxu1  ;;  %v982_v26 = vadd.f32 %v981_v14, %v980_v62  ;;  %2328 = vst [vmem:[%s4024_s16 + $0x38] sm:$0xf] (%p3545_p5), %v2327_v6 }
 0x17e   : > { %v1620_v56 = vrot.slane %v1619_v49, 4  ;;  %v1640_v57 = vadd.f32 %v1639_v50, %v1633_v48  ;;  %v2190_v59 = vpop.f32.mrb[9].mxu0  ;;  %v3256_v60 = vadd.f32 %v2206_v55, %v2101_v31  ;;  %v3238_v61 = vpop.f32.mrb[18].mxu1  ;;  %v2261_v15 = vmul.f32 %v3233_v53, %v3233_v53 }
 0x17f   : > { %v3234_v63 = vpop.f32.mrb[10].mxu0  ;;  %v3257_v0 = vadd.f32 %v3238_v61, %v3222_v36  ;;  %v2209_v1 = vpop.f32.mrb[19].mxu1  ;;  %v2259_v7 = vmul.f32 %v2190_v59, %v2190_v59  ;;  %v2265_v40 = vmul.f32 %v3255_v54, %v3255_v54 }
 0x180   : > { %v1621_v2 = vadd.f32 %v1620_v56, %v1619_v49  ;;  %v1641_v3 = vrot.slane %v1640_v57, 4  ;;  %v2856_v4 = vpack.c.bf16 %v3234_v63, %v3233_v53  ;;  %v2193_v5 = vpop.f32.mrb[11].mxu0  ;;  %v3258_v16 = vadd.f32 %v2209_v1, %v2104_v42  ;;  %v2317_v1 = vld [vmem:[%s3997_s26 + $0x8] sm:$0xf] (%p3545_p5)  ;;  %v2343_v14 = vld [vmem:[%s3997_s26 + $0x3c] sm:$0xf] (%p3545_p5) }
 0x181   : > { %v2866_v8 = vpack.c.bf16 %v3257_v0, %v3255_v54  ;;  %v2851_v9 = vpack.c.bf16 %v2193_v5, %v2190_v59  ;;  %v2246_v12 = vadd.f32 %v2193_v5, %v2190_v59  ;;  %v2260_v13 = vmul.f32 %v2193_v5, %v2193_v5  ;;  %2318 = vst [vmem:[%s4024_s16 + $0x10] sm:$0xf] (%p3545_p5), %v2317_v1  ;;  %v2325_v5 = vld [vmem:[%s3997_s26 + $0x18] sm:$0xf] (%p3545_p5) }
 0x182   : > { %v1622_v10 = vrot.slane %v1621_v2, 2  ;;  %v1642_v11 = vadd.f32 %v1641_v3, %v1640_v57  ;;  %2876 = vst [vmem:[%s3997_s26 + $0x48] sm:$0xff] %v2856_v4   ;;  %v2262_v21 = vmul.f32 %v3234_v63, %v3234_v63  ;;  %v2861_v22 = vpack.c.bf16 %v3258_v16, %v3256_v60  ;;  %v2321_v3 = vld [vmem:[%s3997_s26 + $0x10] sm:$0xf] (%p3545_p5)  ;;  %v2323_v4 = vld [vmem:[%s3997_s26 + $0x14] sm:$0xf] (%p3545_p5) }
 0x183   : > { %2878 = vst [vmem:[%s3997_s26 + $0x58] sm:$0xff] %v2866_v8   ;;  %2875 = vst [vmem:[%s3997_s26 + $0x40] sm:$0xff] %v2851_v9   ;;  %v2247_v18 = vadd.f32 %v3233_v53, %v2246_v12  ;;  %v2267_v19 = vadd.f32 %v2260_v13, %v2259_v7  ;;  %v2263_v27 = vmul.f32 %v3256_v60, %v3256_v60  ;;  %v2329_v7 = vld [vmem:[%s3997_s26 + $0x20] sm:$0xf] (%p3545_p5)  ;;  %v2331_v8 = vld [vmem:[%s3997_s26 + $0x24] sm:$0xf] (%p3545_p5) }
 0x184   : > { %v1623_v17 = vadd.f32 %v1622_v10, %v1621_v2  ;;  %v1643_v32 = vrot.slane %v1642_v11, 2  ;;  %2877 = vst [vmem:[%s3997_s26 + $0x50] sm:$0xff] %v2861_v22   ;;  %v2264_v34 = vmul.f32 %v3258_v16, %v3258_v16  ;;  %v2266_v43 = vmul.f32 %v3257_v0, %v3257_v0  ;;  %v2319_v2 = vld [vmem:[%s3997_s26 + $0xc] sm:$0xf] (%p3545_p5)  ;;  %2322 = vst [vmem:[%s4024_s16 + $0x20] sm:$0xf] (%p3545_p5), %v2321_v3 }
 0x185   : > { %v2248_v37 = vadd.f32 %v3234_v63, %v2247_v18  ;;  %v2268_v25 = vadd.f32 %v2267_v19, %v2261_v15  ;;  %v2313_v63 = vld [vmem:[%s3997_s26] sm:$0xf] (%p3545_p5)  ;;  %2320 = vst [vmem:[%s4024_s16 + $0x18] sm:$0xf] (%p3545_p5), %v2319_v2  ;;  %2324 = vst [vmem:[%s4024_s16 + $0x28] sm:$0xf] (%p3545_p5), %v2323_v4 }
 0x186   : > { %v1624_v23 = vrot.slane %v1623_v17, 1  ;;  %v1644_v24 = vadd.f32 %v1643_v32, %v1642_v11  ;;  %2314 = vst [vmem:[%s4024_s16] sm:$0xf] (%p3545_p5), %v2313_v63  ;;  %2326 = vst [vmem:[%s4024_s16 + $0x30] sm:$0xf] (%p3545_p5), %v2325_v5  ;;  %v2333_v9 = vld [vmem:[%s3997_s26 + $0x28] sm:$0xf] (%p3545_p5) }
 0x187   : > { %v2269_v30 = vadd.f32 %v2268_v25, %v2262_v21  ;;  %v2249_v31 = vadd.f32 %v3256_v60, %v2248_v37  ;;  %2330 = vst [vmem:[%s4024_s16 + $0x40] sm:$0xf] (%p3545_p5), %v2329_v7  ;;  %2332 = vst [vmem:[%s4024_s16 + $0x48] sm:$0xf] (%p3545_p5), %v2331_v8  ;;  %v2335_v10 = vld [vmem:[%s3997_s26 + $0x2c] sm:$0xf] (%p3545_p5) }
 0x188   : > { %v1625_v28 = vadd.f32 %v1624_v23, %v1623_v17  ;;  %v1645_v29 = vrot.slane %v1644_v24, 1  ;;  %2334 = vst [vmem:[%s4024_s16 + $0x50] sm:$0xf] (%p3545_p5), %v2333_v9  ;;  %v2337_v11 = vld [vmem:[%s3997_s26 + $0x30] sm:$0xf] (%p3545_p5) }
 0x189   : > { %v2250_v38 = vadd.f32 %v3258_v16, %v2249_v31  ;;  %v2270_v58 = vadd.f32 %v2269_v30, %v2263_v27  ;;  %v2339_v12 = vld [vmem:[%s3997_s26 + $0x34] sm:$0xf] (%p3545_p5)  ;;  %2336 = vst [vmem:[%s4024_s16 + $0x58] sm:$0xf] (%p3545_p5), %v2335_v10  ;;  %2338 = vst [vmem:[%s4024_s16 + $0x60] sm:$0xf] (%p3545_p5), %v2337_v11 }
 0x18a   : > { %v1646_v35 = vadd.f32 %v1645_v29, %v1644_v24  ;;  %v1647_v36 = vadd.f32 %v1625_v28, %v982_v26  ;;  %2340 = vst [vmem:[%s4024_s16 + $0x68] sm:$0xf] (%p3545_p5), %v2339_v12  ;;  %v2341_v13 = vld [vmem:[%s3997_s26 + $0x38] sm:$0xf] (%p3545_p5)  ;;  %v2345_v15 = vld [vmem:[%s3997_s26 + $0x40] sm:$0xf] (%p3545_p5) }
 0x18b   : > { %v2251_v41 = vadd.f32 %v3255_v54, %v2250_v38  ;;  %v2271_v42 = vadd.f32 %v2270_v58, %v2264_v34  ;;  %2342 = vst [vmem:[%s4024_s16 + $0x70] sm:$0xf] (%p3545_p5), %v2341_v13  ;;  %2344 = vst [vmem:[%s4024_s16 + $0x78] sm:$0xf] (%p3545_p5), %v2343_v14  ;;  %v2347_v16 = vld [vmem:[%s3997_s26 + $0x44] sm:$0xf] (%p3545_p5) }
 0x18c   : > { %v1648_v39 = vadd.f32 %v1646_v35, %v1003_v33  ;;  %2346 = vst [vmem:[%s4024_s16 + $0x80] sm:$0xf] (%p3545_p5), %v2345_v15  ;;  %v2349_v17 = vld [vmem:[%s3997_s26 + $0x48] sm:$0xf] (%p3545_p5)  ;;  %v2351_v32 = vld [vmem:[%s3997_s26 + $0x4c] sm:$0xf] (%p3545_p5) }
 0x18d   : > { %v2252_v44 = vadd.f32 %v3257_v0, %v2251_v41  ;;  %v2272_v45 = vadd.f32 %v2271_v42, %v2265_v40  ;;  %v2315_v0 = vld [vmem:[%s3997_s26 + $0x4] sm:$0xf] (%p3545_p5)  ;;  %2348 = vst [vmem:[%s4024_s16 + $0x88] sm:$0xf] (%p3545_p5), %v2347_v16  ;;  %2350 = vst [vmem:[%s4024_s16 + $0x90] sm:$0xf] (%p3545_p5), %v2349_v17 }
 0x18e   : > { %2316 = vst [vmem:[%s4024_s16 + $0x8] sm:$0xf] (%p3545_p5), %v2315_v0  ;;  %2352 = vst [vmem:[%s4024_s16 + $0x98] sm:$0xf] (%p3545_p5), %v2351_v32  ;;  %v2353_v18 = vld [vmem:[%s3997_s26 + $0x50] sm:$0xf] (%p3545_p5) }
 0x18f   : > { %v2253_v46 = vrot.slane %v2252_v44, 4  ;;  %v2273_v47 = vadd.f32 %v2272_v45, %v2266_v43  ;;  %v2355_v19 = vld [vmem:[%s3997_s26 + $0x54] sm:$0xf] (%p3545_p5)  ;;  %v2357_v20 = vld [vmem:[%s3997_s26 + $0x58] sm:$0xf] (%p3545_p5) }
 0x190   : > { %2354 = vst [vmem:[%s4024_s16 + $0xa0] sm:$0xf] (%p3545_p5), %v2353_v18  ;;  %2356 = vst [vmem:[%s4024_s16 + $0xa8] sm:$0xf] (%p3545_p5), %v2355_v19  ;;  %v2359_v21 = vld [vmem:[%s3997_s26 + $0x5c] sm:$0xf] (%p3545_p5) }
 0x191   : > { %v2254_v48 = vadd.f32 %v2253_v46, %v2252_v44  ;;  %v2274_v49 = vrot.slane %v2273_v47, 4  ;;  %2358 = vst [vmem:[%s4024_s16 + $0xb0] sm:$0xf] (%p3545_p5), %v2357_v20  ;;  %2360 = vst [vmem:[%s4024_s16 + $0xb8] sm:$0xf] (%p3545_p5), %v2359_v21 }
 0x193   : > { %v2255_v50 = vrot.slane %v2254_v48, 2  ;;  %v2275_v51 = vadd.f32 %v2274_v49, %v2273_v47 }
 0x195   : > { %v2256_v52 = vadd.f32 %v2255_v50, %v2254_v48  ;;  %v2276_v53 = vrot.slane %v2275_v51, 2 }
 0x197   : > { %v2257_v55 = vrot.slane %v2256_v52, 1  ;;  %v2277_v56 = vadd.f32 %v2276_v53, %v2275_v51 }
 0x199   : > { %v2258_v57 = vadd.f32 %v2257_v55, %v2256_v52  ;;  %v2278_v59 = vrot.slane %v2277_v56, 1 }
 0x19a   : > { %2295 = sbr.rel (!%p3545_p5) target bundleno = 417 (0x1a1), region = 81 }
 0x19b   : > { %v2279_v54 = vadd.f32 %v2278_v59, %v2277_v56  ;;  %v2280_v60 = vadd.f32 %v2258_v57, %v1647_v36 }
 0x19d   : > { %v2281_v61 = vadd.f32 %v2279_v54, %v1648_v39 }
 0x19f   : > { %v2283_v62 = vsel %vm2282_vm1, %v2280_v60, %v2281_v61 }
 0x1a0   : > { %2284 = vst [vmem:[%s362_s11] sm:$0x3] %v2283_v62 }
 0x1a1 PF: > { %p13_p11 = scmp.ge.s32.totalorder %s3533_s2, 4   ;;  %s4089_s18 = smov %s3477_s19 }
 0x1a2   : > { %s4090_s19 = smov %s3543_s23  ;;  %s4091_s20 = smov %s3533_s2 }
 0x1a3   :  { %15 = sbr.rel (!%p13_p11) target bundleno = 2 (0x2), region = 173 }

// kernel: encoder_forward.5
= control target key start
LH: loop header
LB: loop body
LE: loop exit
PB: predicated region body
PF: predicated region fallthrough
CT: control target
= control target key end

     0   :  { %s4530_s18 = smov 0   ;;  %s4532_s19 = smov 0   ;;  %s5366_s0 = inlined_call_operand.vmem [shape: bf16[24,16,128], index: 0, kind: input, shape index: {}]   ;;  %s5367_s1 = inlined_call_operand.vmem [shape: f32[1,128], index: 1, kind: input, shape index: {}]   ;;  %s5368_s2 = inlined_call_operand.vmem [shape: f32[1,128], index: 2, kind: input, shape index: {}]   ;;  %s5369_s3 = inlined_call_operand.vmem [shape: bf16[5,128,128], index: 3, kind: input, shape index: {}]   ;;  %s5370_s4 = inlined_call_operand.vmem [shape: bf16[24,16,128], index: 4, kind: output, shape index: {0}]   ;;  %s5371_s5 = inlined_call_operand.vmem [shape: f32[2,2,128], index: 5, kind: output, shape index: {1}]  }
   0x1   :  { %s4534_s20 = smov 0  }
   0x2 LB: > { %s4546_s21 = sadd.s32 4294967295, %s4497_s20   ;;  %s4549_s22 = sadd.s32 1, %s4497_s20   ;;  %s4497_s20 = sphi %s4534_s20, %s5375_s20   ;;  %s4493_s19 = sphi %s4532_s19, %s5374_s19   ;;  %s4489_s18 = sphi %s4530_s18, %s5373_s18  }
   0x3   : > { %s20_s23 = ssub.s32 %s4497_s20, %s4549_s22  ;;  %s23_s24 = sadd.s32 1, %s4493_s19 }
   0x4   : > { %p21_p0 = scmp.eq.s32.totalorder %s20_s23, 0  ;;  %p30_p1 = scmp.ne.s32.totalorder %s4493_s19, %s4489_s18 }
   0x5   : > { %p31_p2 = scmp.eq.s32.totalorder %s4497_s20, 0  ;;  %p123_p3 = scmp.eq.s32.totalorder %s4546_s21, 1 }
   0x6   : > { %s4559_s25 = scalar_select %p21_p0, %s4493_s19, %s23_s24  }
   0x7   : > { %p32_p4 = por %p31_p2, %p30_p1  ;;  %p4561_p5 = por %p123_p3, %p30_p1 }
   0x8   : > { %p3104_p6 = scmp.ge.s32.totalorder %s4497_s20, 2 }
   0xa   : > { %180 = sbr.rel (%p3104_p6) target bundleno = 37 (0x25), region = 28 }
  0x11   : > { %183 = sbr.rel (!%p32_p4) target bundleno = 37 (0x25), region = 32  ;;  %s185_s27 = sand.u32 (%p32_p4), 1, %s4493_s19  }
  0x12   : > { %s3105_s28 = sshll.u32 (%p32_p4), %s4497_s20, 2  ;;  %s4326_s29 = smul.u32 (%p32_p4), 96, %s185_s27 }
  0x13   : > { %s4571_s7 = scalar_lea.vmem (%p32_p4), %s5366_s0, %s3105_s28 }
  0x14   : > { %v205_v0 = vld [vmem:[%s4571_s7] sm:$0xf] (%p32_p4)  ;;  %v207_v1 = vld [vmem:[%s4571_s7 + $0x8] sm:$0xf] (%p32_p4)  ;;  %v209_v2 = vld [vmem:[%s4571_s7 + $0x10] sm:$0xf] (%p32_p4) }
  0x15   : > { %v211_v3 = vld [vmem:[%s4571_s7 + $0x18] sm:$0xf] (%p32_p4)  ;;  %v213_v4 = vld [vmem:[%s4571_s7 + $0x20] sm:$0xf] (%p32_p4)  ;;  %s4578_s8 = scalar_lea.vmem (%p32_p4), [#allocation2], %s4326_s29 }
  0x16   : > { %206 = vst [vmem:[%s4578_s8] sm:$0xf] (%p32_p4), %v205_v0  ;;  %208 = vst [vmem:[%s4578_s8 + $0x4] sm:$0xf] (%p32_p4), %v207_v1  ;;  %v215_v5 = vld [vmem:[%s4571_s7 + $0x28] sm:$0xf] (%p32_p4) }
  0x17   : > { %210 = vst [vmem:[%s4578_s8 + $0x8] sm:$0xf] (%p32_p4), %v209_v2  ;;  %212 = vst [vmem:[%s4578_s8 + $0xc] sm:$0xf] (%p32_p4), %v211_v3  ;;  %v217_v6 = vld [vmem:[%s4571_s7 + $0x30] sm:$0xf] (%p32_p4) }
  0x18   : > { %214 = vst [vmem:[%s4578_s8 + $0x10] sm:$0xf] %v213_v4  ;;  %v219_v7 = vld [vmem:[%s4571_s7 + $0x38] sm:$0xf]  ;;  %216 = vst [vmem:[%s4578_s8 + $0x14] sm:$0xf] %v215_v5 }
  0x19   : > { %218 = vst [vmem:[%s4578_s8 + $0x18] sm:$0xf] %v217_v6  ;;  %220 = vst [vmem:[%s4578_s8 + $0x1c] sm:$0xf] %v219_v7  ;;  %v221_v8 = vld [vmem:[%s4571_s7 + $0x40] sm:$0xf] }
  0x1a   : > { %v223_v9 = vld [vmem:[%s4571_s7 + $0x48] sm:$0xf]  ;;  %v225_v10 = vld [vmem:[%s4571_s7 + $0x50] sm:$0xf]  ;;  %222 = vst [vmem:[%s4578_s8 + $0x20] sm:$0xf] %v221_v8 }
  0x1b   : > { %224 = vst [vmem:[%s4578_s8 + $0x24] sm:$0xf] %v223_v9  ;;  %226 = vst [vmem:[%s4578_s8 + $0x28] sm:$0xf] %v225_v10  ;;  %v227_v11 = vld [vmem:[%s4571_s7 + $0x58] sm:$0xf] }
  0x1c   : > { %v229_v12 = vld [vmem:[%s4571_s7 + $0x60] sm:$0xf]  ;;  %v231_v13 = vld [vmem:[%s4571_s7 + $0x68] sm:$0xf]  ;;  %228 = vst [vmem:[%s4578_s8 + $0x2c] sm:$0xf] %v227_v11 }
  0x1d   : > { %230 = vst [vmem:[%s4578_s8 + $0x30] sm:$0xf] %v229_v12  ;;  %232 = vst [vmem:[%s4578_s8 + $0x34] sm:$0xf] %v231_v13  ;;  %v233_v14 = vld [vmem:[%s4571_s7 + $0x70] sm:$0xf] }
  0x1e   : > { %v235_v15 = vld [vmem:[%s4571_s7 + $0x78] sm:$0xf]  ;;  %v237_v16 = vld [vmem:[%s4571_s7 + $0x80] sm:$0xf]  ;;  %234 = vst [vmem:[%s4578_s8 + $0x38] sm:$0xf] %v233_v14 }
  0x1f   : > { %236 = vst [vmem:[%s4578_s8 + $0x3c] sm:$0xf] %v235_v15  ;;  %238 = vst [vmem:[%s4578_s8 + $0x40] sm:$0xf] %v237_v16  ;;  %v239_v17 = vld [vmem:[%s4571_s7 + $0x88] sm:$0xf] }
  0x20   : > { %v241_v18 = vld [vmem:[%s4571_s7 + $0x90] sm:$0xf]  ;;  %v243_v19 = vld [vmem:[%s4571_s7 + $0x98] sm:$0xf]  ;;  %240 = vst [vmem:[%s4578_s8 + $0x44] sm:$0xf] %v239_v17 }
  0x21   : > { %242 = vst [vmem:[%s4578_s8 + $0x48] sm:$0xf] %v241_v18  ;;  %244 = vst [vmem:[%s4578_s8 + $0x4c] sm:$0xf] %v243_v19  ;;  %v245_v20 = vld [vmem:[%s4571_s7 + $0xa0] sm:$0xf] }
  0x22   : > { %v247_v21 = vld [vmem:[%s4571_s7 + $0xa8] sm:$0xf]  ;;  %v249_v22 = vld [vmem:[%s4571_s7 + $0xb0] sm:$0xf]  ;;  %246 = vst [vmem:[%s4578_s8 + $0x50] sm:$0xf] %v245_v20 }
  0x23   : > { %248 = vst [vmem:[%s4578_s8 + $0x54] sm:$0xf] %v247_v21  ;;  %250 = vst [vmem:[%s4578_s8 + $0x58] sm:$0xf] %v249_v22  ;;  %v251_v23 = vld [vmem:[%s4571_s7 + $0xb8] sm:$0xf] }
  0x24   : > { %252 = vst [vmem:[%s4578_s8 + $0x5c] sm:$0xf] %v251_v23 }
  0x25 PF: > { %p3106_p7 = scmp.ge.s32.totalorder %s4497_s20, 1  ;;  %p322_p8 = scmp.lt.s32.totalorder %s4497_s20, 3 }
  0x27   : > { %p323_p9 = pnand %p3106_p7, %p322_p8 }
  0x28   : > { %v4353_v24 = vld [vmem:[%s5369_s3 + $0x40] sm:$0xff] (!%p323_p9)   ;;  %v4355_v26 = vld [vmem:[%s5369_s3 + $0x48] sm:$0xff] (!%p323_p9)   ;;  %v4357_v28 = vld [vmem:[%s5369_s3 + $0x50] sm:$0xff] (!%p323_p9)   ;;  %s329_s27 = sand.u32 (!%p323_p9), 1, %s4489_s18   ;;  %v4499_v62 = vmov (!%p323_p9), 0   ;;  %p359_p10 = scmp.lt.s32.totalorder (!%p323_p9), %s4546_s21, 1 }
  0x29   : > { %326 = sbr.rel (%p323_p9) target bundleno = 545 (0x221), region = 73  ;;  %v4354_v25 = vld [vmem:[%s5369_s3 + $0x80] sm:$0xff] (!%p323_p9)   ;;  %3854 = vmatprep.subr.bf16.mxu1 (!%p323_p9), %v4353_v24  ;;  %v4356_v27 = vld [vmem:[%s5369_s3 + $0x88] sm:$0xff] (!%p323_p9)   ;;  %v4358_v29 = vld [vmem:[%s5369_s3 + $0x90] sm:$0xff] (!%p323_p9)   ;;  %vm2871_vm0 = vcmask (!%p323_p9), 1040384  }
  0x2a   : > { %3902 = vmatprep.subr.bf16.mxu0 (!%p323_p9), %v4354_v25  ;;  %3855 = vmatpush3.bf16.msra.mxu1 (!%p323_p9), %v4353_v24  ;;  %v4359_v30 = vld [vmem:[%s5369_s3 + $0x58] sm:$0xff] (!%p323_p9)   ;;  %s4650_s7 = smul.u32 (!%p323_p9), 96, %s329_s27  ;;  %v4361_v32 = vld [vmem:[%s5369_s3 + $0x60] sm:$0xff] (!%p323_p9)   ;;  %v4363_v34 = vld [vmem:[%s5369_s3 + $0x68] sm:$0xff] (!%p323_p9)  }
  0x2b   : > { %3903 = vmatpush3.bf16.msra.mxu0 (!%p323_p9), %v4354_v25  ;;  %3856 = vmatprep.subr.bf16.mxu1 (!%p323_p9), %v4355_v26  ;;  %v4360_v31 = vld [vmem:[%s5369_s3 + $0x98] sm:$0xff] (!%p323_p9)   ;;  %v4362_v33 = vld [vmem:[%s5369_s3 + $0xa0] sm:$0xff] (!%p323_p9)   ;;  %v4364_v37 = vld [vmem:[%s5369_s3 + $0xa8] sm:$0xff] (!%p323_p9)  }
  0x2c   : > { %3904 = vmatprep.subr.bf16.mxu0 (!%p323_p9), %v4356_v27  ;;  %v4664_v35 = vld [vmem:[%s5367_s1] ss:$0 sm:$0xff] (!%p323_p9)  ;;  %s4667_s15 = scalar_lea.vmem (!%p323_p9), [#allocation2], %s4650_s7  ;;  %v4365_v44 = vld [vmem:[%s5369_s3 + $0x70] sm:$0xff] (!%p323_p9)   ;;  %v4367_v52 = vld [vmem:[%s5369_s3 + $0x78] sm:$0xff] (!%p323_p9)   ;;  %s5281_s17 = scalar_lea.vmem (!%p323_p9), [#allocation3], %s4650_s7 }
  0x2d   : > { %v3525_v36 = vld [vmem:[%s4667_s15] sm:$0xff] (!%p323_p9)   ;;  %v3648_v43 = vld [vmem:[%s4667_s15 + $0x8] sm:$0xff] (!%p323_p9)   ;;  %v4366_v47 = vld [vmem:[%s5369_s3 + $0xb0] sm:$0xff] (!%p323_p9)  }
  0x2e   : > { %3857 = vmatpush3.bf16.msra.mxu1 (!%p323_p9), %v4355_v26  ;;  %v3526_v38 = vunpack.c.l.bf16 (!%p323_p9), %v3525_v36  ;;  %v3527_v39 = vunpack.c.h.bf16 (!%p323_p9), %v3525_v36  ;;  %v4676_v40 = vld [vmem:[%s5368_s2] ss:$0 sm:$0xff] (!%p323_p9)  ;;  %v3530_v45 = vunpack.c.l.bf16 (!%p323_p9), %v3648_v43  ;;  %v3531_v46 = vunpack.c.h.bf16 (!%p323_p9), %v3648_v43  ;;  %v4368_v57 = vld [vmem:[%s5369_s3 + $0xb8] sm:$0xff] (!%p323_p9)   ;;  %v3649_v3 = vld [vmem:[%s4667_s15 + $0x10] sm:$0xff] (!%p323_p9)  }
  0x2f   : > { %3905 = vmatpush3.bf16.msra.mxu0 (!%p323_p9), %v4356_v27  ;;  %3858 = vmatprep.subr.bf16.mxu1 (!%p323_p9), %v4357_v28  ;;  %v4369_v0 = vld [vmem:[%s5369_s3] sm:$0xff] (!%p323_p9)   ;;  %v3650_v4 = vld [vmem:[%s4667_s15 + $0x18] sm:$0xff] (!%p323_p9)   ;;  %v3534_v5 = vunpack.c.l.bf16 (!%p323_p9), %v3649_v3  ;;  %v3535_v6 = vunpack.c.h.bf16 (!%p323_p9), %v3649_v3  ;;  %v4371_v10 = vld [vmem:[%s5369_s3 + $0x8] sm:$0xff] (!%p323_p9)  }
  0x30   : > { %3906 = vmatprep.subr.bf16.mxu0 %v4358_v29  ;;  %v392_v41 = vmul.f32 %v3526_v38, %v4664_v35  ;;  %v393_v42 = vmul.f32 %v3527_v39, %v4664_v35  ;;  %v394_v50 = vmul.f32 %v3530_v45, %v4664_v35  ;;  %v395_v51 = vmul.f32 %v3531_v46, %v4664_v35  ;;  %v4370_v1 = vld [vmem:[%s5369_s3 + $0xc0] sm:$0xff]   ;;  %v4372_v14 = vld [vmem:[%s5369_s3 + $0xc8] sm:$0xff]   ;;  %v4373_v20 = vld [vmem:[%s5369_s3 + $0x10] sm:$0xff]   ;;  %s360_s7 = scalar_select %p359_p10, %s4546_s21, 1 }
  0x31   : > { %v3538_v7 = vunpack.c.l.bf16 %v3650_v4  ;;  %v3539_v8 = vunpack.c.h.bf16 %v3650_v4  ;;  %v396_v11 = vmul.f32 %v3534_v5, %v4664_v35  ;;  %v397_v12 = vmul.f32 %v3535_v6, %v4664_v35  ;;  %v4374_v24 = vld [vmem:[%s5369_s3 + $0xd0] sm:$0xff]   ;;  %v4379_v36 = vld [vmem:[%s5369_s3 + $0x28] sm:$0xff]   ;;  %v3651_v39 = vld [vmem:[%s4667_s15 + $0x20] sm:$0xff]   ;;  %s3492_s28 = sshll.u32 (%p4561_p5), %s4546_s21, 2 }
  0x32   : > { %3859 = vmatpush3.bf16.msra.mxu1 %v4357_v28  ;;  %v408_v48 = vadd.f32 %v4676_v40, %v392_v41  ;;  %v409_v49 = vadd.f32 %v4676_v40, %v393_v42  ;;  %v410_v55 = vadd.f32 %v4676_v40, %v394_v50  ;;  %v411_v56 = vadd.f32 %v4676_v40, %v395_v51  ;;  %v4381_v38 = vld [vmem:[%s5369_s3 + $0x30] sm:$0xff]   ;;  %v4383_v43 = vld [vmem:[%s5369_s3 + $0x38] sm:$0xff]   ;;  %v4386_v46 = vld [vmem:[%s5369_s3 + $0x40] sm:$0xff]   ;;  %s3107_s20 = sshll.u32 %s360_s7, 1  ;;  %s5308_s6 = scalar_lea.vmem (%p4561_p5), %s5370_s4, %s3492_s28 }
  0x33   : > { %3907 = vmatpush3.bf16.msra.mxu0 %v4358_v29  ;;  %3860 = vmatprep.subr.bf16.mxu1 %v4359_v30  ;;  %v398_v13 = vmul.f32 %v3538_v7, %v4664_v35  ;;  %v399_v15 = vmul.f32 %v3539_v8, %v4664_v35  ;;  %v412_v16 = vadd.f32 %v4676_v40, %v396_v11  ;;  %v4382_v41 = vld [vmem:[%s5369_s3 + $0xf0] sm:$0xff]   ;;  %v3542_v42 = vunpack.c.l.bf16 %v3651_v39  ;;  %v4387_v50 = vld [vmem:[%s5369_s3 + $0x108] sm:$0xff]   ;;  %v3659_v6 = vld [vmem:[%s4667_s15 + $0x38] sm:$0xff]   ;;  %s362_s27 = scalar_lea.vmem %s5371_s5, %s3107_s20 }
  0x34   : > { %3908 = vmatprep.subr.bf16.mxu0 %v4360_v31  ;;  %v418_v53 = vmax.f32 %v408_v48, 0.0  ;;  %v419_v54 = vmax.f32 %v409_v49, 0.0  ;;  %v420_v60 = vmax.f32 %v410_v55, 0.0  ;;  %v421_v61 = vmax.f32 %v411_v56, 0.0  ;;  %v4388_v49 = vld [vmem:[%s5369_s3 + $0x48] sm:$0xff]   ;;  %v4392_v56 = vld [vmem:[%s5369_s3 + $0x58] sm:$0xff]  }
  0x35   : > { %v413_v17 = vadd.f32 %v4676_v40, %v397_v12  ;;  %v414_v18 = vadd.f32 %v4676_v40, %v398_v13  ;;  %v4728_v19 = vadd.f32 %v4676_v40, %v399_v15  ;;  %v422_v21 = vmax.f32 %v412_v16, 0.0  ;;  %v4395_v3 = vld [vmem:[%s5369_s3 + $0x128] sm:$0xff]   ;;  %v3669_v7 = vld [vmem:[%s4667_s15 + $0x58] sm:$0xff]   ;;  %v4398_v8 = vld [vmem:[%s5369_s3 + $0x70] sm:$0xff]  }
  0x36   : > { %3861 = vmatpush3.bf16.msra.mxu1 %v4359_v30  ;;  %v428_v58 = vpack.c.bf16 %v418_v53, %v418_v53  ;;  %v4699_v59 = vpack.c.bf16 %v419_v54, %v418_v53  ;;  %v3495_v2 = vpack.c.bf16 %v420_v60, %v419_v54  ;;  %v4711_v9 = vpack.c.bf16 %v421_v61, %v420_v60  ;;  %v4375_v30 = vld [vmem:[%s5369_s3 + $0x18] sm:$0xff]   ;;  %v4389_v53 = vld [vmem:[%s5369_s3 + $0x110] sm:$0xff]  }
  0x37   : > { %3909 = vmatpush3.bf16.msra.mxu0 %v4360_v31  ;;  %3862 = vmatprep.subr.bf16.mxu1 %v4361_v32  ;;  %v423_v22 = vmax.f32 %v413_v17, 0.0  ;;  %v424_v23 = vmax.f32 %v414_v18, 0.0  ;;  %v425_v25 = vmax.f32 %v4728_v19, 0.0  ;;  %v3496_v26 = vpack.c.bf16 %v422_v21, %v421_v61  ;;  %v4376_v31 = vld [vmem:[%s5369_s3 + $0xd8] sm:$0xff]   ;;  %v4393_v61 = vld [vmem:[%s5369_s3 + $0x120] sm:$0xff]   ;;  %v4397_v13 = vld [vmem:[%s5369_s3 + $0x130] sm:$0xff]  }
  0x38   : > { %3910 = vmatprep.subr.bf16.mxu0 %v4362_v33  ;;  %v3126_v63 = vcombine.low %v4499_v62, %v428_v58  ;;  %3918 = vmatprep.mubr.bf16.mxu0 %v4699_v59  ;;  %v400_v45 = vmul.f32 %v3542_v42, %v4664_v35  ;;  %v4391_v54 = vld [vmem:[%s5369_s3 + $0x118] sm:$0xff]   ;;  %v4394_v58 = vld [vmem:[%s5369_s3 + $0x60] sm:$0xff]   ;;  %v3626_v11 = vunpack.c.l.bf16 %v3669_v7  ;;  %v3627_v12 = vunpack.c.h.bf16 %v3669_v7  ;;  %v3668_v7 = vld [vmem:[%s4667_s15 + $0x50] sm:$0xff]  }
  0x39   : > { %v4737_v27 = vpack.c.bf16 %v424_v23, %v423_v22  ;;  %v4739_v28 = vpack.c.bf16 %v423_v22, %v422_v21  ;;  %v4743_v29 = vpack.c.bf16 %v425_v25, %v424_v23  ;;  %v3582_v17 = vunpack.c.l.bf16 %v3659_v6  ;;  %v4399_v21 = vld [vmem:[%s5369_s3 + $0x138] sm:$0xff]  }
  0x3a   : > { %3863 = vmatpush3.bf16.msra.mxu1 %v4361_v32  ;;  %3870 = vmatprep.mubr.bf16.mxu1 %v3126_v63  ;;  %v4753_v32 = vcombine.low %v4499_v62, %v4499_v62  ;;  %v4792_v48 = vadd.f32 %v4676_v40, %v400_v45  ;;  %v3658_v63 = vld [vmem:[%s4667_s15 + $0x30] sm:$0xff]   ;;  %v2077_v18 = vmul.f32 %v3626_v11, %v4664_v35  ;;  %v4400_v22 = vld [vmem:[%s5369_s3 + $0x78] sm:$0xff]  }
  0x3b   : > { %3911 = vmatpush3.bf16.msra.mxu0 %v4362_v33  ;;  %3864 = vmatprep.subr.bf16.mxu1 %v4363_v34  ;;  %v4377_v33 = vld [vmem:[%s5369_s3 + $0x20] sm:$0xff]   ;;  %v3578_v5 = vunpack.c.l.bf16 %v3658_v63  ;;  %v3579_v15 = vunpack.c.h.bf16 %v3658_v63  ;;  %v2078_v19 = vmul.f32 %v3627_v12, %v4664_v35 }
  0x3c   : > { %3912 = vmatprep.subr.bf16.mxu0 %v4364_v37  ;;  %v426_v51 = vmax.f32 %v4792_v48, 0.0 }
  0x3d   : > { %v1238_v16 = vmul.f32 %v3578_v5, %v4664_v35 }
  0x3e   : > { %3865 = vmatpush3.bf16.msra.mxu1 %v4363_v34  ;;  %v4378_v34 = vld [vmem:[%s5369_s3 + $0xe0] sm:$0xff]   ;;  %v3502_v55 = vpack.c.bf16 %v426_v51, %v425_v25  ;;  %v4868_v25 = vadd.f32 %v4676_v40, %v2077_v18 }
  0x3f   : > { %3913 = vmatpush3.bf16.msra.mxu0 %v4364_v37  ;;  %3866 = vmatprep.subr.bf16.mxu1 %v4365_v44  ;;  %v4380_v37 = vld [vmem:[%s5369_s3 + $0xe8] sm:$0xff]  }
  0x40   : > { %3914 = vmatprep.subr.bf16.mxu0 %v4366_v47 }
  0x42   : > { %3867 = vmatpush3.bf16.msra.mxu1 %v4365_v44  ;;  %v4384_v44 = vld [vmem:[%s5369_s3 + $0xf8] sm:$0xff]  }
  0x43   : > { %3915 = vmatpush3.bf16.msra.mxu0 %v4366_v47  ;;  %3868 = vmatprep.subr.bf16.mxu1 %v4367_v52  ;;  %v4385_v47 = vld [vmem:[%s5369_s3 + $0x100] sm:$0xff]  }
  0x44   : > { %3916 = vmatprep.subr.bf16.mxu0 %v4368_v57 }
  0x46   : > { %3869 = vmatpush3.bf16.msra.mxu1 %v4367_v52  ;;  %v4390_v52 = vld [vmem:[%s5369_s3 + $0x50] sm:$0xff]  }
  0x47   : > { %3917 = vmatpush3.bf16.msra.mxu0 %v4368_v57  ;;  %3878 = vmatprep.subr.bf16.mxu1 %v4369_v0  ;;  %v3657_v57 = vld [vmem:[%s4667_s15 + $0x28] sm:$0xff]  }
  0x48   : > { %3926 = vmatprep.subr.bf16.mxu0 %v4370_v1  ;;  %v3574_v60 = vunpack.c.l.bf16 %v3657_v57  ;;  %v3575_v4 = vunpack.c.h.bf16 %v3657_v57 }
  0x49   : > { %3871 = vmatmul.mubr.bf16.vlgmr.msra.gmra.mrb[0].mxu1 %v3495_v2 }
  0x4a   : > { %3879 = vmatpush3.bf16.msra.mxu1 %v4369_v0  ;;  %3919 = vmatmul.mubr.bf16.vlgmr.msra.gmra.mrb[0].mxu0 %v4711_v9  ;;  %v4396_v0 = vld [vmem:[%s5369_s3 + $0x68] sm:$0xff]  }
  0x4b   : > { %3927 = vmatpush3.bf16.msra.mxu0 %v4370_v1  ;;  %3880 = vmatprep.subr.bf16.mxu1 %v4371_v10 }
  0x4c   : > { %3928 = vmatprep.subr.bf16.mxu0 %v4372_v14  ;;  %3874 = vmatprep.mubr.bf16.mxu1 %v3496_v26 }
  0x4d   : > { %3922 = vmatprep.mubr.bf16.mxu0 %v4739_v28 }
  0x4e   : > { %3881 = vmatpush3.bf16.msra.mxu1 %v4371_v10 }
  0x4f   : > { %3929 = vmatpush3.bf16.msra.mxu0 %v4372_v14  ;;  %3882 = vmatprep.subr.bf16.mxu1 %v4373_v20  ;;  %v1237_v14 = vmul.f32 %v3575_v4, %v4664_v35  ;;  %v4410_v4 = vld [vmem:[%s5369_s3 + $0x60] sm:$0xff]  }
  0x50   : > { %3930 = vmatprep.subr.bf16.mxu0 %v4374_v24 }
  0x51   : > { %3875 = vmatmul.mubr.bf16.gmra.mrb[4].mxu1 %v4737_v27 }
  0x52   : > { %3883 = vmatpush3.bf16.msra.mxu1 %v4373_v20  ;;  %3923 = vmatmul.mubr.bf16.gmra.mrb[4].mxu0 %v4743_v29  ;;  %v4857_v20 = vld [vmem:[%s4667_s15 + $0x40] sm:$0xff]  }
  0x53   : > { %3931 = vmatpush3.bf16.msra.mxu0 %v4374_v24  ;;  %3884 = vmatprep.subr.bf16.mxu1 %v4375_v30  ;;  %v3615_v5 = vunpack.c.h.bf16 %v4857_v20 }
  0x54   : > { %3932 = vmatprep.subr.bf16.mxu0 %v4376_v31  ;;  %3894 = vmatprep.mubr.bf16.mxu1 %v4753_v32 }
  0x55   : > { %3942 = vmatprep.mubr.bf16.mxu0 %v3495_v2  ;;  %v1236_v2 = vmul.f32 %v3574_v60, %v4664_v35  ;;  %v4406_v60 = vld [vmem:[%s5369_s3 + $0x50] sm:$0xff]   ;;  %v2072_v12 = vmul.f32 %v3615_v5, %v4664_v35  ;;  %v4435_v5 = vld [vmem:[%s5369_s3 + $0xc8] sm:$0xff]  }
  0x56   : > { %3885 = vmatpush3.bf16.msra.mxu1 %v4375_v30  ;;  %v1239_v30 = vmul.f32 %v3579_v15, %v4664_v35  ;;  %v4414_v15 = vld [vmem:[%s5369_s3 + $0x70] sm:$0xff]  }
  0x57   : > { %3933 = vmatpush3.bf16.msra.mxu0 %v4376_v31  ;;  %3886 = vmatprep.subr.bf16.mxu1 %v4377_v33  ;;  %v4847_v10 = vadd.f32 %v4676_v40, %v1236_v2  ;;  %v4876_v31 = vadd.f32 %v4676_v40, %v1238_v16  ;;  %v4408_v2 = vld [vmem:[%s5369_s3 + $0x58] sm:$0xff]   ;;  %v4992_v18 = vadd.f32 %v4676_v40, %v2072_v12  ;;  %v4442_v12 = vld [vmem:[%s5369_s3 + $0xa0] sm:$0xff]  }
  0x58   : > { %3934 = vmatprep.subr.bf16.mxu0 %v4378_v34 }
  0x59   : > { %v1260_v24 = vmax.f32 %v4847_v10, 0.0  ;;  %v4421_v10 = vld [vmem:[%s5369_s3 + $0x90] sm:$0xff]  }
  0x5a   : > { %3887 = vmatpush3.bf16.msra.mxu1 %v4377_v33  ;;  %v1240_v33 = vmul.f32 %v3582_v17, %v4664_v35 }
  0x5b   : > { %3935 = vmatpush3.bf16.msra.mxu0 %v4378_v34  ;;  %3888 = vmatprep.subr.bf16.mxu1 %v4379_v36  ;;  %v3611_v34 = vunpack.c.h.bf16 %v3659_v6 }
  0x5c   : > { %3936 = vmatprep.subr.bf16.mxu0 %v4380_v37 }
  0x5e   : > { %3889 = vmatpush3.bf16.msra.mxu1 %v4379_v36  ;;  %v3614_v36 = vunpack.c.l.bf16 %v4857_v20  ;;  %v3623_v20 = vunpack.c.h.bf16 %v3668_v7 }
  0x5f   : > { %3937 = vmatpush3.bf16.msra.mxu0 %v4380_v37  ;;  %3890 = vmatprep.subr.bf16.mxu1 %v4381_v38  ;;  %v2097_v37 = vmax.f32 %v4868_v25, 0.0 }
  0x60   : > { %3938 = vmatprep.subr.bf16.mxu0 %v4382_v41 }
  0x62   : > { %3891 = vmatpush3.bf16.msra.mxu1 %v4381_v38 }
  0x63   : > { %3939 = vmatpush3.bf16.msra.mxu0 %v4382_v41  ;;  %3892 = vmatprep.subr.bf16.mxu1 %v4383_v43  ;;  %v4402_v41 = vld [vmem:[%s5369_s3 + $0x40] sm:$0xff]  }
  0x64   : > { %3940 = vmatprep.subr.bf16.mxu0 %v4384_v44 }
  0x66   : > { %3893 = vmatpush3.bf16.msra.mxu1 %v4383_v43 }
  0x67   : > { %3941 = vmatpush3.bf16.msra.mxu0 %v4384_v44  ;;  %3974 = vmatprep.subr.bf16.mxu1 %v4386_v46  ;;  %v4895_v44 = vadd.f32 %v4676_v40, %v1239_v30 }
  0x68   : > { %3950 = vmatprep.subr.bf16.mxu0 %v4385_v47 }
  0x69   : > { %3895 = vmatmul.mubr.bf16.vlgmr.msra.gmra.mrb[0].mxu1 %v4699_v59  ;;  %v3571_v59 = vunpack.c.h.bf16 %v3651_v39  ;;  %v4401_v39 = vld [vmem:[%s5369_s3] sm:$0xff]  }
  0x6a   : > { %3943 = vmatmul.mubr.bf16.vlgmr.msra.gmra.mrb[0].mxu0 %v3496_v26  ;;  %3975 = vmatpush3.bf16.msra.mxu1 %v4386_v46  ;;  %v2088_v26 = vadd.f32 %v4676_v40, %v2078_v19  ;;  %v1262_v46 = vmax.f32 %v4876_v31, 0.0  ;;  %v4424_v31 = vld [vmem:[%s5369_s3 + $0x18] sm:$0xff]  }
  0x6b   : > { %3951 = vmatpush3.bf16.msra.mxu0 %v4385_v47  ;;  %3976 = vmatprep.subr.bf16.mxu1 %v4388_v49  ;;  %v1235_v1 = vmul.f32 %v3571_v59, %v4664_v35  ;;  %v4904_v47 = vadd.f32 %v4676_v40, %v1240_v33  ;;  %v4405_v59 = vld [vmem:[%s5369_s3 + $0x10] sm:$0xff]   ;;  %v4473_v33 = vld [vmem:[%s5367_s1] ss:$0 sm:$0xff] }
  0x6c   : > { %3952 = vmatprep.subr.bf16.mxu0 %v4387_v50  ;;  %3898 = vmatprep.mubr.bf16.mxu1 %v4711_v9  ;;  %v4881_v38 = vmax.f32 %v2088_v26, 0.0  ;;  %v2092_v26 = vmax.f32 %v4992_v18, 0.0  ;;  %v4449_v18 = vld [vmem:[%s5369_s3 + $0x100] sm:$0xff]  }
  0x6d   : > { %3946 = vmatprep.mubr.bf16.mxu0 %v4737_v27  ;;  %v4872_v27 = vadd.f32 %v4676_v40, %v1237_v14  ;;  %v4413_v14 = vld [vmem:[%s5369_s3 + $0x30] sm:$0xff]  }
  0x6e   : > { %3977 = vmatpush3.bf16.msra.mxu1 %v4388_v49  ;;  %v4900_v45 = vpack.c.bf16 %v4881_v38, %v2097_v37  ;;  %v2070_v49 = vmul.f32 %v3611_v34, %v4664_v35  ;;  %v2076_v34 = vmul.f32 %v4473_v33, %v3623_v20  ;;  %v4451_v20 = vld [vmem:[%s5369_s3 + $0x108] sm:$0xff]   ;;  %v4461_v33 = vld [vmem:[%s5369_s3 + $0x130] sm:$0xff]  }
  0x6f   : > { %3953 = vmatpush3.bf16.msra.mxu0 %v4387_v50  ;;  %3978 = vmatprep.subr.bf16.mxu1 %v4390_v52  ;;  %v1261_v43 = vmax.f32 %v4872_v27, 0.0  ;;  %v2071_v50 = vmul.f32 %v3614_v36, %v4664_v35  ;;  %v4417_v36 = vld [vmem:[%s5369_s3 + $0x80] sm:$0xff]  }
  0x70   : > { %3954 = vmatprep.subr.bf16.mxu0 %v4389_v53  ;;  %v4924_v57 = vadd.f32 %v4676_v40, %v2070_v49 }
  0x71   : > { %3899 = vmatmul.mubr.bf16.gmra.mrb[4].mxu1 %v4739_v28 }
  0x72   : > { %3979 = vmatpush3.bf16.msra.mxu1 %v4390_v52  ;;  %3947 = vmatmul.mubr.bf16.gmra.mrb[4].mxu0 %v3502_v55  ;;  %v4403_v52 = vld [vmem:[%s5369_s3 + $0x8] sm:$0xff]  }
  0x73   : > { %3955 = vmatpush3.bf16.msra.mxu0 %v4389_v53  ;;  %3980 = vmatprep.subr.bf16.mxu1 %v4392_v56  ;;  %v4404_v53 = vld [vmem:[%s5369_s3 + $0x48] sm:$0xff]  }
  0x74   : > { %3956 = vmatprep.subr.bf16.mxu0 %v4391_v54  ;;  %3966 = vmatprep.mubr.bf16.mxu0 %v4711_v9  ;;  %v4844_v9 = vadd.f32 %v4676_v40, %v1235_v1  ;;  %v4407_v1 = vld [vmem:[%s5369_s3 + $0x18] sm:$0xff]  }
  0x75   : > { %3990 = vmatprep.mubr.bf16.mxu1 %v3502_v55  ;;  %v4920_v55 = vpack.c.bf16 %v1262_v46, %v1261_v43 }
  0x76   : > { %3981 = vmatpush3.bf16.msra.mxu1 %v4392_v56  ;;  %v1259_v23 = vmax.f32 %v4844_v9, 0.0  ;;  %v1264_v56 = vmax.f32 %v4904_v47, 0.0  ;;  %v4412_v9 = vld [vmem:[%s5369_s3 + $0x68] sm:$0xff]  }
  0x77   : > { %3957 = vmatpush3.bf16.msra.mxu0 %v4391_v54  ;;  %3982 = vmatprep.subr.bf16.mxu1 %v4394_v58  ;;  %v1263_v54 = vmax.f32 %v4895_v44, 0.0  ;;  %v4426_v44 = vld [vmem:[%s5369_s3 + $0x20] sm:$0xff]   ;;  %v4428_v47 = vld [vmem:[%s5369_s3 + $0x28] sm:$0xff]  }
  0x78   : > { %3958 = vmatprep.subr.bf16.mxu0 %v4393_v61  ;;  %v4891_v42 = vpack.c.bf16 %v1260_v24, %v1259_v23 }
  0x79   : > { %v5066_v27 = vpack.c.bf16 %v1263_v54, %v1262_v46  ;;  %v4427_v46 = vld [vmem:[%s5369_s3 + $0xa8] sm:$0xff]  }
  0x7a   : > { %3983 = vmatpush3.bf16.msra.mxu1 %v4394_v58  ;;  %v4927_v58 = vadd.f32 %v4676_v40, %v2071_v50  ;;  %v4474_v50 = vld [vmem:[%s5368_s2] ss:$0 sm:$0xff] }
  0x7b   : > { %3959 = vmatpush3.bf16.msra.mxu0 %v4393_v61  ;;  %3984 = vmatprep.subr.bf16.mxu1 %v4396_v0  ;;  %v2090_v61 = vmax.f32 %v4924_v57, 0.0  ;;  %v4431_v57 = vld [vmem:[%s5369_s3 + $0xb8] sm:$0xff]  }
  0x7c   : > { %3960 = vmatprep.subr.bf16.mxu0 %v4395_v3  ;;  %v2091_v63 = vmax.f32 %v4927_v58, 0.0 }
  0x7d   : > { %v5085_v25 = vpack.c.bf16 %v2090_v61, %v1264_v56 }
  0x7e   : > { %3985 = vmatpush3.bf16.msra.mxu1 %v4396_v0  ;;  %v4948_v0 = vpack.c.bf16 %v1259_v23, %v426_v51  ;;  %v4961_v48 = vpack.c.bf16 %v2091_v63, %v2090_v61  ;;  %v4409_v51 = vld [vmem:[%s5369_s3 + $0x20] sm:$0xff]   ;;  %v4432_v61 = vld [vmem:[%s5369_s3 + $0x38] sm:$0xff]  }
  0x7f   : > { %3961 = vmatpush3.bf16.msra.mxu0 %v4395_v3  ;;  %3986 = vmatprep.subr.bf16.mxu1 %v4398_v8  ;;  %v3667_v3 = vld [vmem:[%s4667_s15 + $0x48] sm:$0xff]  }
  0x80   : > { %3962 = vmatprep.subr.bf16.mxu0 %v4397_v13  ;;  %v3618_v6 = vunpack.c.l.bf16 %v3667_v3  ;;  %v3619_v11 = vunpack.c.h.bf16 %v3667_v3  ;;  %v4434_v3 = vld [vmem:[%s5369_s3 + $0x80] sm:$0xff]  }
  0x82   : > { %3987 = vmatpush3.bf16.msra.mxu1 %v4398_v8  ;;  %v4411_v8 = vld [vmem:[%s5369_s3 + $0x28] sm:$0xff]   ;;  %v2074_v16 = vmul.f32 %v3619_v11, %v4664_v35  ;;  %v4440_v11 = vld [vmem:[%s5369_s3 + $0x98] sm:$0xff]  }
  0x83   : > { %3963 = vmatpush3.bf16.msra.mxu0 %v4397_v13  ;;  %3988 = vmatprep.subr.bf16.mxu1 %v4400_v22  ;;  %v2073_v13 = vmul.f32 %v3618_v6, %v4664_v35  ;;  %v4436_v6 = vld [vmem:[%s5369_s3 + $0x88] sm:$0xff]  }
  0x84   : > { %3964 = vmatprep.subr.bf16.mxu0 %v4399_v21 }
  0x85   : > { %v4995_v19 = vadd.f32 %v4676_v40, %v2073_v13  ;;  %v4443_v13 = vld [vmem:[%s5369_s3 + $0xe8] sm:$0xff]  }
  0x86   : > { %3989 = vmatpush3.bf16.msra.mxu1 %v4400_v22  ;;  %v4416_v22 = vld [vmem:[%s5369_s3 + $0x78] sm:$0xff]  }
  0x87   : > { %3965 = vmatpush3.bf16.msra.mxu0 %v4399_v21  ;;  %3998 = vmatprep.subr.bf16.mxu1 %v4401_v39  ;;  %v4415_v21 = vld [vmem:[%s5369_s3 + $0x38] sm:$0xff]   ;;  %v2093_v30 = vmax.f32 %v4995_v19, 0.0  ;;  %v4450_v19 = vld [vmem:[%s5369_s3 + $0xc0] sm:$0xff]  }
  0x88   : > { %4094 = vmatprep.subr.bf16.mxu0 %v4402_v41 }
  0x89   : > { %3991 = vmatmul.mubr.bf16.vlgmr.msra.gmra.mrb[8].mxu1 %v4891_v42  ;;  %v5026_v49 = vpack.c.bf16 %v2093_v30, %v2092_v26 }
  0x8a   : > { %3967 = vmatmul.mubr.bf16.vlgmr.msra.gmra.mrb[0].mxu0 %v4739_v28  ;;  %3999 = vmatpush3.bf16.msra.mxu1 %v4401_v39  ;;  %v4942_v28 = vpack.c.bf16 %v1264_v56, %v1263_v54  ;;  %v4429_v54 = vld [vmem:[%s5369_s3 + $0xb0] sm:$0xff]  }
  0x8b   : > { %4095 = vmatpush3.bf16.msra.mxu0 %v4402_v41  ;;  %4000 = vmatprep.subr.bf16.mxu1 %v4403_v52  ;;  %v4430_v56 = vld [vmem:[%s5369_s3 + $0x30] sm:$0xff]  }
  0x8c   : > { %4096 = vmatprep.subr.bf16.mxu0 %v4404_v53  ;;  %3970 = vmatprep.mubr.bf16.mxu0 %v4743_v29 }
  0x8d   : > { %3994 = vmatprep.mubr.bf16.mxu1 %v4920_v55 }
  0x8e   : > { %4001 = vmatpush3.bf16.msra.mxu1 %v4403_v52  ;;  %v5031_v52 = vadd.f32 %v4474_v50, %v2076_v34  ;;  %v4462_v34 = vld [vmem:[%s5369_s3 + $0xf0] sm:$0xff]  }
  0x8f   : > { %4097 = vmatpush3.bf16.msra.mxu0 %v4404_v53  ;;  %4002 = vmatprep.subr.bf16.mxu1 %v4405_v59  ;;  %v4419_v53 = vld [vmem:[%s5369_s3 + $0x88] sm:$0xff]   ;;  %v4467_v50 = vld [vmem:[%s5369_s3 + $0x110] sm:$0xff]  }
  0x90   : > { %4098 = vmatprep.subr.bf16.mxu0 %v4406_v60 }
  0x91   : > { %3995 = vmatmul.mubr.bf16.gmra.mrb[12].mxu1 %v4942_v28 }
  0x92   : > { %3971 = vmatmul.mubr.bf16.gmra.mrb[4].mxu0 %v4948_v0  ;;  %4003 = vmatpush3.bf16.msra.mxu1 %v4405_v59  ;;  %v4420_v59 = vld [vmem:[%s5369_s3 + $0x8] sm:$0xff]  }
  0x93   : > { %4099 = vmatpush3.bf16.msra.mxu0 %v4406_v60  ;;  %4004 = vmatprep.subr.bf16.mxu1 %v4407_v1  ;;  %v5043_v60 = vpack.c.bf16 %v1261_v43, %v1260_v24  ;;  %v4422_v24 = vld [vmem:[%s5369_s3 + $0x10] sm:$0xff]  }
  0x94   : > { %4100 = vmatprep.subr.bf16.mxu0 %v4408_v2  ;;  %4014 = vmatprep.mubr.bf16.mxu1 %v4743_v29  ;;  %v3622_v29 = vunpack.c.l.bf16 %v3668_v7  ;;  %v4438_v7 = vld [vmem:[%s5369_s3 + $0x90] sm:$0xff]  }
  0x95   : > { %4110 = vmatprep.mubr.bf16.mxu0 %v4961_v48 }
  0x96   : > { %4005 = vmatpush3.bf16.msra.mxu1 %v4407_v1  ;;  %v2075_v17 = vmul.f32 %v3622_v29, %v4664_v35  ;;  %v5004_v35 = vadd.f32 %v4676_v40, %v2074_v16  ;;  %v4441_v29 = vld [vmem:[%s5369_s3 + $0xe0] sm:$0xff]   ;;  %v4447_v16 = vld [vmem:[%s5369_s3 + $0xf8] sm:$0xff]  }
  0x97   : > { %4101 = vmatpush3.bf16.msra.mxu0 %v4408_v2  ;;  %4006 = vmatprep.subr.bf16.mxu1 %v4409_v51  ;;  %v2096_v2 = vmax.f32 %v5031_v52, 0.0 }
  0x98   : > { %4102 = vmatprep.subr.bf16.mxu0 %v4410_v4  ;;  %v5007_v23 = vadd.f32 %v4676_v40, %v2075_v17  ;;  %v4418_v40 = vld [vmem:[%s5369_s3] sm:$0xff]   ;;  %v2094_v39 = vmax.f32 %v5004_v35, 0.0  ;;  %v4448_v17 = vld [vmem:[%s5369_s3 + $0xb8] sm:$0xff]   ;;  %v4454_v35 = vld [vmem:[%s5369_s3 + $0xd0] sm:$0xff]  }
  0x99   : > { %v5072_v43 = vpack.c.bf16 %v2097_v37, %v2096_v2  ;;  %v4425_v37 = vld [vmem:[%s5369_s3 + $0xa0] sm:$0xff]  }
  0x9a   : > { %4007 = vmatpush3.bf16.msra.mxu1 %v4409_v51  ;;  %v2095_v41 = vmax.f32 %v5007_v23, 0.0  ;;  %v4423_v51 = vld [vmem:[%s5369_s3 + $0x98] sm:$0xff]   ;;  %v5137_v58 = vpack.c.bf16 %v2094_v39, %v2093_v30  ;;  %v4460_v30 = vld [vmem:[%s5369_s3 + $0xe8] sm:$0xff]  }
  0x9b   : > { %4103 = vmatpush3.bf16.msra.mxu0 %v4410_v4  ;;  %4008 = vmatprep.subr.bf16.mxu1 %v4411_v8  ;;  %v5124_v4 = vpack.c.bf16 %v2092_v26, %v2091_v63  ;;  %v4437_v63 = vld [vmem:[%s5369_s3 + $0xd0] sm:$0xff]   ;;  %v4456_v23 = vld [vmem:[%s5369_s3 + $0xd8] sm:$0xff]   ;;  %v4458_v26 = vld [vmem:[%s5369_s3 + $0xe0] sm:$0xff]  }
  0x9c   : > { %4104 = vmatprep.subr.bf16.mxu0 %v4412_v9  ;;  %v5050_v1 = vpack.c.bf16 %v2095_v41, %v2094_v39  ;;  %v4465_v39 = vld [vmem:[%s5369_s3 + $0x100] sm:$0xff]  }
  0x9e   : > { %4009 = vmatpush3.bf16.msra.mxu1 %v4411_v8  ;;  %v5152_v8 = vpack.c.bf16 %v2096_v2, %v2095_v41  ;;  %v4466_v41 = vld [vmem:[%s5369_s3 + $0x108] sm:$0xff]  }
  0x9f   : > { %4105 = vmatpush3.bf16.msra.mxu0 %v4412_v9  ;;  %4010 = vmatprep.subr.bf16.mxu1 %v4413_v14  ;;  %v4439_v9 = vld [vmem:[%s5369_s3 + $0xd8] sm:$0xff]  }
  0xa0   : > { %4106 = vmatprep.subr.bf16.mxu0 %v4414_v15 }
  0xa2   : > { %4011 = vmatpush3.bf16.msra.mxu1 %v4413_v14  ;;  %v4444_v14 = vld [vmem:[%s5369_s3 + $0xa8] sm:$0xff]  }
  0xa3   : > { %4107 = vmatpush3.bf16.msra.mxu0 %v4414_v15  ;;  %4012 = vmatprep.subr.bf16.mxu1 %v4415_v21  ;;  %v4446_v15 = vld [vmem:[%s5369_s3 + $0xb0] sm:$0xff]  }
  0xa4   : > { %4108 = vmatprep.subr.bf16.mxu0 %v4416_v22 }
  0xa6   : > { %4013 = vmatpush3.bf16.msra.mxu1 %v4415_v21  ;;  %v4452_v21 = vld [vmem:[%s5369_s3 + $0xc8] sm:$0xff]  }
  0xa7   : > { %4109 = vmatpush3.bf16.msra.mxu0 %v4416_v22  ;;  %4022 = vmatprep.subr.bf16.mxu1 %v4417_v36  ;;  %v4453_v22 = vld [vmem:[%s5369_s3 + $0x110] sm:$0xff]  }
  0xa8   : > { %4118 = vmatprep.subr.bf16.mxu0 %v4418_v40 }
  0xa9   : > { %4015 = vmatmul.mubr.bf16.vlgmr.msra.gmra.mrb[8].mxu1 %v4948_v0 }
  0xaa   : > { %4023 = vmatpush3.bf16.msra.mxu1 %v4417_v36  ;;  %4111 = vmatmul.mubr.bf16.vlgmr.msra.gmra.mrb[8].mxu0 %v5026_v49  ;;  %v4463_v36 = vld [vmem:[%s5369_s3 + $0x138] sm:$0xff]  }
  0xab   : > { %4119 = vmatpush3.bf16.msra.mxu0 %v4418_v40  ;;  %4024 = vmatprep.subr.bf16.mxu1 %v4419_v53  ;;  %v4464_v40 = vld [vmem:[%s5369_s3 + $0xf8] sm:$0xff]  }
  0xac   : > { %4120 = vmatprep.subr.bf16.mxu0 %v4420_v59  ;;  %4018 = vmatprep.mubr.bf16.mxu1 %v5043_v60 }
  0xad   : > { %4114 = vmatprep.mubr.bf16.mxu0 %v5050_v1 }
  0xae   : > { %4025 = vmatpush3.bf16.msra.mxu1 %v4419_v53  ;;  %v4469_v53 = vld [vmem:[%s5369_s3 + $0x120] sm:$0xff]  }
  0xaf   : > { %4121 = vmatpush3.bf16.msra.mxu0 %v4420_v59  ;;  %4026 = vmatprep.subr.bf16.mxu1 %v4421_v10  ;;  %v4471_v59 = vld [vmem:[%s5369_s3 + $0x130] sm:$0xff]  }
  0xb0   : > { %4122 = vmatprep.subr.bf16.mxu0 %v4422_v24 }
  0xb1   : > { %4019 = vmatmul.mubr.bf16.gmra.mrb[12].mxu1 %v5066_v27 }
  0xb2   : > { %4027 = vmatpush3.bf16.msra.mxu1 %v4421_v10  ;;  %4115 = vmatmul.mubr.bf16.gmra.mrb[12].mxu0 %v5072_v43 }
  0xb3   : > { %4123 = vmatpush3.bf16.msra.mxu0 %v4422_v24  ;;  %4028 = vmatprep.subr.bf16.mxu1 %v4423_v51 }
  0xb4   : > { %4124 = vmatprep.subr.bf16.mxu0 %v4424_v31  ;;  %4038 = vmatprep.mubr.bf16.mxu1 %v4948_v0  ;;  %v4433_v0 = vld [vmem:[%s5369_s3 + $0xc0] sm:$0xff]  }
  0xb5   : > { %4134 = vmatprep.mubr.bf16.mxu0 %v5085_v25 }
  0xb6   : > { %4029 = vmatpush3.bf16.msra.mxu1 %v4423_v51 }
  0xb7   : > { %4125 = vmatpush3.bf16.msra.mxu0 %v4424_v31  ;;  %4030 = vmatprep.subr.bf16.mxu1 %v4425_v37 }
  0xb8   : > { %4126 = vmatprep.subr.bf16.mxu0 %v4426_v44 }
  0xba   : > { %4031 = vmatpush3.bf16.msra.mxu1 %v4425_v37 }
  0xbb   : > { %4127 = vmatpush3.bf16.msra.mxu0 %v4426_v44  ;;  %4032 = vmatprep.subr.bf16.mxu1 %v4427_v46 }
  0xbc   : > { %4128 = vmatprep.subr.bf16.mxu0 %v4428_v47 }
  0xbe   : > { %4033 = vmatpush3.bf16.msra.mxu1 %v4427_v46 }
  0xbf   : > { %4129 = vmatpush3.bf16.msra.mxu0 %v4428_v47  ;;  %4034 = vmatprep.subr.bf16.mxu1 %v4429_v54 }
  0xc0   : > { %4130 = vmatprep.subr.bf16.mxu0 %v4430_v56 }
  0xc2   : > { %4035 = vmatpush3.bf16.msra.mxu1 %v4429_v54 }
  0xc3   : > { %4131 = vmatpush3.bf16.msra.mxu0 %v4430_v56  ;;  %4036 = vmatprep.subr.bf16.mxu1 %v4431_v57 }
  0xc4   : > { %4132 = vmatprep.subr.bf16.mxu0 %v4432_v61 }
  0xc6   : > { %4037 = vmatpush3.bf16.msra.mxu1 %v4431_v57 }
  0xc7   : > { %4133 = vmatpush3.bf16.msra.mxu0 %v4432_v61  ;;  %4046 = vmatprep.subr.bf16.mxu1 %v4433_v0 }
  0xc8   : > { %4142 = vmatprep.subr.bf16.mxu0 %v4434_v3 }
  0xc9   : > { %4039 = vmatmul.mubr.bf16.vlgmr.msra.gmra.mrb[8].mxu1 %v5043_v60 }
  0xca   : > { %4047 = vmatpush3.bf16.msra.mxu1 %v4433_v0  ;;  %4135 = vmatmul.mubr.bf16.vlgmr.msra.gmra.mrb[8].mxu0 %v5124_v4 }
  0xcb   : > { %4143 = vmatpush3.bf16.msra.mxu0 %v4434_v3  ;;  %4048 = vmatprep.subr.bf16.mxu1 %v4435_v5 }
  0xcc   : > { %4144 = vmatprep.subr.bf16.mxu0 %v4436_v6  ;;  %4042 = vmatprep.mubr.bf16.mxu1 %v5066_v27 }
  0xcd   : > { %4138 = vmatprep.mubr.bf16.mxu0 %v5137_v58 }
  0xce   : > { %4049 = vmatpush3.bf16.msra.mxu1 %v4435_v5 }
  0xcf   : > { %4145 = vmatpush3.bf16.msra.mxu0 %v4436_v6  ;;  %4050 = vmatprep.subr.bf16.mxu1 %v4437_v63 }
  0xd0   : > { %4146 = vmatprep.subr.bf16.mxu0 %v4438_v7 }
  0xd1   : > { %4043 = vmatmul.mubr.bf16.gmra.mrb[12].mxu1 %v5085_v25 }
  0xd2   : > { %4051 = vmatpush3.bf16.msra.mxu1 %v4437_v63  ;;  %4139 = vmatmul.mubr.bf16.gmra.mrb[12].mxu0 %v5152_v8 }
  0xd3   : > { %4147 = vmatpush3.bf16.msra.mxu0 %v4438_v7  ;;  %4052 = vmatprep.subr.bf16.mxu1 %v4439_v9 }
  0xd4   : > { %4148 = vmatprep.subr.bf16.mxu0 %v4440_v11  ;;  %4062 = vmatprep.mubr.bf16.mxu1 %v4891_v42  ;;  %v4445_v42 = vld [vmem:[%s5369_s3 + $0xf0] sm:$0xff]  }
  0xd5   : > { %4158 = vmatprep.mubr.bf16.mxu0 %v5124_v4 }
  0xd6   : > { %4053 = vmatpush3.bf16.msra.mxu1 %v4439_v9 }
  0xd7   : > { %4149 = vmatpush3.bf16.msra.mxu0 %v4440_v11  ;;  %4054 = vmatprep.subr.bf16.mxu1 %v4441_v29 }
  0xd8   : > { %4150 = vmatprep.subr.bf16.mxu0 %v4442_v12 }
  0xda   : > { %4055 = vmatpush3.bf16.msra.mxu1 %v4441_v29 }
  0xdb   : > { %4151 = vmatpush3.bf16.msra.mxu0 %v4442_v12  ;;  %4056 = vmatprep.subr.bf16.mxu1 %v4443_v13 }
  0xdc   : > { %4152 = vmatprep.subr.bf16.mxu0 %v4444_v14 }
  0xde   : > { %4057 = vmatpush3.bf16.msra.mxu1 %v4443_v13 }
  0xdf   : > { %4153 = vmatpush3.bf16.msra.mxu0 %v4444_v14  ;;  %4058 = vmatprep.subr.bf16.mxu1 %v4445_v42 }
  0xe0   : > { %4154 = vmatprep.subr.bf16.mxu0 %v4446_v15 }
  0xe2   : > { %4059 = vmatpush3.bf16.msra.mxu1 %v4445_v42 }
  0xe3   : > { %4155 = vmatpush3.bf16.msra.mxu0 %v4446_v15  ;;  %4060 = vmatprep.subr.bf16.mxu1 %v4447_v16 }
  0xe4   : > { %4156 = vmatprep.subr.bf16.mxu0 %v4448_v17 }
  0xe6   : > { %4061 = vmatpush3.bf16.msra.mxu1 %v4447_v16 }
  0xe7   : > { %4157 = vmatpush3.bf16.msra.mxu0 %v4448_v17  ;;  %4070 = vmatprep.subr.bf16.mxu1 %v4449_v18 }
  0xe8   : > { %4166 = vmatprep.subr.bf16.mxu0 %v4450_v19 }
  0xe9   : > { %4063 = vmatmul.mubr.bf16.vlgmr.msra.gmra.mrb[8].mxu1 %v4920_v55  ;;  %v4455_v55 = vld [vmem:[%s5369_s3 + $0x118] sm:$0xff]  }
  0xea   : > { %4071 = vmatpush3.bf16.msra.mxu1 %v4449_v18  ;;  %4159 = vmatmul.mubr.bf16.vlgmr.msra.gmra.mrb[8].mxu0 %v5137_v58 }
  0xeb   : > { %4167 = vmatpush3.bf16.msra.mxu0 %v4450_v19  ;;  %4072 = vmatprep.subr.bf16.mxu1 %v4451_v20 }
  0xec   : > { %4168 = vmatprep.subr.bf16.mxu0 %v4452_v21  ;;  %4066 = vmatprep.mubr.bf16.mxu1 %v4942_v28  ;;  %v4457_v28 = vld [vmem:[%s5369_s3 + $0x120] sm:$0xff]  }
  0xed   : > { %4162 = vmatprep.mubr.bf16.mxu0 %v5152_v8 }
  0xee   : > { %4073 = vmatpush3.bf16.msra.mxu1 %v4451_v20 }
  0xef   : > { %4169 = vmatpush3.bf16.msra.mxu0 %v4452_v21  ;;  %4074 = vmatprep.subr.bf16.mxu1 %v4453_v22 }
  0xf0   : > { %4170 = vmatprep.subr.bf16.mxu0 %v4454_v35 }
  0xf1   : > { %4067 = vmatmul.mubr.bf16.gmra.mrb[12].mxu1 %v4961_v48  ;;  %v4459_v48 = vld [vmem:[%s5369_s3 + $0x128] sm:$0xff]  }
  0xf2   : > { %4075 = vmatpush3.bf16.msra.mxu1 %v4453_v22  ;;  %4163 = vmatmul.mubr.bf16.gmra.mrb[12].mxu0 %v4900_v45 }
  0xf3   : > { %4171 = vmatpush3.bf16.msra.mxu0 %v4454_v35  ;;  %4076 = vmatprep.subr.bf16.mxu1 %v4455_v55 }
  0xf4   : > { %4172 = vmatprep.subr.bf16.mxu0 %v4456_v23  ;;  %4086 = vmatprep.mubr.bf16.mxu1 %v5043_v60 }
  0xf5   : > { %4182 = vmatprep.mubr.bf16.mxu0 %v5026_v49  ;;  %v2108_v49 = vpack.c.bf16 %v4881_v38, %v4881_v38  ;;  %v4468_v38 = vld [vmem:[%s5369_s3 + $0x118] sm:$0xff]  }
  0xf6   : > { %4077 = vmatpush3.bf16.msra.mxu1 %v4455_v55 }
  0xf7   : > { %4173 = vmatpush3.bf16.msra.mxu0 %v4456_v23  ;;  %4078 = vmatprep.subr.bf16.mxu1 %v4457_v28  ;;  %v3451_v52 = vcombine.low %v2108_v49, %v4499_v62  ;;  %v4470_v62 = vld [vmem:[%s5369_s3 + $0x128] sm:$0xff]  }
  0xf8   : > { %4174 = vmatprep.subr.bf16.mxu0 %v4458_v26 }
  0xfa   : > { %4079 = vmatpush3.bf16.msra.mxu1 %v4457_v28 }
  0xfb   : > { %4175 = vmatpush3.bf16.msra.mxu0 %v4458_v26  ;;  %4080 = vmatprep.subr.bf16.mxu1 %v4459_v48 }
  0xfc   : > { %4176 = vmatprep.subr.bf16.mxu0 %v4460_v30 }
  0xfe   : > { %4081 = vmatpush3.bf16.msra.mxu1 %v4459_v48 }
  0xff   : > { %4177 = vmatpush3.bf16.msra.mxu0 %v4460_v30  ;;  %4082 = vmatprep.subr.bf16.mxu1 %v4461_v33 }
 0x100   : > { %4178 = vmatprep.subr.bf16.mxu0 %v4462_v34 }
 0x102   : > { %4083 = vmatpush3.bf16.msra.mxu1 %v4461_v33 }
 0x103   : > { %4179 = vmatpush3.bf16.msra.mxu0 %v4462_v34  ;;  %4084 = vmatprep.subr.bf16.mxu1 %v4463_v36 }
 0x104   : > { %4180 = vmatprep.subr.bf16.mxu0 %v4464_v40 }
 0x106   : > { %4085 = vmatpush3.bf16.msra.mxu1 %v4463_v36 }
 0x107   : > { %4181 = vmatpush3.bf16.msra.mxu0 %v4464_v40  ;;  %4214 = vmatprep.subr.bf16.mxu1 %v4465_v39 }
 0x108   : > { %4190 = vmatprep.subr.bf16.mxu0 %v4465_v39 }
 0x109   : > { %4087 = vmatmul.mubr.bf16.vlgmr.msra.gmra.mrb[8].mxu1 %v5066_v27 }
 0x10a   : > { %4183 = vmatmul.mubr.bf16.vlgmr.msra.gmra.mrb[8].mxu0 %v5050_v1  ;;  %4222 = vmatpush3.bf16.msra.mxu1 %v4465_v39 }
 0x10b   : > { %4191 = vmatpush3.bf16.msra.mxu0 %v4465_v39  ;;  %4215 = vmatprep.subr.bf16.mxu1 %v4466_v41 }
 0x10c   : > { %4192 = vmatprep.subr.bf16.mxu0 %v4466_v41  ;;  %4090 = vmatprep.mubr.bf16.mxu1 %v5085_v25 }
 0x10d   : > { %4186 = vmatprep.mubr.bf16.mxu0 %v5072_v43 }
 0x10e   : > { %4223 = vmatpush3.bf16.msra.mxu1 %v4466_v41 }
 0x10f   : > { %4193 = vmatpush3.bf16.msra.mxu0 %v4466_v41  ;;  %4216 = vmatprep.subr.bf16.mxu1 %v4467_v50 }
 0x110   : > { %4194 = vmatprep.subr.bf16.mxu0 %v4467_v50 }
 0x111   : > { %4091 = vmatmul.mubr.bf16.gmra.mrb[12].mxu1 %v5124_v4 }
 0x112   : > { %4187 = vmatmul.mubr.bf16.gmra.mrb[12].mxu0 %v3451_v52  ;;  %4224 = vmatpush3.bf16.msra.mxu1 %v4467_v50 }
 0x113   : > { %4195 = vmatpush3.bf16.msra.mxu0 %v4467_v50  ;;  %4217 = vmatprep.subr.bf16.mxu1 %v4468_v38 }
 0x114   : > { %4196 = vmatprep.subr.bf16.mxu0 %v4468_v38  ;;  %4206 = vmatprep.mubr.bf16.mxu0 %v5137_v58 }
 0x115   : > { %4210 = vmatprep.mubr.bf16.mxu1 %v4900_v45  ;;  %v4472_v45 = vld [vmem:[%s5369_s3 + $0x138] sm:$0xff]  }
 0x116   : > { %4225 = vmatpush3.bf16.msra.mxu1 %v4468_v38 }
 0x117   : > { %4197 = vmatpush3.bf16.msra.mxu0 %v4468_v38  ;;  %4218 = vmatprep.subr.bf16.mxu1 %v4469_v53 }
 0x118   : > { %4198 = vmatprep.subr.bf16.mxu0 %v4469_v53 }
 0x11a   : > { %4226 = vmatpush3.bf16.msra.mxu1 %v4469_v53 }
 0x11b   : > { %4199 = vmatpush3.bf16.msra.mxu0 %v4469_v53  ;;  %4219 = vmatprep.subr.bf16.mxu1 %v4470_v62 }
 0x11c   : > { %4200 = vmatprep.subr.bf16.mxu0 %v4470_v62 }
 0x11e   : > { %4227 = vmatpush3.bf16.msra.mxu1 %v4470_v62 }
 0x11f   : > { %4201 = vmatpush3.bf16.msra.mxu0 %v4470_v62  ;;  %4220 = vmatprep.subr.bf16.mxu1 %v4471_v59 }
 0x120   : > { %4202 = vmatprep.subr.bf16.mxu0 %v4471_v59 }
 0x122   : > { %4228 = vmatpush3.bf16.msra.mxu1 %v4471_v59 }
 0x123   : > { %4203 = vmatpush3.bf16.msra.mxu0 %v4471_v59  ;;  %4221 = vmatprep.subr.bf16.mxu1 %v4472_v45 }
 0x124   : > { %4204 = vmatprep.subr.bf16.mxu0 %v4472_v45 }
 0x126   : > { %4229 = vmatpush3.bf16.msra.mxu1 %v4472_v45 }
 0x127   : > { %4205 = vmatpush3.bf16.msra.mxu0 %v4472_v45 }
 0x129   : > { %4211 = vmatmul.mubr.bf16.vlgmr.msra.gmra.mrb[16].mxu1 %v4753_v32 }
 0x12a   : > { %4207 = vmatmul.mubr.bf16.vlgmr.msra.gmra.mrb[8].mxu0 %v5152_v8 }
 0x13c   : > { %v3896_v60 = vpop.f32.mrb[0].mxu1 }
 0x13d   : > { %v698_v1 = vpop.f32.mrb[1].mxu1 }
 0x13e   : > { %v3897_v2 = vpop.f32.mrb[2].mxu1 }
 0x13f   : > { %v701_v10 = vpop.f32.mrb[3].mxu1 }
 0x144   : > { %v3900_v24 = vpop.f32.mrb[4].mxu1 }
 0x145   : > { %v714_v27 = vpop.f32.mrb[5].mxu1 }
 0x146   : > { %v3901_v43 = vpop.f32.mrb[6].mxu1 }
 0x147   : > { %v717_v51 = vpop.f32.mrb[7].mxu1 }
 0x15d   : > { %v3968_v31 = vpop.f32.mrb[0].mxu0 }
 0x15e   : > { %v4230_v25 = vadd.f32 %v3968_v31, %v3896_v60  ;;  %v1116_v37 = vpop.f32.mrb[1].mxu0 }
 0x15f   : > { %v4231_v44 = vadd.f32 %v1116_v37, %v698_v1  ;;  %v3969_v46 = vpop.f32.mrb[2].mxu0 }
 0x160   : > { %v4232_v47 = vadd.f32 %v3969_v46, %v3897_v2  ;;  %v1119_v54 = vpop.f32.mrb[3].mxu0  ;;  %v1186_v4 = vmul.f32 %v4230_v25, %v4230_v25 }
 0x161   : > { %v4233_v56 = vadd.f32 %v1119_v54, %v701_v10  ;;  %v1184_v57 = vmul.f32 %v4231_v44, %v4231_v44 }
 0x162   : > { %v3552_v32 = vpack.c.bf16 %v4232_v47, %v4230_v25  ;;  %v1187_v8 = vmul.f32 %v4232_v47, %v4232_v47 }
 0x163   : > { %v3547_v61 = vpack.c.bf16 %v4233_v56, %v4231_v44  ;;  %v1171_v0 = vadd.f32 %v4233_v56, %v4231_v44  ;;  %v1185_v3 = vmul.f32 %v4233_v56, %v4233_v56 }
 0x164   : > { %3652 = vst [vmem:[%s5281_s17 + $0x8] sm:$0xff] %v3552_v32  }
 0x165   : > { %3548 = vst [vmem:[%s5281_s17] sm:$0xff] %v3547_v61   ;;  %v1172_v5 = vadd.f32 %v4230_v25, %v1171_v0  ;;  %v1192_v6 = vadd.f32 %v1185_v3, %v1184_v57  ;;  %v3972_v58 = vpop.f32.mrb[4].mxu0 }
 0x166   : > { %v4234_v63 = vadd.f32 %v3972_v58, %v3900_v24  ;;  %v1132_v7 = vpop.f32.mrb[5].mxu0 }
 0x167   : > { %v1193_v9 = vadd.f32 %v1192_v6, %v1186_v4  ;;  %v4235_v11 = vadd.f32 %v1132_v7, %v714_v27  ;;  %v1173_v29 = vadd.f32 %v4232_v47, %v1172_v5  ;;  %v3973_v12 = vpop.f32.mrb[6].mxu0 }
 0x168   : > { %v4236_v13 = vadd.f32 %v3973_v12, %v3901_v43  ;;  %v1135_v14 = vpop.f32.mrb[7].mxu0  ;;  %v1190_v35 = vmul.f32 %v4234_v63, %v4234_v63 }
 0x169   : > { %v1174_v42 = vadd.f32 %v4235_v11, %v1173_v29  ;;  %v1188_v15 = vmul.f32 %v4235_v11, %v4235_v11  ;;  %v1194_v16 = vadd.f32 %v1193_v9, %v1187_v8  ;;  %v4237_v17 = vadd.f32 %v1135_v14, %v717_v51 }
 0x16a   : > { %v3562_v18 = vpack.c.bf16 %v4236_v13, %v4234_v63  ;;  %v1191_v28 = vmul.f32 %v4236_v13, %v4236_v13 }
 0x16b   : > { %v1195_v19 = vadd.f32 %v1194_v16, %v1188_v15  ;;  %v3557_v20 = vpack.c.bf16 %v4237_v17, %v4235_v11  ;;  %v1175_v21 = vadd.f32 %v4237_v17, %v1174_v42  ;;  %v1189_v22 = vmul.f32 %v4237_v17, %v4237_v17 }
 0x16c   : > { %3654 = vst [vmem:[%s5281_s17 + $0x18] sm:$0xff] %v3562_v18  }
 0x16d   : > { %3653 = vst [vmem:[%s5281_s17 + $0x10] sm:$0xff] %v3557_v20   ;;  %v1176_v55 = vadd.f32 %v4234_v63, %v1175_v21  ;;  %v1196_v23 = vadd.f32 %v1195_v19, %v1189_v22 }
 0x16f   : > { %v1177_v26 = vadd.f32 %v4236_v13, %v1176_v55  ;;  %v1197_v48 = vadd.f32 %v1196_v23, %v1190_v35 }
 0x171   : > { %v1198_v30 = vadd.f32 %v1197_v48, %v1191_v28  ;;  %v1178_v59 = vrot.slane %v1177_v26, 4 }
 0x173   : > { %v1199_v27 = vrot.slane %v1198_v30, 4  ;;  %v1179_v44 = vadd.f32 %v1178_v59, %v1177_v26 }
 0x175   : > { %v1200_v3 = vadd.f32 %v1199_v27, %v1198_v30  ;;  %v1180_v58 = vrot.slane %v1179_v44, 2 }
 0x177   : > { %v1201_v9 = vrot.slane %v1200_v3, 2  ;;  %v1181_v12 = vadd.f32 %v1180_v58, %v1179_v44 }
 0x179   : > { %v1202_v42 = vadd.f32 %v1201_v9, %v1200_v3  ;;  %v1182_v17 = vrot.slane %v1181_v12, 1 }
 0x17b   : > { %v1203_v20 = vrot.slane %v1202_v42, 1  ;;  %v1183_v35 = vadd.f32 %v1182_v17, %v1181_v12 }
 0x17d   : > { %v1204_v28 = vadd.f32 %v1203_v20, %v1202_v42  ;;  %v2904_v20 = vld [vmem:[%s5281_s17 + $0x4] sm:$0xf] (%p4561_p5) }
 0x17e   : > { %2905 = vst [vmem:[%s5308_s6 + $0x8] sm:$0xf] (%p4561_p5), %v2904_v20 }
 0x1dc   : > { %v4088_v33 = vpop.f32.mrb[8].mxu1 }
 0x1dd   : > { %v1956_v34 = vpop.f32.mrb[9].mxu1  ;;  %v2027_v38 = vmul.f32 %v4088_v33, %v4088_v33 }
 0x1de   : > { %v4089_v36 = vpop.f32.mrb[10].mxu1  ;;  %v2025_v41 = vmul.f32 %v1956_v34, %v1956_v34 }
 0x1df   : > { %v3596_v40 = vpack.c.bf16 %v4089_v36, %v4088_v33  ;;  %v1959_v39 = vpop.f32.mrb[11].mxu1  ;;  %v2028_v45 = vmul.f32 %v4089_v36, %v4089_v36 }
 0x1e0   : > { %v3591_v49 = vpack.c.bf16 %v1959_v39, %v1956_v34  ;;  %v2012_v50 = vadd.f32 %v1959_v39, %v1956_v34  ;;  %v2026_v52 = vmul.f32 %v1959_v39, %v1959_v39 }
 0x1e1   : > { %3662 = vst [vmem:[%s5281_s17 + $0x28] sm:$0xff] %v3596_v40  }
 0x1e2   : > { %3661 = vst [vmem:[%s5281_s17 + $0x20] sm:$0xff] %v3591_v49   ;;  %v2013_v53 = vadd.f32 %v4088_v33, %v2012_v50  ;;  %v2033_v62 = vadd.f32 %v2026_v52, %v2025_v41 }
 0x1e4   : > { %v2034_v60 = vadd.f32 %v2033_v62, %v2027_v38  ;;  %v4092_v1 = vpop.f32.mrb[12].mxu1  ;;  %v2014_v2 = vadd.f32 %v4089_v36, %v2013_v53 }
 0x1e5   : > { %v4188_v10 = vpop.f32.mrb[12].mxu0  ;;  %v1972_v24 = vpop.f32.mrb[13].mxu1  ;;  %v2031_v4 = vmul.f32 %v4092_v1, %v4092_v1 }
 0x1e6   : > { %v2015_v43 = vadd.f32 %v2014_v2, %v1972_v24  ;;  %v2029_v51 = vmul.f32 %v1972_v24, %v1972_v24  ;;  %v2035_v31 = vadd.f32 %v2034_v60, %v2028_v45  ;;  %v2658_v25 = vpop.f32.mrb[13].mxu0  ;;  %v4093_v37 = vpop.f32.mrb[14].mxu1 }
 0x1e7   : > { %v3606_v46 = vpack.c.bf16 %v4093_v37, %v4092_v1  ;;  %v4189_v47 = vpop.f32.mrb[14].mxu0  ;;  %v1975_v54 = vpop.f32.mrb[15].mxu1  ;;  %v2032_v63 = vmul.f32 %v4093_v37, %v4093_v37 }
 0x1e8   : > { %v2036_v56 = vadd.f32 %v2035_v31, %v2029_v51  ;;  %v3601_v32 = vpack.c.bf16 %v1975_v54, %v1972_v24  ;;  %v2016_v57 = vadd.f32 %v2015_v43, %v1975_v54  ;;  %v2030_v61 = vmul.f32 %v1975_v54, %v1975_v54  ;;  %v2661_v0 = vpop.f32.mrb[15].mxu0 }
 0x1e9   : > { %3664 = vst [vmem:[%s5281_s17 + $0x38] sm:$0xff] %v3606_v46  }
 0x1ea   : > { %3663 = vst [vmem:[%s5281_s17 + $0x30] sm:$0xff] %v3601_v32   ;;  %v2017_v5 = vadd.f32 %v4092_v1, %v2016_v57  ;;  %v2037_v6 = vadd.f32 %v2036_v56, %v2030_v61 }
 0x1ec   : > { %v2018_v7 = vadd.f32 %v4093_v37, %v2017_v5  ;;  %v2038_v8 = vadd.f32 %v2037_v6, %v2031_v4 }
 0x1ee   : > { %v2019_v11 = vrot.slane %v2018_v7, 4  ;;  %v2039_v29 = vadd.f32 %v2038_v8, %v2032_v63 }
 0x1f0   : > { %v2020_v13 = vadd.f32 %v2019_v11, %v2018_v7  ;;  %v2040_v14 = vrot.slane %v2039_v29, 4 }
 0x1f2   : > { %v2021_v15 = vrot.slane %v2020_v13, 2  ;;  %v2041_v16 = vadd.f32 %v2040_v14, %v2039_v29 }
 0x1f4   : > { %v2022_v18 = vadd.f32 %v2021_v15, %v2020_v13  ;;  %v2042_v19 = vrot.slane %v2041_v16, 2 }
 0x1f6   : > { %v2023_v21 = vrot.slane %v2022_v18, 1  ;;  %v2043_v22 = vadd.f32 %v2042_v19, %v2041_v16  ;;  %v2902_v19 = vld [vmem:[%s5281_s17] sm:$0xf] (%p4561_p5) }
 0x1f7   : > { %2903 = vst [vmem:[%s5308_s6] sm:$0xf] (%p4561_p5), %v2902_v19 }
 0x1f8   : > { %v2024_v55 = vadd.f32 %v2023_v21, %v2022_v18  ;;  %v2044_v23 = vrot.slane %v2043_v22, 1  ;;  %v2906_v21 = vld [vmem:[%s5281_s17 + $0x8] sm:$0xf] (%p4561_p5) }
 0x1f9   : > { %2907 = vst [vmem:[%s5308_s6 + $0x10] sm:$0xf] (%p4561_p5), %v2906_v21 }
 0x1fa   : > { %v2045_v26 = vadd.f32 %v2044_v23, %v2043_v22  ;;  %v2046_v48 = vadd.f32 %v2024_v55, %v1183_v35  ;;  %v2908_v22 = vld [vmem:[%s5281_s17 + $0xc] sm:$0xf] (%p4561_p5)  ;;  %v2910_v35 = vld [vmem:[%s5281_s17 + $0x10] sm:$0xf] (%p4561_p5)  ;;  %v2912_v55 = vld [vmem:[%s5281_s17 + $0x14] sm:$0xf] (%p4561_p5) }
 0x1fb   : > { %2909 = vst [vmem:[%s5308_s6 + $0x18] sm:$0xf] (%p4561_p5), %v2908_v22  ;;  %2911 = vst [vmem:[%s5308_s6 + $0x20] sm:$0xf] (%p4561_p5), %v2910_v35  ;;  %v2914_v23 = vld [vmem:[%s5281_s17 + $0x18] sm:$0xf] (%p4561_p5) }
 0x1fc   : > { %v2047_v30 = vadd.f32 %v2045_v26, %v1204_v28  ;;  %v4212_v33 = vpop.f32.mrb[16].mxu1  ;;  %v2916_v28 = vld [vmem:[%s5281_s17 + $0x1c] sm:$0xf] (%p4561_p5)  ;;  %2913 = vst [vmem:[%s5308_s6 + $0x28] sm:$0xf] (%p4561_p5), %v2912_v55 }
 0x1fd   : > { %v4208_v34 = vpop.f32.mrb[8].mxu0  ;;  %v4238_v36 = vadd.f32 %v4212_v33, %v4188_v10  ;;  %v2795_v40 = vpop.f32.mrb[17].mxu1  ;;  %2915 = vst [vmem:[%s5308_s6 + $0x30] sm:$0xf] (%p4561_p5), %v2914_v23  ;;  %2917 = vst [vmem:[%s5308_s6 + $0x38] sm:$0xf] (%p4561_p5), %v2916_v28 }
 0x1fe   : > { %v2779_v39 = vpop.f32.mrb[9].mxu0  ;;  %v4239_v41 = vadd.f32 %v2795_v40, %v2658_v25  ;;  %v4213_v49 = vpop.f32.mrb[18].mxu1  ;;  %v2850_v43 = vmul.f32 %v4208_v34, %v4208_v34  ;;  %v2918_v26 = vld [vmem:[%s5281_s17 + $0x20] sm:$0xf] (%p4561_p5)  ;;  %v2924_v33 = vld [vmem:[%s5281_s17 + $0x2c] sm:$0xf] (%p4561_p5) }
 0x1ff   : > { %v4209_v50 = vpop.f32.mrb[10].mxu0  ;;  %v4240_v52 = vadd.f32 %v4213_v49, %v4189_v47  ;;  %v2798_v38 = vpop.f32.mrb[19].mxu1  ;;  %v2848_v2 = vmul.f32 %v2779_v39, %v2779_v39  ;;  %v2854_v61 = vmul.f32 %v4238_v36, %v4238_v36  ;;  %2919 = vst [vmem:[%s5308_s6 + $0x40] sm:$0xf] (%p4561_p5), %v2918_v26  ;;  %2925 = vst [vmem:[%s5308_s6 + $0x58] sm:$0xf] (%p4561_p5), %v2924_v33 }
 0x200   : > { %v3636_v53 = vpack.c.bf16 %v4209_v50, %v4208_v34  ;;  %v2782_v62 = vpop.f32.mrb[11].mxu0  ;;  %v4241_v59 = vadd.f32 %v2798_v38, %v2661_v0  ;;  %v2851_v25 = vmul.f32 %v4209_v50, %v4209_v50  ;;  %v2852_v46 = vmul.f32 %v4239_v41, %v4239_v41  ;;  %v2930_v40 = vld [vmem:[%s5281_s17 + $0x38] sm:$0xf] (%p4561_p5) }
 0x201   : > { %v3646_v45 = vpack.c.bf16 %v4240_v52, %v4238_v36  ;;  %v3631_v60 = vpack.c.bf16 %v2782_v62, %v2779_v39  ;;  %v2835_v1 = vadd.f32 %v2782_v62, %v2779_v39  ;;  %v2849_v24 = vmul.f32 %v2782_v62, %v2782_v62  ;;  %v2932_v39 = vld [vmem:[%s5281_s17 + $0x3c] sm:$0xf] (%p4561_p5)  ;;  %2931 = vst [vmem:[%s5308_s6 + $0x70] sm:$0xf] (%p4561_p5), %v2930_v40 }
 0x202   : > { %3671 = vst [vmem:[%s5281_s17 + $0x48] sm:$0xff] %v3636_v53   ;;  %v3641_v10 = vpack.c.bf16 %v4241_v59, %v4239_v41  ;;  %v2853_v56 = vmul.f32 %v4241_v59, %v4241_v59  ;;  %v2855_v4 = vmul.f32 %v4240_v52, %v4240_v52  ;;  %2933 = vst [vmem:[%s5308_s6 + $0x78] sm:$0xf] (%p4561_p5), %v2932_v39 }
 0x203   : > { %3673 = vst [vmem:[%s5281_s17 + $0x58] sm:$0xff] %v3646_v45   ;;  %3670 = vst [vmem:[%s5281_s17 + $0x40] sm:$0xff] %v3631_v60   ;;  %v2836_v27 = vadd.f32 %v4208_v34, %v2835_v1  ;;  %v2856_v51 = vadd.f32 %v2849_v24, %v2848_v2  ;;  %v2926_v34 = vld [vmem:[%s5281_s17 + $0x30] sm:$0xf] (%p4561_p5) }
 0x204   : > { %3672 = vst [vmem:[%s5281_s17 + $0x50] sm:$0xff] %v3641_v10   ;;  %2927 = vst [vmem:[%s5308_s6 + $0x60] sm:$0xf] (%p4561_p5), %v2926_v34 }
 0x205   : > { %v2837_v31 = vadd.f32 %v4209_v50, %v2836_v27  ;;  %v2857_v37 = vadd.f32 %v2856_v51, %v2850_v43 }
 0x207   : > { %v2838_v44 = vadd.f32 %v4239_v41, %v2837_v31  ;;  %v2858_v47 = vadd.f32 %v2857_v37, %v2851_v25 }
 0x209   : > { %v2839_v54 = vadd.f32 %v4241_v59, %v2838_v44  ;;  %v2859_v32 = vadd.f32 %v2858_v47, %v2852_v46  ;;  %v2938_v50 = vld [vmem:[%s5281_s17 + $0x48] sm:$0xf] (%p4561_p5) }
 0x20a   : > { %v2934_v41 = vld [vmem:[%s5281_s17 + $0x40] sm:$0xf] (%p4561_p5)  ;;  %v2936_v49 = vld [vmem:[%s5281_s17 + $0x44] sm:$0xf] (%p4561_p5)  ;;  %2939 = vst [vmem:[%s5308_s6 + $0x90] sm:$0xf] (%p4561_p5), %v2938_v50 }
 0x20b   : > { %v2840_v57 = vadd.f32 %v4238_v36, %v2839_v54  ;;  %v2860_v0 = vadd.f32 %v2859_v32, %v2853_v56  ;;  %v2928_v36 = vld [vmem:[%s5281_s17 + $0x34] sm:$0xf] (%p4561_p5)  ;;  %2935 = vst [vmem:[%s5308_s6 + $0x80] sm:$0xf] (%p4561_p5), %v2934_v41  ;;  %2937 = vst [vmem:[%s5308_s6 + $0x88] sm:$0xf] (%p4561_p5), %v2936_v49 }
 0x20c   : > { %2929 = vst [vmem:[%s5308_s6 + $0x68] sm:$0xf] (%p4561_p5), %v2928_v36  ;;  %v2942_v38 = vld [vmem:[%s5281_s17 + $0x50] sm:$0xf] (%p4561_p5)  ;;  %v2944_v53 = vld [vmem:[%s5281_s17 + $0x54] sm:$0xf] (%p4561_p5) }
 0x20d   : > { %v2841_v3 = vadd.f32 %v4240_v52, %v2840_v57  ;;  %v2861_v5 = vadd.f32 %v2860_v0, %v2854_v61  ;;  %v2940_v52 = vld [vmem:[%s5281_s17 + $0x4c] sm:$0xf] (%p4561_p5)  ;;  %v2946_v62 = vld [vmem:[%s5281_s17 + $0x58] sm:$0xf] (%p4561_p5)  ;;  %2943 = vst [vmem:[%s5308_s6 + $0xa0] sm:$0xf] (%p4561_p5), %v2942_v38 }
 0x20e   : > { %2941 = vst [vmem:[%s5308_s6 + $0x98] sm:$0xf] (%p4561_p5), %v2940_v52  ;;  %2945 = vst [vmem:[%s5308_s6 + $0xa8] sm:$0xf] (%p4561_p5), %v2944_v53  ;;  %v2948_v59 = vld [vmem:[%s5281_s17 + $0x5c] sm:$0xf] (%p4561_p5) }
 0x20f   : > { %v2842_v6 = vrot.slane %v2841_v3, 4  ;;  %v2862_v58 = vadd.f32 %v2861_v5, %v2855_v4  ;;  %2947 = vst [vmem:[%s5308_s6 + $0xb0] sm:$0xf] (%p4561_p5), %v2946_v62  ;;  %2949 = vst [vmem:[%s5308_s6 + $0xb8] sm:$0xf] (%p4561_p5), %v2948_v59 }
 0x211   : > { %v2843_v63 = vadd.f32 %v2842_v6, %v2841_v3  ;;  %v2863_v7 = vrot.slane %v2862_v58, 4 }
 0x213   : > { %v2844_v8 = vrot.slane %v2843_v63, 2  ;;  %v2864_v9 = vadd.f32 %v2863_v7, %v2862_v58 }
 0x215   : > { %v2845_v11 = vadd.f32 %v2844_v8, %v2843_v63  ;;  %v2865_v29 = vrot.slane %v2864_v9, 2 }
 0x217   : > { %v2846_v12 = vrot.slane %v2845_v11, 1  ;;  %v2866_v13 = vadd.f32 %v2865_v29, %v2864_v9 }
 0x219   : > { %v2847_v14 = vadd.f32 %v2846_v12, %v2845_v11  ;;  %v2867_v42 = vrot.slane %v2866_v13, 1 }
 0x21a   : > { %2884 = sbr.rel (!%p4561_p5) target bundleno = 545 (0x221), region = 81 }
 0x21b   : > { %v2869_v15 = vadd.f32 %v2847_v14, %v2046_v48  ;;  %v2868_v16 = vadd.f32 %v2867_v42, %v2866_v13  ;;  %v2920_v48 = vld [vmem:[%s5281_s17 + $0x24] sm:$0xf] (%p4561_p5) }
 0x21c   : > { %2921 = vst [vmem:[%s5308_s6 + $0x48] sm:$0xf] (%p4561_p5), %v2920_v48 }
 0x21d   : > { %v2870_v17 = vadd.f32 %v2868_v16, %v2047_v30  ;;  %v2922_v30 = vld [vmem:[%s5281_s17 + $0x28] sm:$0xf] (%p4561_p5) }
 0x21e   : > { %2923 = vst [vmem:[%s5308_s6 + $0x50] sm:$0xf] (%p4561_p5), %v2922_v30 }
 0x21f   : > { %v2872_v18 = vsel %vm2871_vm0, %v2869_v15, %v2870_v17 }
 0x220   : > { %2873 = vst [vmem:[%s362_s27] sm:$0x3] %v2872_v18 }
 0x221 PF: > { %p13_p11 = scmp.ge.s32.totalorder %s4549_s22, 4   ;;  %s5373_s18 = smov %s4493_s19 }
 0x222   : > { %s5374_s19 = smov %s4559_s25  ;;  %s5375_s20 = smov %s4549_s22 }
 0x223   :  { %15 = sbr.rel (!%p13_p11) target bundleno = 2 (0x2), region = 173 }

</bundles_post_ra>
